<compile_context>
chip_gen: v6e
topology: v6e:2x2x1
jax: 0.10.0
libtpu: 0.0.40
codegen_flags: <defaults>
</compile_context>

<pallas_src>
import functools

import jax
import jax.numpy as jnp
from jax import lax
from jax.experimental import pallas as pl
from jax.experimental.pallas import tpu as pltpu

BN_EPS = 1e-5


def _bn_relu(h, gamma, beta):
    """Training-mode BatchNorm (batch stats, biased var) fused into scale/shift, + ReLU."""
    mean = jnp.mean(h, axis=0, keepdims=True)
    var = jnp.mean((h - mean) ** 2, axis=0, keepdims=True)
    scale = lax.rsqrt(var + BN_EPS) * gamma
    shift = beta - mean * scale
    return jnp.maximum(h * scale + shift, 0.0)


def deep_hyper_butterfly_kernel(
    x_ref,              # [B, IN]
    w1_ref, b1_ref,     # [IN, H], [1, H]   (columns permuted: even feats | odd feats)
    g1_ref, be1_ref,    # [1, H] each       (bn1 gamma/beta, same permutation)
    coef_ref,           # [L, 3*H/2]        packed per-layer (a | b | a^2+b^2)
    g2_ref, be2_ref,    # [1, H] each       (bn2 gamma/beta, same permutation)
    w2_ref, b2_ref,     # [H, OUT_PAD], [1, OUT_PAD]   (w2 rows permuted to match)
    o_ref,              # [B, OUT_PAD]
    *, c, L, H2):
    sqrt_c = jnp.float32(c) ** 0.5
    x = x_ref[...].astype(jnp.float32)

    # ---- fc1: one MXU dot; even/odd feature permutation folded into w1 columns ------
    h = jnp.dot(x, w1_ref[...], preferred_element_type=jnp.float32) + b1_ref[...]
    h = _bn_relu(h, g1_ref[...], be1_ref[...])

    # Split once into original even / odd feature halves (static lane slices).
    he = h[:, :H2]
    ho = h[:, H2:]

    # ---- L hyper-butterfly layers (fully unrolled, no MXU, short EUP chain) ---------
    oe, oo = he, ho
    n2 = None
    for i in range(L):
        row = coef_ref[pl.ds(i, 1), :]            # one [1, 3*H/2] row load per layer
        a_i = row[:, 0:H2]
        b_i = row[:, H2:2 * H2]
        s_i = row[:, 2 * H2:3 * H2]               # s = a^2 + b^2 (precomputed)

        sq = he * he + ho * ho
        if i % 10 == 0:
            # True lane reduction only where the analytic carry is broken
            # (layer 0 and the layer right after a residual skip).
            n2 = jnp.sum(sq, axis=-1, keepdims=True)
        wn2 = jnp.sum(s_i * sq, axis=-1, keepdims=True)

        # logmap0 scale (Poincare ball, curvature c)
        scn = jnp.clip(sqrt_c * jnp.sqrt(n2 + 1e-12), 1e-6, 1.0 - 1e-5)
        artanh = 0.5 * (jnp.log(1.0 + scn) - jnp.log(1.0 - scn))
        lam = artanh * pl.reciprocal(scn, approx=False)

        # expmap0 scale via ||v||^2 = (a^2+b^2)||u||^2 (no second data pass)
        m2 = lam * lam * wn2
        sv = jnp.maximum(sqrt_c * jnp.sqrt(m2 + 1e-12), 1e-6)
        mu = jnp.tanh(sv) * pl.reciprocal(sv, approx=False)
        f = lam * mu                               # fused logmap/expmap scale

        # One butterfly factor: 2x2 rotation per (even, odd) feature pair.
        he, ho = f * (a_i * he + b_i * ho), f * (a_i * ho - b_i * he)

        # Carry ||h_new||^2 analytically: f^2 * wn2 == mu^2 * m2 (exact recurrence).
        n2 = mu * mu * m2

        if (i + 1) % 10 == 0:                      # residual skip (2 of L layers)
            he = he + oe
            ho = ho + oo
            oe, oo = he, ho

    # ---- rejoin halves (layout folded into w2 rows), bn2+relu, one tail matmul ------
    h = jnp.concatenate([he, ho], axis=-1)
    h = _bn_relu(h, g2_ref[...], be2_ref[...])
    out = jnp.dot(h, w2_ref[...], preferred_element_type=jnp.float32) + b2_ref[...]
    o_ref[...] = out.astype(o_ref.dtype)           # full 128-lane unmasked store


def prepare_params(w1, b1, g1, be1, params, g2, be2, w2, b2, *, out_pad=128):
    """One-time parameter re-layout. Call once and cache; NOT part of the hot path."""
    f32 = jnp.float32
    H = w1.shape[1]
    out_dim = w2.shape[1]

    def perm(v):                      # [H] -> [1, H], even positions first then odd
        v = v.reshape(H).astype(f32)
        return jnp.concatenate([v[0::2], v[1::2]])[None, :]

    w1m = jnp.concatenate([w1[:, 0::2], w1[:, 1::2]], axis=1).astype(f32)   # [IN, H]
    b1m, g1m, be1m = perm(b1), perm(g1), perm(be1)
    g2m, be2m = perm(g2), perm(be2)

    a = params[:, 0::2].astype(f32)
    b = params[:, 1::2].astype(f32)
    coef = jnp.concatenate([a, b, a * a + b * b], axis=1)                   # [L, 3*H/2]

    w2p = jnp.zeros((H, out_pad), f32).at[:, :out_dim].set(w2.astype(f32))
    w2m = jnp.concatenate([w2p[0::2, :], w2p[1::2, :]], axis=0)             # [H, OUT_PAD]
    b2p = jnp.zeros((1, out_pad), f32).at[0, :out_dim].set(b2.reshape(-1).astype(f32))
    return (w1m, b1m, g1m, be1m, coef, g2m, be2m, w2m, b2p)


def deep_hyper_butterfly_fwd(x, prepared, *, c, L, out_dim):
    """Forward pass on pre-laid-out parameters. x: [B, IN] float32."""
    w1m, b1m, g1m, be1m, coef, g2m, be2m, w2m, b2p = prepared
    B, in_dim = x.shape
    H = w1m.shape[1]
    H2 = H // 2
    out_pad = w2m.shape[1]

    vmem = pl.BlockSpec(memory_space=pltpu.MemorySpace.VMEM)
    flops = 2 * B * in_dim * H + 2 * B * H * out_pad + 14 * L * B * H
    transcendentals = 7 * L * B + 4 * B * H
    bytes_accessed = 4 * (x.size + w1m.size + b1m.size + g1m.size + be1m.size
                          + coef.size + g2m.size + be2m.size + w2m.size + b2p.size
                          + B * out_pad)

    # Grid-less single invocation: at B=8 the whole working set (~150 KiB) lives in
    # VMEM; a batch grid (dimension_semantics=("parallel",)) only pays off at large
    # batch on v7x's second TensorCore.
    out = pl.pallas_call(
        functools.partial(deep_hyper_butterfly_kernel, c=c, L=L, H2=H2),
        out_shape=jax.ShapeDtypeStruct((B, out_pad), jnp.float32),
        in_specs=[vmem] * 10,
        out_specs=vmem,
        cost_estimate=pl.CostEstimate(
            flops=flops, transcendentals=transcendentals,
            bytes_accessed=bytes_accessed),
        compiler_params=pltpu.CompilerParams(vmem_limit_bytes=8 * 1024 * 1024),
    )(x.astype(jnp.float32), w1m, b1m, g1m, be1m, coef, g2m, be2m, w2m, b2p)
    return out[:, :out_dim]


if __name__ == "__main__":
    # Small shapes consistent with the module: batch=8, in_dim=64, hidden=32, out=10, L=20.
    B, IN_DIM, HIDDEN, OUT_DIM, L, C = 8, 64, 32, 10, 20, 0.001

    key = jax.random.PRNGKey(0)
    kx, kw1, kp, kw2 = jax.random.split(key, 4)

    x = jax.random.normal(kx, (B, IN_DIM), jnp.float32)

    # fc1 / fc2 (deterministic synthetic init, stored as [in, out])
    w1 = jax.random.normal(kw1, (IN_DIM, HIDDEN), jnp.float32) / jnp.sqrt(IN_DIM)
    b1 = jnp.zeros((HIDDEN,), jnp.float32)
    w2 = jax.random.normal(kw2, (HIDDEN, OUT_DIM), jnp.float32) / jnp.sqrt(HIDDEN)
    b2 = jnp.zeros((OUT_DIM,), jnp.float32)

    # BatchNorm affine params (fresh module: gamma=1, beta=0)
    g1 = jnp.ones((HIDDEN,), jnp.float32)
    be1 = jnp.zeros((HIDDEN,), jnp.float32)
    g2 = jnp.ones((HIDDEN,), jnp.float32)
    be2 = jnp.zeros((HIDDEN,), jnp.float32)

    # params_list: L vectors of size hidden (params_per_layer == hidden_dim for layer 0)
    params = jax.random.normal(kp, (L, HIDDEN), jnp.float32) * 0.01

    # One-time layout; cached outside the per-call path.
    prepared = jax.block_until_ready(
        prepare_params(w1, b1, g1, be1, params, g2, be2, w2, b2))

    fwd = jax.jit(functools.partial(
        deep_hyper_butterfly_fwd, c=C, L=L, out_dim=OUT_DIM))

    out = jax.block_until_ready(fwd(x, prepared))

    assert out.shape == (B, OUT_DIM)
    assert bool(jnp.all(jnp.isfinite(out)))
    print("KERNEL_OK")
</pallas_src>

<mosaic_0001>
module attributes {stable_mosaic.version = 11 : i64} {
  func.func @deep_hyper_butterfly_kernel(%arg0: memref<8x64xf32, #tpu.memory_space<vmem>>, %arg1: memref<64x32xf32, #tpu.memory_space<vmem>>, %arg2: memref<1x32xf32, #tpu.memory_space<vmem>>, %arg3: memref<1x32xf32, #tpu.memory_space<vmem>>, %arg4: memref<1x32xf32, #tpu.memory_space<vmem>>, %arg5: memref<20x48xf32, #tpu.memory_space<vmem>>, %arg6: memref<1x32xf32, #tpu.memory_space<vmem>>, %arg7: memref<1x32xf32, #tpu.memory_space<vmem>>, %arg8: memref<32x128xf32, #tpu.memory_space<vmem>>, %arg9: memref<1x128xf32, #tpu.memory_space<vmem>>, %arg10: memref<8x128xf32, #tpu.memory_space<vmem>>) attributes {dimension_semantics = [], scalar_prefetch = 0 : i64, scratch_operands = 0 : i64, tpu.core_type = #tpu.core_type<tc>} {
    %cst = arith.constant 1.000000e-03 : f32
    %cst_0 = arith.constant 5.000000e-01 : f32
    %0 = math.powf %cst, %cst_0 : f32
    %c0 = arith.constant 0 : index
    %c0_1 = arith.constant 0 : index
    %1 = vector.load %arg0[%c0, %c0_1] : memref<8x64xf32, #tpu.memory_space<vmem>>, vector<8x64xf32>
    %c0_2 = arith.constant 0 : index
    %c0_3 = arith.constant 0 : index
    %2 = vector.load %arg1[%c0_2, %c0_3] : memref<64x32xf32, #tpu.memory_space<vmem>>, vector<64x32xf32>
    %cst_4 = arith.constant dense<0.000000e+00> : vector<8x32xf32>
    %3 = tpu.matmul %1, %2, %cst_4 {dimension_numbers = #tpu.dot_dimension_numbers<[1], [0], [0], [1], [0, 0, 1, 1], [], []>} : vector<8x64xf32>, vector<64x32xf32>, vector<8x32xf32> -> vector<8x32xf32>
    %c0_5 = arith.constant 0 : index
    %c0_6 = arith.constant 0 : index
    %4 = vector.load %arg2[%c0_5, %c0_6] : memref<1x32xf32, #tpu.memory_space<vmem>>, vector<1x32xf32>
    %5 = vector.broadcast %4 : vector<1x32xf32> to vector<8x32xf32>
    %6 = arith.addf %3, %5 : vector<8x32xf32>
    %c0_7 = arith.constant 0 : index
    %c0_8 = arith.constant 0 : index
    %7 = vector.load %arg3[%c0_7, %c0_8] : memref<1x32xf32, #tpu.memory_space<vmem>>, vector<1x32xf32>
    %c0_9 = arith.constant 0 : index
    %c0_10 = arith.constant 0 : index
    %8 = vector.load %arg4[%c0_9, %c0_10] : memref<1x32xf32, #tpu.memory_space<vmem>>, vector<1x32xf32>
    %cst_11 = arith.constant dense<0.000000e+00> : vector<32xf32>
    %9 = vector.multi_reduction <add>, %6, %cst_11 [0] : vector<8x32xf32> to vector<32xf32>
    %10 = vector.shape_cast %9 : vector<32xf32> to vector<1x32xf32>
    %cst_12 = arith.constant 8.000000e+00 : f32
    %11 = vector.broadcast %cst_12 : f32 to vector<1x32xf32>
    %12 = arith.divf %10, %11 : vector<1x32xf32>
    %13 = vector.broadcast %12 : vector<1x32xf32> to vector<8x32xf32>
    %14 = arith.subf %6, %13 : vector<8x32xf32>
    %15 = arith.mulf %14, %14 : vector<8x32xf32>
    %cst_13 = arith.constant dense<0.000000e+00> : vector<32xf32>
    %16 = vector.multi_reduction <add>, %15, %cst_13 [0] : vector<8x32xf32> to vector<32xf32>
    %17 = vector.shape_cast %16 : vector<32xf32> to vector<1x32xf32>
    %cst_14 = arith.constant 8.000000e+00 : f32
    %18 = vector.broadcast %cst_14 : f32 to vector<1x32xf32>
    %19 = arith.divf %17, %18 : vector<1x32xf32>
    %cst_15 = arith.constant 9.99999974E-6 : f32
    %20 = vector.broadcast %cst_15 : f32 to vector<1x32xf32>
    %21 = arith.addf %19, %20 : vector<1x32xf32>
    %22 = math.rsqrt %21 : vector<1x32xf32>
    %23 = arith.mulf %22, %7 : vector<1x32xf32>
    %24 = arith.mulf %12, %23 : vector<1x32xf32>
    %25 = arith.subf %8, %24 : vector<1x32xf32>
    %26 = vector.broadcast %23 : vector<1x32xf32> to vector<8x32xf32>
    %27 = arith.mulf %6, %26 : vector<8x32xf32>
    %28 = vector.broadcast %25 : vector<1x32xf32> to vector<8x32xf32>
    %29 = arith.addf %27, %28 : vector<8x32xf32>
    %cst_16 = arith.constant 0.000000e+00 : f32
    %30 = vector.broadcast %cst_16 : f32 to vector<8x32xf32>
    %31 = arith.maximumf %29, %30 : vector<8x32xf32>
    %32 = vector.extract_strided_slice %31 {offsets = [0, 0], sizes = [8, 16], strides = [1, 1]} : vector<8x32xf32> to vector<8x16xf32>
    %33 = vector.extract_strided_slice %31 {offsets = [0, 16], sizes = [8, 16], strides = [1, 1]} : vector<8x32xf32> to vector<8x16xf32>
    %c0_17 = arith.constant 0 : index
    %c0_18 = arith.constant 0 : index
    %34 = vector.load %arg5[%c0_17, %c0_18] : memref<20x48xf32, #tpu.memory_space<vmem>>, vector<1x48xf32>
    %35 = vector.extract_strided_slice %34 {offsets = [0, 0], sizes = [1, 16], strides = [1, 1]} : vector<1x48xf32> to vector<1x16xf32>
    %36 = vector.extract_strided_slice %34 {offsets = [0, 16], sizes = [1, 16], strides = [1, 1]} : vector<1x48xf32> to vector<1x16xf32>
    %37 = vector.extract_strided_slice %34 {offsets = [0, 32], sizes = [1, 16], strides = [1, 1]} : vector<1x48xf32> to vector<1x16xf32>
    %38 = arith.mulf %32, %32 : vector<8x16xf32>
    %39 = arith.mulf %33, %33 : vector<8x16xf32>
    %40 = arith.addf %38, %39 : vector<8x16xf32>
    %cst_19 = arith.constant dense<0.000000e+00> : vector<8xf32>
    %41 = vector.multi_reduction <add>, %40, %cst_19 [1] : vector<8x16xf32> to vector<8xf32>
    %42 = vector.shape_cast %41 : vector<8xf32> to vector<8x1xf32>
    %43 = vector.broadcast %37 : vector<1x16xf32> to vector<8x16xf32>
    %44 = arith.mulf %43, %40 : vector<8x16xf32>
    %cst_20 = arith.constant dense<0.000000e+00> : vector<8xf32>
    %45 = vector.multi_reduction <add>, %44, %cst_20 [1] : vector<8x16xf32> to vector<8xf32>
    %46 = vector.shape_cast %45 : vector<8xf32> to vector<8x1xf32>
    %cst_21 = arith.constant 9.99999996E-13 : f32
    %47 = vector.broadcast %cst_21 : f32 to vector<8x1xf32>
    %48 = arith.addf %42, %47 : vector<8x1xf32>
    %49 = math.sqrt %48 : vector<8x1xf32>
    %50 = vector.broadcast %0 : f32 to vector<8x1xf32>
    %51 = arith.mulf %50, %49 : vector<8x1xf32>
    %cst_22 = arith.constant 9.99999997E-7 : f32
    %cst_23 = arith.constant 0.999989986 : f32
    %52 = vector.broadcast %cst_22 : f32 to vector<8x1xf32>
    %53 = arith.maximumf %52, %51 : vector<8x1xf32>
    %54 = vector.broadcast %cst_23 : f32 to vector<8x1xf32>
    %55 = arith.minimumf %54, %53 : vector<8x1xf32>
    %cst_24 = arith.constant 1.000000e+00 : f32
    %56 = vector.broadcast %cst_24 : f32 to vector<8x1xf32>
    %57 = arith.addf %56, %55 : vector<8x1xf32>
    %58 = math.log %57 : vector<8x1xf32>
    %cst_25 = arith.constant 1.000000e+00 : f32
    %59 = vector.broadcast %cst_25 : f32 to vector<8x1xf32>
    %60 = arith.subf %59, %55 : vector<8x1xf32>
    %61 = math.log %60 : vector<8x1xf32>
    %62 = arith.subf %58, %61 : vector<8x1xf32>
    %cst_26 = arith.constant 5.000000e-01 : f32
    %63 = vector.broadcast %cst_26 : f32 to vector<8x1xf32>
    %64 = arith.mulf %63, %62 : vector<8x1xf32>
    %65 = tpu.reciprocal %55 : vector<8x1xf32> -> vector<8x1xf32>
    %66 = arith.mulf %64, %65 : vector<8x1xf32>
    %67 = arith.mulf %66, %66 : vector<8x1xf32>
    %68 = arith.mulf %67, %46 : vector<8x1xf32>
    %cst_27 = arith.constant 9.99999996E-13 : f32
    %69 = vector.broadcast %cst_27 : f32 to vector<8x1xf32>
    %70 = arith.addf %68, %69 : vector<8x1xf32>
    %71 = math.sqrt %70 : vector<8x1xf32>
    %72 = vector.broadcast %0 : f32 to vector<8x1xf32>
    %73 = arith.mulf %72, %71 : vector<8x1xf32>
    %cst_28 = arith.constant 9.99999997E-7 : f32
    %74 = vector.broadcast %cst_28 : f32 to vector<8x1xf32>
    %75 = arith.maximumf %73, %74 : vector<8x1xf32>
    %76 = math.tanh %75 : vector<8x1xf32>
    %77 = tpu.reciprocal %75 : vector<8x1xf32> -> vector<8x1xf32>
    %78 = arith.mulf %76, %77 : vector<8x1xf32>
    %79 = arith.mulf %66, %78 : vector<8x1xf32>
    %80 = vector.broadcast %35 : vector<1x16xf32> to vector<8x16xf32>
    %81 = arith.mulf %80, %32 : vector<8x16xf32>
    %82 = vector.broadcast %36 : vector<1x16xf32> to vector<8x16xf32>
    %83 = arith.mulf %82, %33 : vector<8x16xf32>
    %84 = arith.addf %81, %83 : vector<8x16xf32>
    %85 = vector.broadcast %79 : vector<8x1xf32> to vector<8x16xf32>
    %86 = arith.mulf %85, %84 : vector<8x16xf32>
    %87 = vector.broadcast %35 : vector<1x16xf32> to vector<8x16xf32>
    %88 = arith.mulf %87, %33 : vector<8x16xf32>
    %89 = vector.broadcast %36 : vector<1x16xf32> to vector<8x16xf32>
    %90 = arith.mulf %89, %32 : vector<8x16xf32>
    %91 = arith.subf %88, %90 : vector<8x16xf32>
    %92 = vector.broadcast %79 : vector<8x1xf32> to vector<8x16xf32>
    %93 = arith.mulf %92, %91 : vector<8x16xf32>
    %94 = arith.mulf %78, %78 : vector<8x1xf32>
    %95 = arith.mulf %94, %68 : vector<8x1xf32>
    %c1 = arith.constant 1 : index
    %c0_29 = arith.constant 0 : index
    %96 = vector.load %arg5[%c1, %c0_29] : memref<20x48xf32, #tpu.memory_space<vmem>>, vector<1x48xf32>
    %97 = vector.extract_strided_slice %96 {offsets = [0, 0], sizes = [1, 16], strides = [1, 1]} : vector<1x48xf32> to vector<1x16xf32>
    %98 = vector.extract_strided_slice %96 {offsets = [0, 16], sizes = [1, 16], strides = [1, 1]} : vector<1x48xf32> to vector<1x16xf32>
    %99 = vector.extract_strided_slice %96 {offsets = [0, 32], sizes = [1, 16], strides = [1, 1]} : vector<1x48xf32> to vector<1x16xf32>
    %100 = arith.mulf %86, %86 : vector<8x16xf32>
    %101 = arith.mulf %93, %93 : vector<8x16xf32>
    %102 = arith.addf %100, %101 : vector<8x16xf32>
    %103 = vector.broadcast %99 : vector<1x16xf32> to vector<8x16xf32>
    %104 = arith.mulf %103, %102 : vector<8x16xf32>
    %cst_30 = arith.constant dense<0.000000e+00> : vector<8xf32>
    %105 = vector.multi_reduction <add>, %104, %cst_30 [1] : vector<8x16xf32> to vector<8xf32>
    %106 = vector.shape_cast %105 : vector<8xf32> to vector<8x1xf32>
    %cst_31 = arith.constant 9.99999996E-13 : f32
    %107 = vector.broadcast %cst_31 : f32 to vector<8x1xf32>
    %108 = arith.addf %95, %107 : vector<8x1xf32>
    %109 = math.sqrt %108 : vector<8x1xf32>
    %110 = vector.broadcast %0 : f32 to vector<8x1xf32>
    %111 = arith.mulf %110, %109 : vector<8x1xf32>
    %cst_32 = arith.constant 9.99999997E-7 : f32
    %cst_33 = arith.constant 0.999989986 : f32
    %112 = vector.broadcast %cst_32 : f32 to vector<8x1xf32>
    %113 = arith.maximumf %112, %111 : vector<8x1xf32>
    %114 = vector.broadcast %cst_33 : f32 to vector<8x1xf32>
    %115 = arith.minimumf %114, %113 : vector<8x1xf32>
    %cst_34 = arith.constant 1.000000e+00 : f32
    %116 = vector.broadcast %cst_34 : f32 to vector<8x1xf32>
    %117 = arith.addf %116, %115 : vector<8x1xf32>
    %118 = math.log %117 : vector<8x1xf32>
    %cst_35 = arith.constant 1.000000e+00 : f32
    %119 = vector.broadcast %cst_35 : f32 to vector<8x1xf32>
    %120 = arith.subf %119, %115 : vector<8x1xf32>
    %121 = math.log %120 : vector<8x1xf32>
    %122 = arith.subf %118, %121 : vector<8x1xf32>
    %cst_36 = arith.constant 5.000000e-01 : f32
    %123 = vector.broadcast %cst_36 : f32 to vector<8x1xf32>
    %124 = arith.mulf %123, %122 : vector<8x1xf32>
    %125 = tpu.reciprocal %115 : vector<8x1xf32> -> vector<8x1xf32>
    %126 = arith.mulf %124, %125 : vector<8x1xf32>
    %127 = arith.mulf %126, %126 : vector<8x1xf32>
    %128 = arith.mulf %127, %106 : vector<8x1xf32>
    %cst_37 = arith.constant 9.99999996E-13 : f32
    %129 = vector.broadcast %cst_37 : f32 to vector<8x1xf32>
    %130 = arith.addf %128, %129 : vector<8x1xf32>
    %131 = math.sqrt %130 : vector<8x1xf32>
    %132 = vector.broadcast %0 : f32 to vector<8x1xf32>
    %133 = arith.mulf %132, %131 : vector<8x1xf32>
    %cst_38 = arith.constant 9.99999997E-7 : f32
    %134 = vector.broadcast %cst_38 : f32 to vector<8x1xf32>
    %135 = arith.maximumf %133, %134 : vector<8x1xf32>
    %136 = math.tanh %135 : vector<8x1xf32>
    %137 = tpu.reciprocal %135 : vector<8x1xf32> -> vector<8x1xf32>
    %138 = arith.mulf %136, %137 : vector<8x1xf32>
    %139 = arith.mulf %126, %138 : vector<8x1xf32>
    %140 = vector.broadcast %97 : vector<1x16xf32> to vector<8x16xf32>
    %141 = arith.mulf %140, %86 : vector<8x16xf32>
    %142 = vector.broadcast %98 : vector<1x16xf32> to vector<8x16xf32>
    %143 = arith.mulf %142, %93 : vector<8x16xf32>
    %144 = arith.addf %141, %143 : vector<8x16xf32>
    %145 = vector.broadcast %139 : vector<8x1xf32> to vector<8x16xf32>
    %146 = arith.mulf %145, %144 : vector<8x16xf32>
    %147 = vector.broadcast %97 : vector<1x16xf32> to vector<8x16xf32>
    %148 = arith.mulf %147, %93 : vector<8x16xf32>
    %149 = vector.broadcast %98 : vector<1x16xf32> to vector<8x16xf32>
    %150 = arith.mulf %149, %86 : vector<8x16xf32>
    %151 = arith.subf %148, %150 : vector<8x16xf32>
    %152 = vector.broadcast %139 : vector<8x1xf32> to vector<8x16xf32>
    %153 = arith.mulf %152, %151 : vector<8x16xf32>
    %154 = arith.mulf %138, %138 : vector<8x1xf32>
    %155 = arith.mulf %154, %128 : vector<8x1xf32>
    %c2 = arith.constant 2 : index
    %c0_39 = arith.constant 0 : index
    %156 = vector.load %arg5[%c2, %c0_39] : memref<20x48xf32, #tpu.memory_space<vmem>>, vector<1x48xf32>
    %157 = vector.extract_strided_slice %156 {offsets = [0, 0], sizes = [1, 16], strides = [1, 1]} : vector<1x48xf32> to vector<1x16xf32>
    %158 = vector.extract_strided_slice %156 {offsets = [0, 16], sizes = [1, 16], strides = [1, 1]} : vector<1x48xf32> to vector<1x16xf32>
    %159 = vector.extract_strided_slice %156 {offsets = [0, 32], sizes = [1, 16], strides = [1, 1]} : vector<1x48xf32> to vector<1x16xf32>
    %160 = arith.mulf %146, %146 : vector<8x16xf32>
    %161 = arith.mulf %153, %153 : vector<8x16xf32>
    %162 = arith.addf %160, %161 : vector<8x16xf32>
    %163 = vector.broadcast %159 : vector<1x16xf32> to vector<8x16xf32>
    %164 = arith.mulf %163, %162 : vector<8x16xf32>
    %cst_40 = arith.constant dense<0.000000e+00> : vector<8xf32>
    %165 = vector.multi_reduction <add>, %164, %cst_40 [1] : vector<8x16xf32> to vector<8xf32>
    %166 = vector.shape_cast %165 : vector<8xf32> to vector<8x1xf32>
    %cst_41 = arith.constant 9.99999996E-13 : f32
    %167 = vector.broadcast %cst_41 : f32 to vector<8x1xf32>
    %168 = arith.addf %155, %167 : vector<8x1xf32>
    %169 = math.sqrt %168 : vector<8x1xf32>
    %170 = vector.broadcast %0 : f32 to vector<8x1xf32>
    %171 = arith.mulf %170, %169 : vector<8x1xf32>
    %cst_42 = arith.constant 9.99999997E-7 : f32
    %cst_43 = arith.constant 0.999989986 : f32
    %172 = vector.broadcast %cst_42 : f32 to vector<8x1xf32>
    %173 = arith.maximumf %172, %171 : vector<8x1xf32>
    %174 = vector.broadcast %cst_43 : f32 to vector<8x1xf32>
    %175 = arith.minimumf %174, %173 : vector<8x1xf32>
    %cst_44 = arith.constant 1.000000e+00 : f32
    %176 = vector.broadcast %cst_44 : f32 to vector<8x1xf32>
    %177 = arith.addf %176, %175 : vector<8x1xf32>
    %178 = math.log %177 : vector<8x1xf32>
    %cst_45 = arith.constant 1.000000e+00 : f32
    %179 = vector.broadcast %cst_45 : f32 to vector<8x1xf32>
    %180 = arith.subf %179, %175 : vector<8x1xf32>
    %181 = math.log %180 : vector<8x1xf32>
    %182 = arith.subf %178, %181 : vector<8x1xf32>
    %cst_46 = arith.constant 5.000000e-01 : f32
    %183 = vector.broadcast %cst_46 : f32 to vector<8x1xf32>
    %184 = arith.mulf %183, %182 : vector<8x1xf32>
    %185 = tpu.reciprocal %175 : vector<8x1xf32> -> vector<8x1xf32>
    %186 = arith.mulf %184, %185 : vector<8x1xf32>
    %187 = arith.mulf %186, %186 : vector<8x1xf32>
    %188 = arith.mulf %187, %166 : vector<8x1xf32>
    %cst_47 = arith.constant 9.99999996E-13 : f32
    %189 = vector.broadcast %cst_47 : f32 to vector<8x1xf32>
    %190 = arith.addf %188, %189 : vector<8x1xf32>
    %191 = math.sqrt %190 : vector<8x1xf32>
    %192 = vector.broadcast %0 : f32 to vector<8x1xf32>
    %193 = arith.mulf %192, %191 : vector<8x1xf32>
    %cst_48 = arith.constant 9.99999997E-7 : f32
    %194 = vector.broadcast %cst_48 : f32 to vector<8x1xf32>
    %195 = arith.maximumf %193, %194 : vector<8x1xf32>
    %196 = math.tanh %195 : vector<8x1xf32>
    %197 = tpu.reciprocal %195 : vector<8x1xf32> -> vector<8x1xf32>
    %198 = arith.mulf %196, %197 : vector<8x1xf32>
    %199 = arith.mulf %186, %198 : vector<8x1xf32>
    %200 = vector.broadcast %157 : vector<1x16xf32> to vector<8x16xf32>
    %201 = arith.mulf %200, %146 : vector<8x16xf32>
    %202 = vector.broadcast %158 : vector<1x16xf32> to vector<8x16xf32>
    %203 = arith.mulf %202, %153 : vector<8x16xf32>
    %204 = arith.addf %201, %203 : vector<8x16xf32>
    %205 = vector.broadcast %199 : vector<8x1xf32> to vector<8x16xf32>
    %206 = arith.mulf %205, %204 : vector<8x16xf32>
    %207 = vector.broadcast %157 : vector<1x16xf32> to vector<8x16xf32>
    %208 = arith.mulf %207, %153 : vector<8x16xf32>
    %209 = vector.broadcast %158 : vector<1x16xf32> to vector<8x16xf32>
    %210 = arith.mulf %209, %146 : vector<8x16xf32>
    %211 = arith.subf %208, %210 : vector<8x16xf32>
    %212 = vector.broadcast %199 : vector<8x1xf32> to vector<8x16xf32>
    %213 = arith.mulf %212, %211 : vector<8x16xf32>
    %214 = arith.mulf %198, %198 : vector<8x1xf32>
    %215 = arith.mulf %214, %188 : vector<8x1xf32>
    %c3 = arith.constant 3 : index
    %c0_49 = arith.constant 0 : index
    %216 = vector.load %arg5[%c3, %c0_49] : memref<20x48xf32, #tpu.memory_space<vmem>>, vector<1x48xf32>
    %217 = vector.extract_strided_slice %216 {offsets = [0, 0], sizes = [1, 16], strides = [1, 1]} : vector<1x48xf32> to vector<1x16xf32>
    %218 = vector.extract_strided_slice %216 {offsets = [0, 16], sizes = [1, 16], strides = [1, 1]} : vector<1x48xf32> to vector<1x16xf32>
    %219 = vector.extract_strided_slice %216 {offsets = [0, 32], sizes = [1, 16], strides = [1, 1]} : vector<1x48xf32> to vector<1x16xf32>
    %220 = arith.mulf %206, %206 : vector<8x16xf32>
    %221 = arith.mulf %213, %213 : vector<8x16xf32>
    %222 = arith.addf %220, %221 : vector<8x16xf32>
    %223 = vector.broadcast %219 : vector<1x16xf32> to vector<8x16xf32>
    %224 = arith.mulf %223, %222 : vector<8x16xf32>
    %cst_50 = arith.constant dense<0.000000e+00> : vector<8xf32>
    %225 = vector.multi_reduction <add>, %224, %cst_50 [1] : vector<8x16xf32> to vector<8xf32>
    %226 = vector.shape_cast %225 : vector<8xf32> to vector<8x1xf32>
    %cst_51 = arith.constant 9.99999996E-13 : f32
    %227 = vector.broadcast %cst_51 : f32 to vector<8x1xf32>
    %228 = arith.addf %215, %227 : vector<8x1xf32>
    %229 = math.sqrt %228 : vector<8x1xf32>
    %230 = vector.broadcast %0 : f32 to vector<8x1xf32>
    %231 = arith.mulf %230, %229 : vector<8x1xf32>
    %cst_52 = arith.constant 9.99999997E-7 : f32
    %cst_53 = arith.constant 0.999989986 : f32
    %232 = vector.broadcast %cst_52 : f32 to vector<8x1xf32>
    %233 = arith.maximumf %232, %231 : vector<8x1xf32>
    %234 = vector.broadcast %cst_53 : f32 to vector<8x1xf32>
    %235 = arith.minimumf %234, %233 : vector<8x1xf32>
    %cst_54 = arith.constant 1.000000e+00 : f32
    %236 = vector.broadcast %cst_54 : f32 to vector<8x1xf32>
    %237 = arith.addf %236, %235 : vector<8x1xf32>
    %238 = math.log %237 : vector<8x1xf32>
    %cst_55 = arith.constant 1.000000e+00 : f32
    %239 = vector.broadcast %cst_55 : f32 to vector<8x1xf32>
    %240 = arith.subf %239, %235 : vector<8x1xf32>
    %241 = math.log %240 : vector<8x1xf32>
    %242 = arith.subf %238, %241 : vector<8x1xf32>
    %cst_56 = arith.constant 5.000000e-01 : f32
    %243 = vector.broadcast %cst_56 : f32 to vector<8x1xf32>
    %244 = arith.mulf %243, %242 : vector<8x1xf32>
    %245 = tpu.reciprocal %235 : vector<8x1xf32> -> vector<8x1xf32>
    %246 = arith.mulf %244, %245 : vector<8x1xf32>
    %247 = arith.mulf %246, %246 : vector<8x1xf32>
    %248 = arith.mulf %247, %226 : vector<8x1xf32>
    %cst_57 = arith.constant 9.99999996E-13 : f32
    %249 = vector.broadcast %cst_57 : f32 to vector<8x1xf32>
    %250 = arith.addf %248, %249 : vector<8x1xf32>
    %251 = math.sqrt %250 : vector<8x1xf32>
    %252 = vector.broadcast %0 : f32 to vector<8x1xf32>
    %253 = arith.mulf %252, %251 : vector<8x1xf32>
    %cst_58 = arith.constant 9.99999997E-7 : f32
    %254 = vector.broadcast %cst_58 : f32 to vector<8x1xf32>
    %255 = arith.maximumf %253, %254 : vector<8x1xf32>
    %256 = math.tanh %255 : vector<8x1xf32>
    %257 = tpu.reciprocal %255 : vector<8x1xf32> -> vector<8x1xf32>
    %258 = arith.mulf %256, %257 : vector<8x1xf32>
    %259 = arith.mulf %246, %258 : vector<8x1xf32>
    %260 = vector.broadcast %217 : vector<1x16xf32> to vector<8x16xf32>
    %261 = arith.mulf %260, %206 : vector<8x16xf32>
    %262 = vector.broadcast %218 : vector<1x16xf32> to vector<8x16xf32>
    %263 = arith.mulf %262, %213 : vector<8x16xf32>
    %264 = arith.addf %261, %263 : vector<8x16xf32>
    %265 = vector.broadcast %259 : vector<8x1xf32> to vector<8x16xf32>
    %266 = arith.mulf %265, %264 : vector<8x16xf32>
    %267 = vector.broadcast %217 : vector<1x16xf32> to vector<8x16xf32>
    %268 = arith.mulf %267, %213 : vector<8x16xf32>
    %269 = vector.broadcast %218 : vector<1x16xf32> to vector<8x16xf32>
    %270 = arith.mulf %269, %206 : vector<8x16xf32>
    %271 = arith.subf %268, %270 : vector<8x16xf32>
    %272 = vector.broadcast %259 : vector<8x1xf32> to vector<8x16xf32>
    %273 = arith.mulf %272, %271 : vector<8x16xf32>
    %274 = arith.mulf %258, %258 : vector<8x1xf32>
    %275 = arith.mulf %274, %248 : vector<8x1xf32>
    %c4 = arith.constant 4 : index
    %c0_59 = arith.constant 0 : index
    %276 = vector.load %arg5[%c4, %c0_59] : memref<20x48xf32, #tpu.memory_space<vmem>>, vector<1x48xf32>
    %277 = vector.extract_strided_slice %276 {offsets = [0, 0], sizes = [1, 16], strides = [1, 1]} : vector<1x48xf32> to vector<1x16xf32>
    %278 = vector.extract_strided_slice %276 {offsets = [0, 16], sizes = [1, 16], strides = [1, 1]} : vector<1x48xf32> to vector<1x16xf32>
    %279 = vector.extract_strided_slice %276 {offsets = [0, 32], sizes = [1, 16], strides = [1, 1]} : vector<1x48xf32> to vector<1x16xf32>
    %280 = arith.mulf %266, %266 : vector<8x16xf32>
    %281 = arith.mulf %273, %273 : vector<8x16xf32>
    %282 = arith.addf %280, %281 : vector<8x16xf32>
    %283 = vector.broadcast %279 : vector<1x16xf32> to vector<8x16xf32>
    %284 = arith.mulf %283, %282 : vector<8x16xf32>
    %cst_60 = arith.constant dense<0.000000e+00> : vector<8xf32>
    %285 = vector.multi_reduction <add>, %284, %cst_60 [1] : vector<8x16xf32> to vector<8xf32>
    %286 = vector.shape_cast %285 : vector<8xf32> to vector<8x1xf32>
    %cst_61 = arith.constant 9.99999996E-13 : f32
    %287 = vector.broadcast %cst_61 : f32 to vector<8x1xf32>
    %288 = arith.addf %275, %287 : vector<8x1xf32>
    %289 = math.sqrt %288 : vector<8x1xf32>
    %290 = vector.broadcast %0 : f32 to vector<8x1xf32>
    %291 = arith.mulf %290, %289 : vector<8x1xf32>
    %cst_62 = arith.constant 9.99999997E-7 : f32
    %cst_63 = arith.constant 0.999989986 : f32
    %292 = vector.broadcast %cst_62 : f32 to vector<8x1xf32>
    %293 = arith.maximumf %292, %291 : vector<8x1xf32>
    %294 = vector.broadcast %cst_63 : f32 to vector<8x1xf32>
    %295 = arith.minimumf %294, %293 : vector<8x1xf32>
    %cst_64 = arith.constant 1.000000e+00 : f32
    %296 = vector.broadcast %cst_64 : f32 to vector<8x1xf32>
    %297 = arith.addf %296, %295 : vector<8x1xf32>
    %298 = math.log %297 : vector<8x1xf32>
    %cst_65 = arith.constant 1.000000e+00 : f32
    %299 = vector.broadcast %cst_65 : f32 to vector<8x1xf32>
    %300 = arith.subf %299, %295 : vector<8x1xf32>
    %301 = math.log %300 : vector<8x1xf32>
    %302 = arith.subf %298, %301 : vector<8x1xf32>
    %cst_66 = arith.constant 5.000000e-01 : f32
    %303 = vector.broadcast %cst_66 : f32 to vector<8x1xf32>
    %304 = arith.mulf %303, %302 : vector<8x1xf32>
    %305 = tpu.reciprocal %295 : vector<8x1xf32> -> vector<8x1xf32>
    %306 = arith.mulf %304, %305 : vector<8x1xf32>
    %307 = arith.mulf %306, %306 : vector<8x1xf32>
    %308 = arith.mulf %307, %286 : vector<8x1xf32>
    %cst_67 = arith.constant 9.99999996E-13 : f32
    %309 = vector.broadcast %cst_67 : f32 to vector<8x1xf32>
    %310 = arith.addf %308, %309 : vector<8x1xf32>
    %311 = math.sqrt %310 : vector<8x1xf32>
    %312 = vector.broadcast %0 : f32 to vector<8x1xf32>
    %313 = arith.mulf %312, %311 : vector<8x1xf32>
    %cst_68 = arith.constant 9.99999997E-7 : f32
    %314 = vector.broadcast %cst_68 : f32 to vector<8x1xf32>
    %315 = arith.maximumf %313, %314 : vector<8x1xf32>
    %316 = math.tanh %315 : vector<8x1xf32>
    %317 = tpu.reciprocal %315 : vector<8x1xf32> -> vector<8x1xf32>
    %318 = arith.mulf %316, %317 : vector<8x1xf32>
    %319 = arith.mulf %306, %318 : vector<8x1xf32>
    %320 = vector.broadcast %277 : vector<1x16xf32> to vector<8x16xf32>
    %321 = arith.mulf %320, %266 : vector<8x16xf32>
    %322 = vector.broadcast %278 : vector<1x16xf32> to vector<8x16xf32>
    %323 = arith.mulf %322, %273 : vector<8x16xf32>
    %324 = arith.addf %321, %323 : vector<8x16xf32>
    %325 = vector.broadcast %319 : vector<8x1xf32> to vector<8x16xf32>
    %326 = arith.mulf %325, %324 : vector<8x16xf32>
    %327 = vector.broadcast %277 : vector<1x16xf32> to vector<8x16xf32>
    %328 = arith.mulf %327, %273 : vector<8x16xf32>
    %329 = vector.broadcast %278 : vector<1x16xf32> to vector<8x16xf32>
    %330 = arith.mulf %329, %266 : vector<8x16xf32>
    %331 = arith.subf %328, %330 : vector<8x16xf32>
    %332 = vector.broadcast %319 : vector<8x1xf32> to vector<8x16xf32>
    %333 = arith.mulf %332, %331 : vector<8x16xf32>
    %334 = arith.mulf %318, %318 : vector<8x1xf32>
    %335 = arith.mulf %334, %308 : vector<8x1xf32>
    %c5 = arith.constant 5 : index
    %c0_69 = arith.constant 0 : index
    %336 = vector.load %arg5[%c5, %c0_69] : memref<20x48xf32, #tpu.memory_space<vmem>>, vector<1x48xf32>
    %337 = vector.extract_strided_slice %336 {offsets = [0, 0], sizes = [1, 16], strides = [1, 1]} : vector<1x48xf32> to vector<1x16xf32>
    %338 = vector.extract_strided_slice %336 {offsets = [0, 16], sizes = [1, 16], strides = [1, 1]} : vector<1x48xf32> to vector<1x16xf32>
    %339 = vector.extract_strided_slice %336 {offsets = [0, 32], sizes = [1, 16], strides = [1, 1]} : vector<1x48xf32> to vector<1x16xf32>
    %340 = arith.mulf %326, %326 : vector<8x16xf32>
    %341 = arith.mulf %333, %333 : vector<8x16xf32>
    %342 = arith.addf %340, %341 : vector<8x16xf32>
    %343 = vector.broadcast %339 : vector<1x16xf32> to vector<8x16xf32>
    %344 = arith.mulf %343, %342 : vector<8x16xf32>
    %cst_70 = arith.constant dense<0.000000e+00> : vector<8xf32>
    %345 = vector.multi_reduction <add>, %344, %cst_70 [1] : vector<8x16xf32> to vector<8xf32>
    %346 = vector.shape_cast %345 : vector<8xf32> to vector<8x1xf32>
    %cst_71 = arith.constant 9.99999996E-13 : f32
    %347 = vector.broadcast %cst_71 : f32 to vector<8x1xf32>
    %348 = arith.addf %335, %347 : vector<8x1xf32>
    %349 = math.sqrt %348 : vector<8x1xf32>
    %350 = vector.broadcast %0 : f32 to vector<8x1xf32>
    %351 = arith.mulf %350, %349 : vector<8x1xf32>
    %cst_72 = arith.constant 9.99999997E-7 : f32
    %cst_73 = arith.constant 0.999989986 : f32
    %352 = vector.broadcast %cst_72 : f32 to vector<8x1xf32>
    %353 = arith.maximumf %352, %351 : vector<8x1xf32>
    %354 = vector.broadcast %cst_73 : f32 to vector<8x1xf32>
    %355 = arith.minimumf %354, %353 : vector<8x1xf32>
    %cst_74 = arith.constant 1.000000e+00 : f32
    %356 = vector.broadcast %cst_74 : f32 to vector<8x1xf32>
    %357 = arith.addf %356, %355 : vector<8x1xf32>
    %358 = math.log %357 : vector<8x1xf32>
    %cst_75 = arith.constant 1.000000e+00 : f32
    %359 = vector.broadcast %cst_75 : f32 to vector<8x1xf32>
    %360 = arith.subf %359, %355 : vector<8x1xf32>
    %361 = math.log %360 : vector<8x1xf32>
    %362 = arith.subf %358, %361 : vector<8x1xf32>
    %cst_76 = arith.constant 5.000000e-01 : f32
    %363 = vector.broadcast %cst_76 : f32 to vector<8x1xf32>
    %364 = arith.mulf %363, %362 : vector<8x1xf32>
    %365 = tpu.reciprocal %355 : vector<8x1xf32> -> vector<8x1xf32>
    %366 = arith.mulf %364, %365 : vector<8x1xf32>
    %367 = arith.mulf %366, %366 : vector<8x1xf32>
    %368 = arith.mulf %367, %346 : vector<8x1xf32>
    %cst_77 = arith.constant 9.99999996E-13 : f32
    %369 = vector.broadcast %cst_77 : f32 to vector<8x1xf32>
    %370 = arith.addf %368, %369 : vector<8x1xf32>
    %371 = math.sqrt %370 : vector<8x1xf32>
    %372 = vector.broadcast %0 : f32 to vector<8x1xf32>
    %373 = arith.mulf %372, %371 : vector<8x1xf32>
    %cst_78 = arith.constant 9.99999997E-7 : f32
    %374 = vector.broadcast %cst_78 : f32 to vector<8x1xf32>
    %375 = arith.maximumf %373, %374 : vector<8x1xf32>
    %376 = math.tanh %375 : vector<8x1xf32>
    %377 = tpu.reciprocal %375 : vector<8x1xf32> -> vector<8x1xf32>
    %378 = arith.mulf %376, %377 : vector<8x1xf32>
    %379 = arith.mulf %366, %378 : vector<8x1xf32>
    %380 = vector.broadcast %337 : vector<1x16xf32> to vector<8x16xf32>
    %381 = arith.mulf %380, %326 : vector<8x16xf32>
    %382 = vector.broadcast %338 : vector<1x16xf32> to vector<8x16xf32>
    %383 = arith.mulf %382, %333 : vector<8x16xf32>
    %384 = arith.addf %381, %383 : vector<8x16xf32>
    %385 = vector.broadcast %379 : vector<8x1xf32> to vector<8x16xf32>
    %386 = arith.mulf %385, %384 : vector<8x16xf32>
    %387 = vector.broadcast %337 : vector<1x16xf32> to vector<8x16xf32>
    %388 = arith.mulf %387, %333 : vector<8x16xf32>
    %389 = vector.broadcast %338 : vector<1x16xf32> to vector<8x16xf32>
    %390 = arith.mulf %389, %326 : vector<8x16xf32>
    %391 = arith.subf %388, %390 : vector<8x16xf32>
    %392 = vector.broadcast %379 : vector<8x1xf32> to vector<8x16xf32>
    %393 = arith.mulf %392, %391 : vector<8x16xf32>
    %394 = arith.mulf %378, %378 : vector<8x1xf32>
    %395 = arith.mulf %394, %368 : vector<8x1xf32>
    %c6 = arith.constant 6 : index
    %c0_79 = arith.constant 0 : index
    %396 = vector.load %arg5[%c6, %c0_79] : memref<20x48xf32, #tpu.memory_space<vmem>>, vector<1x48xf32>
    %397 = vector.extract_strided_slice %396 {offsets = [0, 0], sizes = [1, 16], strides = [1, 1]} : vector<1x48xf32> to vector<1x16xf32>
    %398 = vector.extract_strided_slice %396 {offsets = [0, 16], sizes = [1, 16], strides = [1, 1]} : vector<1x48xf32> to vector<1x16xf32>
    %399 = vector.extract_strided_slice %396 {offsets = [0, 32], sizes = [1, 16], strides = [1, 1]} : vector<1x48xf32> to vector<1x16xf32>
    %400 = arith.mulf %386, %386 : vector<8x16xf32>
    %401 = arith.mulf %393, %393 : vector<8x16xf32>
    %402 = arith.addf %400, %401 : vector<8x16xf32>
    %403 = vector.broadcast %399 : vector<1x16xf32> to vector<8x16xf32>
    %404 = arith.mulf %403, %402 : vector<8x16xf32>
    %cst_80 = arith.constant dense<0.000000e+00> : vector<8xf32>
    %405 = vector.multi_reduction <add>, %404, %cst_80 [1] : vector<8x16xf32> to vector<8xf32>
    %406 = vector.shape_cast %405 : vector<8xf32> to vector<8x1xf32>
    %cst_81 = arith.constant 9.99999996E-13 : f32
    %407 = vector.broadcast %cst_81 : f32 to vector<8x1xf32>
    %408 = arith.addf %395, %407 : vector<8x1xf32>
    %409 = math.sqrt %408 : vector<8x1xf32>
    %410 = vector.broadcast %0 : f32 to vector<8x1xf32>
    %411 = arith.mulf %410, %409 : vector<8x1xf32>
    %cst_82 = arith.constant 9.99999997E-7 : f32
    %cst_83 = arith.constant 0.999989986 : f32
    %412 = vector.broadcast %cst_82 : f32 to vector<8x1xf32>
    %413 = arith.maximumf %412, %411 : vector<8x1xf32>
    %414 = vector.broadcast %cst_83 : f32 to vector<8x1xf32>
    %415 = arith.minimumf %414, %413 : vector<8x1xf32>
    %cst_84 = arith.constant 1.000000e+00 : f32
    %416 = vector.broadcast %cst_84 : f32 to vector<8x1xf32>
    %417 = arith.addf %416, %415 : vector<8x1xf32>
    %418 = math.log %417 : vector<8x1xf32>
    %cst_85 = arith.constant 1.000000e+00 : f32
    %419 = vector.broadcast %cst_85 : f32 to vector<8x1xf32>
    %420 = arith.subf %419, %415 : vector<8x1xf32>
    %421 = math.log %420 : vector<8x1xf32>
    %422 = arith.subf %418, %421 : vector<8x1xf32>
    %cst_86 = arith.constant 5.000000e-01 : f32
    %423 = vector.broadcast %cst_86 : f32 to vector<8x1xf32>
    %424 = arith.mulf %423, %422 : vector<8x1xf32>
    %425 = tpu.reciprocal %415 : vector<8x1xf32> -> vector<8x1xf32>
    %426 = arith.mulf %424, %425 : vector<8x1xf32>
    %427 = arith.mulf %426, %426 : vector<8x1xf32>
    %428 = arith.mulf %427, %406 : vector<8x1xf32>
    %cst_87 = arith.constant 9.99999996E-13 : f32
    %429 = vector.broadcast %cst_87 : f32 to vector<8x1xf32>
    %430 = arith.addf %428, %429 : vector<8x1xf32>
    %431 = math.sqrt %430 : vector<8x1xf32>
    %432 = vector.broadcast %0 : f32 to vector<8x1xf32>
    %433 = arith.mulf %432, %431 : vector<8x1xf32>
    %cst_88 = arith.constant 9.99999997E-7 : f32
    %434 = vector.broadcast %cst_88 : f32 to vector<8x1xf32>
    %435 = arith.maximumf %433, %434 : vector<8x1xf32>
    %436 = math.tanh %435 : vector<8x1xf32>
    %437 = tpu.reciprocal %435 : vector<8x1xf32> -> vector<8x1xf32>
    %438 = arith.mulf %436, %437 : vector<8x1xf32>
    %439 = arith.mulf %426, %438 : vector<8x1xf32>
    %440 = vector.broadcast %397 : vector<1x16xf32> to vector<8x16xf32>
    %441 = arith.mulf %440, %386 : vector<8x16xf32>
    %442 = vector.broadcast %398 : vector<1x16xf32> to vector<8x16xf32>
    %443 = arith.mulf %442, %393 : vector<8x16xf32>
    %444 = arith.addf %441, %443 : vector<8x16xf32>
    %445 = vector.broadcast %439 : vector<8x1xf32> to vector<8x16xf32>
    %446 = arith.mulf %445, %444 : vector<8x16xf32>
    %447 = vector.broadcast %397 : vector<1x16xf32> to vector<8x16xf32>
    %448 = arith.mulf %447, %393 : vector<8x16xf32>
    %449 = vector.broadcast %398 : vector<1x16xf32> to vector<8x16xf32>
    %450 = arith.mulf %449, %386 : vector<8x16xf32>
    %451 = arith.subf %448, %450 : vector<8x16xf32>
    %452 = vector.broadcast %439 : vector<8x1xf32> to vector<8x16xf32>
    %453 = arith.mulf %452, %451 : vector<8x16xf32>
    %454 = arith.mulf %438, %438 : vector<8x1xf32>
    %455 = arith.mulf %454, %428 : vector<8x1xf32>
    %c7 = arith.constant 7 : index
    %c0_89 = arith.constant 0 : index
    %456 = vector.load %arg5[%c7, %c0_89] : memref<20x48xf32, #tpu.memory_space<vmem>>, vector<1x48xf32>
    %457 = vector.extract_strided_slice %456 {offsets = [0, 0], sizes = [1, 16], strides = [1, 1]} : vector<1x48xf32> to vector<1x16xf32>
    %458 = vector.extract_strided_slice %456 {offsets = [0, 16], sizes = [1, 16], strides = [1, 1]} : vector<1x48xf32> to vector<1x16xf32>
    %459 = vector.extract_strided_slice %456 {offsets = [0, 32], sizes = [1, 16], strides = [1, 1]} : vector<1x48xf32> to vector<1x16xf32>
    %460 = arith.mulf %446, %446 : vector<8x16xf32>
    %461 = arith.mulf %453, %453 : vector<8x16xf32>
    %462 = arith.addf %460, %461 : vector<8x16xf32>
    %463 = vector.broadcast %459 : vector<1x16xf32> to vector<8x16xf32>
    %464 = arith.mulf %463, %462 : vector<8x16xf32>
    %cst_90 = arith.constant dense<0.000000e+00> : vector<8xf32>
    %465 = vector.multi_reduction <add>, %464, %cst_90 [1] : vector<8x16xf32> to vector<8xf32>
    %466 = vector.shape_cast %465 : vector<8xf32> to vector<8x1xf32>
    %cst_91 = arith.constant 9.99999996E-13 : f32
    %467 = vector.broadcast %cst_91 : f32 to vector<8x1xf32>
    %468 = arith.addf %455, %467 : vector<8x1xf32>
    %469 = math.sqrt %468 : vector<8x1xf32>
    %470 = vector.broadcast %0 : f32 to vector<8x1xf32>
    %471 = arith.mulf %470, %469 : vector<8x1xf32>
    %cst_92 = arith.constant 9.99999997E-7 : f32
    %cst_93 = arith.constant 0.999989986 : f32
    %472 = vector.broadcast %cst_92 : f32 to vector<8x1xf32>
    %473 = arith.maximumf %472, %471 : vector<8x1xf32>
    %474 = vector.broadcast %cst_93 : f32 to vector<8x1xf32>
    %475 = arith.minimumf %474, %473 : vector<8x1xf32>
    %cst_94 = arith.constant 1.000000e+00 : f32
    %476 = vector.broadcast %cst_94 : f32 to vector<8x1xf32>
    %477 = arith.addf %476, %475 : vector<8x1xf32>
    %478 = math.log %477 : vector<8x1xf32>
    %cst_95 = arith.constant 1.000000e+00 : f32
    %479 = vector.broadcast %cst_95 : f32 to vector<8x1xf32>
    %480 = arith.subf %479, %475 : vector<8x1xf32>
    %481 = math.log %480 : vector<8x1xf32>
    %482 = arith.subf %478, %481 : vector<8x1xf32>
    %cst_96 = arith.constant 5.000000e-01 : f32
    %483 = vector.broadcast %cst_96 : f32 to vector<8x1xf32>
    %484 = arith.mulf %483, %482 : vector<8x1xf32>
    %485 = tpu.reciprocal %475 : vector<8x1xf32> -> vector<8x1xf32>
    %486 = arith.mulf %484, %485 : vector<8x1xf32>
    %487 = arith.mulf %486, %486 : vector<8x1xf32>
    %488 = arith.mulf %487, %466 : vector<8x1xf32>
    %cst_97 = arith.constant 9.99999996E-13 : f32
    %489 = vector.broadcast %cst_97 : f32 to vector<8x1xf32>
    %490 = arith.addf %488, %489 : vector<8x1xf32>
    %491 = math.sqrt %490 : vector<8x1xf32>
    %492 = vector.broadcast %0 : f32 to vector<8x1xf32>
    %493 = arith.mulf %492, %491 : vector<8x1xf32>
    %cst_98 = arith.constant 9.99999997E-7 : f32
    %494 = vector.broadcast %cst_98 : f32 to vector<8x1xf32>
    %495 = arith.maximumf %493, %494 : vector<8x1xf32>
    %496 = math.tanh %495 : vector<8x1xf32>
    %497 = tpu.reciprocal %495 : vector<8x1xf32> -> vector<8x1xf32>
    %498 = arith.mulf %496, %497 : vector<8x1xf32>
    %499 = arith.mulf %486, %498 : vector<8x1xf32>
    %500 = vector.broadcast %457 : vector<1x16xf32> to vector<8x16xf32>
    %501 = arith.mulf %500, %446 : vector<8x16xf32>
    %502 = vector.broadcast %458 : vector<1x16xf32> to vector<8x16xf32>
    %503 = arith.mulf %502, %453 : vector<8x16xf32>
    %504 = arith.addf %501, %503 : vector<8x16xf32>
    %505 = vector.broadcast %499 : vector<8x1xf32> to vector<8x16xf32>
    %506 = arith.mulf %505, %504 : vector<8x16xf32>
    %507 = vector.broadcast %457 : vector<1x16xf32> to vector<8x16xf32>
    %508 = arith.mulf %507, %453 : vector<8x16xf32>
    %509 = vector.broadcast %458 : vector<1x16xf32> to vector<8x16xf32>
    %510 = arith.mulf %509, %446 : vector<8x16xf32>
    %511 = arith.subf %508, %510 : vector<8x16xf32>
    %512 = vector.broadcast %499 : vector<8x1xf32> to vector<8x16xf32>
    %513 = arith.mulf %512, %511 : vector<8x16xf32>
    %514 = arith.mulf %498, %498 : vector<8x1xf32>
    %515 = arith.mulf %514, %488 : vector<8x1xf32>
    %c8 = arith.constant 8 : index
    %c0_99 = arith.constant 0 : index
    %516 = vector.load %arg5[%c8, %c0_99] : memref<20x48xf32, #tpu.memory_space<vmem>>, vector<1x48xf32>
    %517 = vector.extract_strided_slice %516 {offsets = [0, 0], sizes = [1, 16], strides = [1, 1]} : vector<1x48xf32> to vector<1x16xf32>
    %518 = vector.extract_strided_slice %516 {offsets = [0, 16], sizes = [1, 16], strides = [1, 1]} : vector<1x48xf32> to vector<1x16xf32>
    %519 = vector.extract_strided_slice %516 {offsets = [0, 32], sizes = [1, 16], strides = [1, 1]} : vector<1x48xf32> to vector<1x16xf32>
    %520 = arith.mulf %506, %506 : vector<8x16xf32>
    %521 = arith.mulf %513, %513 : vector<8x16xf32>
    %522 = arith.addf %520, %521 : vector<8x16xf32>
    %523 = vector.broadcast %519 : vector<1x16xf32> to vector<8x16xf32>
    %524 = arith.mulf %523, %522 : vector<8x16xf32>
    %cst_100 = arith.constant dense<0.000000e+00> : vector<8xf32>
    %525 = vector.multi_reduction <add>, %524, %cst_100 [1] : vector<8x16xf32> to vector<8xf32>
    %526 = vector.shape_cast %525 : vector<8xf32> to vector<8x1xf32>
    %cst_101 = arith.constant 9.99999996E-13 : f32
    %527 = vector.broadcast %cst_101 : f32 to vector<8x1xf32>
    %528 = arith.addf %515, %527 : vector<8x1xf32>
    %529 = math.sqrt %528 : vector<8x1xf32>
    %530 = vector.broadcast %0 : f32 to vector<8x1xf32>
    %531 = arith.mulf %530, %529 : vector<8x1xf32>
    %cst_102 = arith.constant 9.99999997E-7 : f32
    %cst_103 = arith.constant 0.999989986 : f32
    %532 = vector.broadcast %cst_102 : f32 to vector<8x1xf32>
    %533 = arith.maximumf %532, %531 : vector<8x1xf32>
    %534 = vector.broadcast %cst_103 : f32 to vector<8x1xf32>
    %535 = arith.minimumf %534, %533 : vector<8x1xf32>
    %cst_104 = arith.constant 1.000000e+00 : f32
    %536 = vector.broadcast %cst_104 : f32 to vector<8x1xf32>
    %537 = arith.addf %536, %535 : vector<8x1xf32>
    %538 = math.log %537 : vector<8x1xf32>
    %cst_105 = arith.constant 1.000000e+00 : f32
    %539 = vector.broadcast %cst_105 : f32 to vector<8x1xf32>
    %540 = arith.subf %539, %535 : vector<8x1xf32>
    %541 = math.log %540 : vector<8x1xf32>
    %542 = arith.subf %538, %541 : vector<8x1xf32>
    %cst_106 = arith.constant 5.000000e-01 : f32
    %543 = vector.broadcast %cst_106 : f32 to vector<8x1xf32>
    %544 = arith.mulf %543, %542 : vector<8x1xf32>
    %545 = tpu.reciprocal %535 : vector<8x1xf32> -> vector<8x1xf32>
    %546 = arith.mulf %544, %545 : vector<8x1xf32>
    %547 = arith.mulf %546, %546 : vector<8x1xf32>
    %548 = arith.mulf %547, %526 : vector<8x1xf32>
    %cst_107 = arith.constant 9.99999996E-13 : f32
    %549 = vector.broadcast %cst_107 : f32 to vector<8x1xf32>
    %550 = arith.addf %548, %549 : vector<8x1xf32>
    %551 = math.sqrt %550 : vector<8x1xf32>
    %552 = vector.broadcast %0 : f32 to vector<8x1xf32>
    %553 = arith.mulf %552, %551 : vector<8x1xf32>
    %cst_108 = arith.constant 9.99999997E-7 : f32
    %554 = vector.broadcast %cst_108 : f32 to vector<8x1xf32>
    %555 = arith.maximumf %553, %554 : vector<8x1xf32>
    %556 = math.tanh %555 : vector<8x1xf32>
    %557 = tpu.reciprocal %555 : vector<8x1xf32> -> vector<8x1xf32>
    %558 = arith.mulf %556, %557 : vector<8x1xf32>
    %559 = arith.mulf %546, %558 : vector<8x1xf32>
    %560 = vector.broadcast %517 : vector<1x16xf32> to vector<8x16xf32>
    %561 = arith.mulf %560, %506 : vector<8x16xf32>
    %562 = vector.broadcast %518 : vector<1x16xf32> to vector<8x16xf32>
    %563 = arith.mulf %562, %513 : vector<8x16xf32>
    %564 = arith.addf %561, %563 : vector<8x16xf32>
    %565 = vector.broadcast %559 : vector<8x1xf32> to vector<8x16xf32>
    %566 = arith.mulf %565, %564 : vector<8x16xf32>
    %567 = vector.broadcast %517 : vector<1x16xf32> to vector<8x16xf32>
    %568 = arith.mulf %567, %513 : vector<8x16xf32>
    %569 = vector.broadcast %518 : vector<1x16xf32> to vector<8x16xf32>
    %570 = arith.mulf %569, %506 : vector<8x16xf32>
    %571 = arith.subf %568, %570 : vector<8x16xf32>
    %572 = vector.broadcast %559 : vector<8x1xf32> to vector<8x16xf32>
    %573 = arith.mulf %572, %571 : vector<8x16xf32>
    %574 = arith.mulf %558, %558 : vector<8x1xf32>
    %575 = arith.mulf %574, %548 : vector<8x1xf32>
    %c9 = arith.constant 9 : index
    %c0_109 = arith.constant 0 : index
    %576 = vector.load %arg5[%c9, %c0_109] : memref<20x48xf32, #tpu.memory_space<vmem>>, vector<1x48xf32>
    %577 = vector.extract_strided_slice %576 {offsets = [0, 0], sizes = [1, 16], strides = [1, 1]} : vector<1x48xf32> to vector<1x16xf32>
    %578 = vector.extract_strided_slice %576 {offsets = [0, 16], sizes = [1, 16], strides = [1, 1]} : vector<1x48xf32> to vector<1x16xf32>
    %579 = vector.extract_strided_slice %576 {offsets = [0, 32], sizes = [1, 16], strides = [1, 1]} : vector<1x48xf32> to vector<1x16xf32>
    %580 = arith.mulf %566, %566 : vector<8x16xf32>
    %581 = arith.mulf %573, %573 : vector<8x16xf32>
    %582 = arith.addf %580, %581 : vector<8x16xf32>
    %583 = vector.broadcast %579 : vector<1x16xf32> to vector<8x16xf32>
    %584 = arith.mulf %583, %582 : vector<8x16xf32>
    %cst_110 = arith.constant dense<0.000000e+00> : vector<8xf32>
    %585 = vector.multi_reduction <add>, %584, %cst_110 [1] : vector<8x16xf32> to vector<8xf32>
    %586 = vector.shape_cast %585 : vector<8xf32> to vector<8x1xf32>
    %cst_111 = arith.constant 9.99999996E-13 : f32
    %587 = vector.broadcast %cst_111 : f32 to vector<8x1xf32>
    %588 = arith.addf %575, %587 : vector<8x1xf32>
    %589 = math.sqrt %588 : vector<8x1xf32>
    %590 = vector.broadcast %0 : f32 to vector<8x1xf32>
    %591 = arith.mulf %590, %589 : vector<8x1xf32>
    %cst_112 = arith.constant 9.99999997E-7 : f32
    %cst_113 = arith.constant 0.999989986 : f32
    %592 = vector.broadcast %cst_112 : f32 to vector<8x1xf32>
    %593 = arith.maximumf %592, %591 : vector<8x1xf32>
    %594 = vector.broadcast %cst_113 : f32 to vector<8x1xf32>
    %595 = arith.minimumf %594, %593 : vector<8x1xf32>
    %cst_114 = arith.constant 1.000000e+00 : f32
    %596 = vector.broadcast %cst_114 : f32 to vector<8x1xf32>
    %597 = arith.addf %596, %595 : vector<8x1xf32>
    %598 = math.log %597 : vector<8x1xf32>
    %cst_115 = arith.constant 1.000000e+00 : f32
    %599 = vector.broadcast %cst_115 : f32 to vector<8x1xf32>
    %600 = arith.subf %599, %595 : vector<8x1xf32>
    %601 = math.log %600 : vector<8x1xf32>
    %602 = arith.subf %598, %601 : vector<8x1xf32>
    %cst_116 = arith.constant 5.000000e-01 : f32
    %603 = vector.broadcast %cst_116 : f32 to vector<8x1xf32>
    %604 = arith.mulf %603, %602 : vector<8x1xf32>
    %605 = tpu.reciprocal %595 : vector<8x1xf32> -> vector<8x1xf32>
    %606 = arith.mulf %604, %605 : vector<8x1xf32>
    %607 = arith.mulf %606, %606 : vector<8x1xf32>
    %608 = arith.mulf %607, %586 : vector<8x1xf32>
    %cst_117 = arith.constant 9.99999996E-13 : f32
    %609 = vector.broadcast %cst_117 : f32 to vector<8x1xf32>
    %610 = arith.addf %608, %609 : vector<8x1xf32>
    %611 = math.sqrt %610 : vector<8x1xf32>
    %612 = vector.broadcast %0 : f32 to vector<8x1xf32>
    %613 = arith.mulf %612, %611 : vector<8x1xf32>
    %cst_118 = arith.constant 9.99999997E-7 : f32
    %614 = vector.broadcast %cst_118 : f32 to vector<8x1xf32>
    %615 = arith.maximumf %613, %614 : vector<8x1xf32>
    %616 = math.tanh %615 : vector<8x1xf32>
    %617 = tpu.reciprocal %615 : vector<8x1xf32> -> vector<8x1xf32>
    %618 = arith.mulf %616, %617 : vector<8x1xf32>
    %619 = arith.mulf %606, %618 : vector<8x1xf32>
    %620 = vector.broadcast %577 : vector<1x16xf32> to vector<8x16xf32>
    %621 = arith.mulf %620, %566 : vector<8x16xf32>
    %622 = vector.broadcast %578 : vector<1x16xf32> to vector<8x16xf32>
    %623 = arith.mulf %622, %573 : vector<8x16xf32>
    %624 = arith.addf %621, %623 : vector<8x16xf32>
    %625 = vector.broadcast %619 : vector<8x1xf32> to vector<8x16xf32>
    %626 = arith.mulf %625, %624 : vector<8x16xf32>
    %627 = vector.broadcast %577 : vector<1x16xf32> to vector<8x16xf32>
    %628 = arith.mulf %627, %573 : vector<8x16xf32>
    %629 = vector.broadcast %578 : vector<1x16xf32> to vector<8x16xf32>
    %630 = arith.mulf %629, %566 : vector<8x16xf32>
    %631 = arith.subf %628, %630 : vector<8x16xf32>
    %632 = vector.broadcast %619 : vector<8x1xf32> to vector<8x16xf32>
    %633 = arith.mulf %632, %631 : vector<8x16xf32>
    %634 = arith.addf %626, %32 : vector<8x16xf32>
    %635 = arith.addf %633, %33 : vector<8x16xf32>
    %c10 = arith.constant 10 : index
    %c0_119 = arith.constant 0 : index
    %636 = vector.load %arg5[%c10, %c0_119] : memref<20x48xf32, #tpu.memory_space<vmem>>, vector<1x48xf32>
    %637 = vector.extract_strided_slice %636 {offsets = [0, 0], sizes = [1, 16], strides = [1, 1]} : vector<1x48xf32> to vector<1x16xf32>
    %638 = vector.extract_strided_slice %636 {offsets = [0, 16], sizes = [1, 16], strides = [1, 1]} : vector<1x48xf32> to vector<1x16xf32>
    %639 = vector.extract_strided_slice %636 {offsets = [0, 32], sizes = [1, 16], strides = [1, 1]} : vector<1x48xf32> to vector<1x16xf32>
    %640 = arith.mulf %634, %634 : vector<8x16xf32>
    %641 = arith.mulf %635, %635 : vector<8x16xf32>
    %642 = arith.addf %640, %641 : vector<8x16xf32>
    %cst_120 = arith.constant dense<0.000000e+00> : vector<8xf32>
    %643 = vector.multi_reduction <add>, %642, %cst_120 [1] : vector<8x16xf32> to vector<8xf32>
    %644 = vector.shape_cast %643 : vector<8xf32> to vector<8x1xf32>
    %645 = vector.broadcast %639 : vector<1x16xf32> to vector<8x16xf32>
    %646 = arith.mulf %645, %642 : vector<8x16xf32>
    %cst_121 = arith.constant dense<0.000000e+00> : vector<8xf32>
    %647 = vector.multi_reduction <add>, %646, %cst_121 [1] : vector<8x16xf32> to vector<8xf32>
    %648 = vector.shape_cast %647 : vector<8xf32> to vector<8x1xf32>
    %cst_122 = arith.constant 9.99999996E-13 : f32
    %649 = vector.broadcast %cst_122 : f32 to vector<8x1xf32>
    %650 = arith.addf %644, %649 : vector<8x1xf32>
    %651 = math.sqrt %650 : vector<8x1xf32>
    %652 = vector.broadcast %0 : f32 to vector<8x1xf32>
    %653 = arith.mulf %652, %651 : vector<8x1xf32>
    %cst_123 = arith.constant 9.99999997E-7 : f32
    %cst_124 = arith.constant 0.999989986 : f32
    %654 = vector.broadcast %cst_123 : f32 to vector<8x1xf32>
    %655 = arith.maximumf %654, %653 : vector<8x1xf32>
    %656 = vector.broadcast %cst_124 : f32 to vector<8x1xf32>
    %657 = arith.minimumf %656, %655 : vector<8x1xf32>
    %cst_125 = arith.constant 1.000000e+00 : f32
    %658 = vector.broadcast %cst_125 : f32 to vector<8x1xf32>
    %659 = arith.addf %658, %657 : vector<8x1xf32>
    %660 = math.log %659 : vector<8x1xf32>
    %cst_126 = arith.constant 1.000000e+00 : f32
    %661 = vector.broadcast %cst_126 : f32 to vector<8x1xf32>
    %662 = arith.subf %661, %657 : vector<8x1xf32>
    %663 = math.log %662 : vector<8x1xf32>
    %664 = arith.subf %660, %663 : vector<8x1xf32>
    %cst_127 = arith.constant 5.000000e-01 : f32
    %665 = vector.broadcast %cst_127 : f32 to vector<8x1xf32>
    %666 = arith.mulf %665, %664 : vector<8x1xf32>
    %667 = tpu.reciprocal %657 : vector<8x1xf32> -> vector<8x1xf32>
    %668 = arith.mulf %666, %667 : vector<8x1xf32>
    %669 = arith.mulf %668, %668 : vector<8x1xf32>
    %670 = arith.mulf %669, %648 : vector<8x1xf32>
    %cst_128 = arith.constant 9.99999996E-13 : f32
    %671 = vector.broadcast %cst_128 : f32 to vector<8x1xf32>
    %672 = arith.addf %670, %671 : vector<8x1xf32>
    %673 = math.sqrt %672 : vector<8x1xf32>
    %674 = vector.broadcast %0 : f32 to vector<8x1xf32>
    %675 = arith.mulf %674, %673 : vector<8x1xf32>
    %cst_129 = arith.constant 9.99999997E-7 : f32
    %676 = vector.broadcast %cst_129 : f32 to vector<8x1xf32>
    %677 = arith.maximumf %675, %676 : vector<8x1xf32>
    %678 = math.tanh %677 : vector<8x1xf32>
    %679 = tpu.reciprocal %677 : vector<8x1xf32> -> vector<8x1xf32>
    %680 = arith.mulf %678, %679 : vector<8x1xf32>
    %681 = arith.mulf %668, %680 : vector<8x1xf32>
    %682 = vector.broadcast %637 : vector<1x16xf32> to vector<8x16xf32>
    %683 = arith.mulf %682, %634 : vector<8x16xf32>
    %684 = vector.broadcast %638 : vector<1x16xf32> to vector<8x16xf32>
    %685 = arith.mulf %684, %635 : vector<8x16xf32>
    %686 = arith.addf %683, %685 : vector<8x16xf32>
    %687 = vector.broadcast %681 : vector<8x1xf32> to vector<8x16xf32>
    %688 = arith.mulf %687, %686 : vector<8x16xf32>
    %689 = vector.broadcast %637 : vector<1x16xf32> to vector<8x16xf32>
    %690 = arith.mulf %689, %635 : vector<8x16xf32>
    %691 = vector.broadcast %638 : vector<1x16xf32> to vector<8x16xf32>
    %692 = arith.mulf %691, %634 : vector<8x16xf32>
    %693 = arith.subf %690, %692 : vector<8x16xf32>
    %694 = vector.broadcast %681 : vector<8x1xf32> to vector<8x16xf32>
    %695 = arith.mulf %694, %693 : vector<8x16xf32>
    %696 = arith.mulf %680, %680 : vector<8x1xf32>
    %697 = arith.mulf %696, %670 : vector<8x1xf32>
    %c11 = arith.constant 11 : index
    %c0_130 = arith.constant 0 : index
    %698 = vector.load %arg5[%c11, %c0_130] : memref<20x48xf32, #tpu.memory_space<vmem>>, vector<1x48xf32>
    %699 = vector.extract_strided_slice %698 {offsets = [0, 0], sizes = [1, 16], strides = [1, 1]} : vector<1x48xf32> to vector<1x16xf32>
    %700 = vector.extract_strided_slice %698 {offsets = [0, 16], sizes = [1, 16], strides = [1, 1]} : vector<1x48xf32> to vector<1x16xf32>
    %701 = vector.extract_strided_slice %698 {offsets = [0, 32], sizes = [1, 16], strides = [1, 1]} : vector<1x48xf32> to vector<1x16xf32>
    %702 = arith.mulf %688, %688 : vector<8x16xf32>
    %703 = arith.mulf %695, %695 : vector<8x16xf32>
    %704 = arith.addf %702, %703 : vector<8x16xf32>
    %705 = vector.broadcast %701 : vector<1x16xf32> to vector<8x16xf32>
    %706 = arith.mulf %705, %704 : vector<8x16xf32>
    %cst_131 = arith.constant dense<0.000000e+00> : vector<8xf32>
    %707 = vector.multi_reduction <add>, %706, %cst_131 [1] : vector<8x16xf32> to vector<8xf32>
    %708 = vector.shape_cast %707 : vector<8xf32> to vector<8x1xf32>
    %cst_132 = arith.constant 9.99999996E-13 : f32
    %709 = vector.broadcast %cst_132 : f32 to vector<8x1xf32>
    %710 = arith.addf %697, %709 : vector<8x1xf32>
    %711 = math.sqrt %710 : vector<8x1xf32>
    %712 = vector.broadcast %0 : f32 to vector<8x1xf32>
    %713 = arith.mulf %712, %711 : vector<8x1xf32>
    %cst_133 = arith.constant 9.99999997E-7 : f32
    %cst_134 = arith.constant 0.999989986 : f32
    %714 = vector.broadcast %cst_133 : f32 to vector<8x1xf32>
    %715 = arith.maximumf %714, %713 : vector<8x1xf32>
    %716 = vector.broadcast %cst_134 : f32 to vector<8x1xf32>
    %717 = arith.minimumf %716, %715 : vector<8x1xf32>
    %cst_135 = arith.constant 1.000000e+00 : f32
    %718 = vector.broadcast %cst_135 : f32 to vector<8x1xf32>
    %719 = arith.addf %718, %717 : vector<8x1xf32>
    %720 = math.log %719 : vector<8x1xf32>
    %cst_136 = arith.constant 1.000000e+00 : f32
    %721 = vector.broadcast %cst_136 : f32 to vector<8x1xf32>
    %722 = arith.subf %721, %717 : vector<8x1xf32>
    %723 = math.log %722 : vector<8x1xf32>
    %724 = arith.subf %720, %723 : vector<8x1xf32>
    %cst_137 = arith.constant 5.000000e-01 : f32
    %725 = vector.broadcast %cst_137 : f32 to vector<8x1xf32>
    %726 = arith.mulf %725, %724 : vector<8x1xf32>
    %727 = tpu.reciprocal %717 : vector<8x1xf32> -> vector<8x1xf32>
    %728 = arith.mulf %726, %727 : vector<8x1xf32>
    %729 = arith.mulf %728, %728 : vector<8x1xf32>
    %730 = arith.mulf %729, %708 : vector<8x1xf32>
    %cst_138 = arith.constant 9.99999996E-13 : f32
    %731 = vector.broadcast %cst_138 : f32 to vector<8x1xf32>
    %732 = arith.addf %730, %731 : vector<8x1xf32>
    %733 = math.sqrt %732 : vector<8x1xf32>
    %734 = vector.broadcast %0 : f32 to vector<8x1xf32>
    %735 = arith.mulf %734, %733 : vector<8x1xf32>
    %cst_139 = arith.constant 9.99999997E-7 : f32
    %736 = vector.broadcast %cst_139 : f32 to vector<8x1xf32>
    %737 = arith.maximumf %735, %736 : vector<8x1xf32>
    %738 = math.tanh %737 : vector<8x1xf32>
    %739 = tpu.reciprocal %737 : vector<8x1xf32> -> vector<8x1xf32>
    %740 = arith.mulf %738, %739 : vector<8x1xf32>
    %741 = arith.mulf %728, %740 : vector<8x1xf32>
    %742 = vector.broadcast %699 : vector<1x16xf32> to vector<8x16xf32>
    %743 = arith.mulf %742, %688 : vector<8x16xf32>
    %744 = vector.broadcast %700 : vector<1x16xf32> to vector<8x16xf32>
    %745 = arith.mulf %744, %695 : vector<8x16xf32>
    %746 = arith.addf %743, %745 : vector<8x16xf32>
    %747 = vector.broadcast %741 : vector<8x1xf32> to vector<8x16xf32>
    %748 = arith.mulf %747, %746 : vector<8x16xf32>
    %749 = vector.broadcast %699 : vector<1x16xf32> to vector<8x16xf32>
    %750 = arith.mulf %749, %695 : vector<8x16xf32>
    %751 = vector.broadcast %700 : vector<1x16xf32> to vector<8x16xf32>
    %752 = arith.mulf %751, %688 : vector<8x16xf32>
    %753 = arith.subf %750, %752 : vector<8x16xf32>
    %754 = vector.broadcast %741 : vector<8x1xf32> to vector<8x16xf32>
    %755 = arith.mulf %754, %753 : vector<8x16xf32>
    %756 = arith.mulf %740, %740 : vector<8x1xf32>
    %757 = arith.mulf %756, %730 : vector<8x1xf32>
    %c12 = arith.constant 12 : index
    %c0_140 = arith.constant 0 : index
    %758 = vector.load %arg5[%c12, %c0_140] : memref<20x48xf32, #tpu.memory_space<vmem>>, vector<1x48xf32>
    %759 = vector.extract_strided_slice %758 {offsets = [0, 0], sizes = [1, 16], strides = [1, 1]} : vector<1x48xf32> to vector<1x16xf32>
    %760 = vector.extract_strided_slice %758 {offsets = [0, 16], sizes = [1, 16], strides = [1, 1]} : vector<1x48xf32> to vector<1x16xf32>
    %761 = vector.extract_strided_slice %758 {offsets = [0, 32], sizes = [1, 16], strides = [1, 1]} : vector<1x48xf32> to vector<1x16xf32>
    %762 = arith.mulf %748, %748 : vector<8x16xf32>
    %763 = arith.mulf %755, %755 : vector<8x16xf32>
    %764 = arith.addf %762, %763 : vector<8x16xf32>
    %765 = vector.broadcast %761 : vector<1x16xf32> to vector<8x16xf32>
    %766 = arith.mulf %765, %764 : vector<8x16xf32>
    %cst_141 = arith.constant dense<0.000000e+00> : vector<8xf32>
    %767 = vector.multi_reduction <add>, %766, %cst_141 [1] : vector<8x16xf32> to vector<8xf32>
    %768 = vector.shape_cast %767 : vector<8xf32> to vector<8x1xf32>
    %cst_142 = arith.constant 9.99999996E-13 : f32
    %769 = vector.broadcast %cst_142 : f32 to vector<8x1xf32>
    %770 = arith.addf %757, %769 : vector<8x1xf32>
    %771 = math.sqrt %770 : vector<8x1xf32>
    %772 = vector.broadcast %0 : f32 to vector<8x1xf32>
    %773 = arith.mulf %772, %771 : vector<8x1xf32>
    %cst_143 = arith.constant 9.99999997E-7 : f32
    %cst_144 = arith.constant 0.999989986 : f32
    %774 = vector.broadcast %cst_143 : f32 to vector<8x1xf32>
    %775 = arith.maximumf %774, %773 : vector<8x1xf32>
    %776 = vector.broadcast %cst_144 : f32 to vector<8x1xf32>
    %777 = arith.minimumf %776, %775 : vector<8x1xf32>
    %cst_145 = arith.constant 1.000000e+00 : f32
    %778 = vector.broadcast %cst_145 : f32 to vector<8x1xf32>
    %779 = arith.addf %778, %777 : vector<8x1xf32>
    %780 = math.log %779 : vector<8x1xf32>
    %cst_146 = arith.constant 1.000000e+00 : f32
    %781 = vector.broadcast %cst_146 : f32 to vector<8x1xf32>
    %782 = arith.subf %781, %777 : vector<8x1xf32>
    %783 = math.log %782 : vector<8x1xf32>
    %784 = arith.subf %780, %783 : vector<8x1xf32>
    %cst_147 = arith.constant 5.000000e-01 : f32
    %785 = vector.broadcast %cst_147 : f32 to vector<8x1xf32>
    %786 = arith.mulf %785, %784 : vector<8x1xf32>
    %787 = tpu.reciprocal %777 : vector<8x1xf32> -> vector<8x1xf32>
    %788 = arith.mulf %786, %787 : vector<8x1xf32>
    %789 = arith.mulf %788, %788 : vector<8x1xf32>
    %790 = arith.mulf %789, %768 : vector<8x1xf32>
    %cst_148 = arith.constant 9.99999996E-13 : f32
    %791 = vector.broadcast %cst_148 : f32 to vector<8x1xf32>
    %792 = arith.addf %790, %791 : vector<8x1xf32>
    %793 = math.sqrt %792 : vector<8x1xf32>
    %794 = vector.broadcast %0 : f32 to vector<8x1xf32>
    %795 = arith.mulf %794, %793 : vector<8x1xf32>
    %cst_149 = arith.constant 9.99999997E-7 : f32
    %796 = vector.broadcast %cst_149 : f32 to vector<8x1xf32>
    %797 = arith.maximumf %795, %796 : vector<8x1xf32>
    %798 = math.tanh %797 : vector<8x1xf32>
    %799 = tpu.reciprocal %797 : vector<8x1xf32> -> vector<8x1xf32>
    %800 = arith.mulf %798, %799 : vector<8x1xf32>
    %801 = arith.mulf %788, %800 : vector<8x1xf32>
    %802 = vector.broadcast %759 : vector<1x16xf32> to vector<8x16xf32>
    %803 = arith.mulf %802, %748 : vector<8x16xf32>
    %804 = vector.broadcast %760 : vector<1x16xf32> to vector<8x16xf32>
    %805 = arith.mulf %804, %755 : vector<8x16xf32>
    %806 = arith.addf %803, %805 : vector<8x16xf32>
    %807 = vector.broadcast %801 : vector<8x1xf32> to vector<8x16xf32>
    %808 = arith.mulf %807, %806 : vector<8x16xf32>
    %809 = vector.broadcast %759 : vector<1x16xf32> to vector<8x16xf32>
    %810 = arith.mulf %809, %755 : vector<8x16xf32>
    %811 = vector.broadcast %760 : vector<1x16xf32> to vector<8x16xf32>
    %812 = arith.mulf %811, %748 : vector<8x16xf32>
    %813 = arith.subf %810, %812 : vector<8x16xf32>
    %814 = vector.broadcast %801 : vector<8x1xf32> to vector<8x16xf32>
    %815 = arith.mulf %814, %813 : vector<8x16xf32>
    %816 = arith.mulf %800, %800 : vector<8x1xf32>
    %817 = arith.mulf %816, %790 : vector<8x1xf32>
    %c13 = arith.constant 13 : index
    %c0_150 = arith.constant 0 : index
    %818 = vector.load %arg5[%c13, %c0_150] : memref<20x48xf32, #tpu.memory_space<vmem>>, vector<1x48xf32>
    %819 = vector.extract_strided_slice %818 {offsets = [0, 0], sizes = [1, 16], strides = [1, 1]} : vector<1x48xf32> to vector<1x16xf32>
    %820 = vector.extract_strided_slice %818 {offsets = [0, 16], sizes = [1, 16], strides = [1, 1]} : vector<1x48xf32> to vector<1x16xf32>
    %821 = vector.extract_strided_slice %818 {offsets = [0, 32], sizes = [1, 16], strides = [1, 1]} : vector<1x48xf32> to vector<1x16xf32>
    %822 = arith.mulf %808, %808 : vector<8x16xf32>
    %823 = arith.mulf %815, %815 : vector<8x16xf32>
    %824 = arith.addf %822, %823 : vector<8x16xf32>
    %825 = vector.broadcast %821 : vector<1x16xf32> to vector<8x16xf32>
    %826 = arith.mulf %825, %824 : vector<8x16xf32>
    %cst_151 = arith.constant dense<0.000000e+00> : vector<8xf32>
    %827 = vector.multi_reduction <add>, %826, %cst_151 [1] : vector<8x16xf32> to vector<8xf32>
    %828 = vector.shape_cast %827 : vector<8xf32> to vector<8x1xf32>
    %cst_152 = arith.constant 9.99999996E-13 : f32
    %829 = vector.broadcast %cst_152 : f32 to vector<8x1xf32>
    %830 = arith.addf %817, %829 : vector<8x1xf32>
    %831 = math.sqrt %830 : vector<8x1xf32>
    %832 = vector.broadcast %0 : f32 to vector<8x1xf32>
    %833 = arith.mulf %832, %831 : vector<8x1xf32>
    %cst_153 = arith.constant 9.99999997E-7 : f32
    %cst_154 = arith.constant 0.999989986 : f32
    %834 = vector.broadcast %cst_153 : f32 to vector<8x1xf32>
    %835 = arith.maximumf %834, %833 : vector<8x1xf32>
    %836 = vector.broadcast %cst_154 : f32 to vector<8x1xf32>
    %837 = arith.minimumf %836, %835 : vector<8x1xf32>
    %cst_155 = arith.constant 1.000000e+00 : f32
    %838 = vector.broadcast %cst_155 : f32 to vector<8x1xf32>
    %839 = arith.addf %838, %837 : vector<8x1xf32>
    %840 = math.log %839 : vector<8x1xf32>
    %cst_156 = arith.constant 1.000000e+00 : f32
    %841 = vector.broadcast %cst_156 : f32 to vector<8x1xf32>
    %842 = arith.subf %841, %837 : vector<8x1xf32>
    %843 = math.log %842 : vector<8x1xf32>
    %844 = arith.subf %840, %843 : vector<8x1xf32>
    %cst_157 = arith.constant 5.000000e-01 : f32
    %845 = vector.broadcast %cst_157 : f32 to vector<8x1xf32>
    %846 = arith.mulf %845, %844 : vector<8x1xf32>
    %847 = tpu.reciprocal %837 : vector<8x1xf32> -> vector<8x1xf32>
    %848 = arith.mulf %846, %847 : vector<8x1xf32>
    %849 = arith.mulf %848, %848 : vector<8x1xf32>
    %850 = arith.mulf %849, %828 : vector<8x1xf32>
    %cst_158 = arith.constant 9.99999996E-13 : f32
    %851 = vector.broadcast %cst_158 : f32 to vector<8x1xf32>
    %852 = arith.addf %850, %851 : vector<8x1xf32>
    %853 = math.sqrt %852 : vector<8x1xf32>
    %854 = vector.broadcast %0 : f32 to vector<8x1xf32>
    %855 = arith.mulf %854, %853 : vector<8x1xf32>
    %cst_159 = arith.constant 9.99999997E-7 : f32
    %856 = vector.broadcast %cst_159 : f32 to vector<8x1xf32>
    %857 = arith.maximumf %855, %856 : vector<8x1xf32>
    %858 = math.tanh %857 : vector<8x1xf32>
    %859 = tpu.reciprocal %857 : vector<8x1xf32> -> vector<8x1xf32>
    %860 = arith.mulf %858, %859 : vector<8x1xf32>
    %861 = arith.mulf %848, %860 : vector<8x1xf32>
    %862 = vector.broadcast %819 : vector<1x16xf32> to vector<8x16xf32>
    %863 = arith.mulf %862, %808 : vector<8x16xf32>
    %864 = vector.broadcast %820 : vector<1x16xf32> to vector<8x16xf32>
    %865 = arith.mulf %864, %815 : vector<8x16xf32>
    %866 = arith.addf %863, %865 : vector<8x16xf32>
    %867 = vector.broadcast %861 : vector<8x1xf32> to vector<8x16xf32>
    %868 = arith.mulf %867, %866 : vector<8x16xf32>
    %869 = vector.broadcast %819 : vector<1x16xf32> to vector<8x16xf32>
    %870 = arith.mulf %869, %815 : vector<8x16xf32>
    %871 = vector.broadcast %820 : vector<1x16xf32> to vector<8x16xf32>
    %872 = arith.mulf %871, %808 : vector<8x16xf32>
    %873 = arith.subf %870, %872 : vector<8x16xf32>
    %874 = vector.broadcast %861 : vector<8x1xf32> to vector<8x16xf32>
    %875 = arith.mulf %874, %873 : vector<8x16xf32>
    %876 = arith.mulf %860, %860 : vector<8x1xf32>
    %877 = arith.mulf %876, %850 : vector<8x1xf32>
    %c14 = arith.constant 14 : index
    %c0_160 = arith.constant 0 : index
    %878 = vector.load %arg5[%c14, %c0_160] : memref<20x48xf32, #tpu.memory_space<vmem>>, vector<1x48xf32>
    %879 = vector.extract_strided_slice %878 {offsets = [0, 0], sizes = [1, 16], strides = [1, 1]} : vector<1x48xf32> to vector<1x16xf32>
    %880 = vector.extract_strided_slice %878 {offsets = [0, 16], sizes = [1, 16], strides = [1, 1]} : vector<1x48xf32> to vector<1x16xf32>
    %881 = vector.extract_strided_slice %878 {offsets = [0, 32], sizes = [1, 16], strides = [1, 1]} : vector<1x48xf32> to vector<1x16xf32>
    %882 = arith.mulf %868, %868 : vector<8x16xf32>
    %883 = arith.mulf %875, %875 : vector<8x16xf32>
    %884 = arith.addf %882, %883 : vector<8x16xf32>
    %885 = vector.broadcast %881 : vector<1x16xf32> to vector<8x16xf32>
    %886 = arith.mulf %885, %884 : vector<8x16xf32>
    %cst_161 = arith.constant dense<0.000000e+00> : vector<8xf32>
    %887 = vector.multi_reduction <add>, %886, %cst_161 [1] : vector<8x16xf32> to vector<8xf32>
    %888 = vector.shape_cast %887 : vector<8xf32> to vector<8x1xf32>
    %cst_162 = arith.constant 9.99999996E-13 : f32
    %889 = vector.broadcast %cst_162 : f32 to vector<8x1xf32>
    %890 = arith.addf %877, %889 : vector<8x1xf32>
    %891 = math.sqrt %890 : vector<8x1xf32>
    %892 = vector.broadcast %0 : f32 to vector<8x1xf32>
    %893 = arith.mulf %892, %891 : vector<8x1xf32>
    %cst_163 = arith.constant 9.99999997E-7 : f32
    %cst_164 = arith.constant 0.999989986 : f32
    %894 = vector.broadcast %cst_163 : f32 to vector<8x1xf32>
    %895 = arith.maximumf %894, %893 : vector<8x1xf32>
    %896 = vector.broadcast %cst_164 : f32 to vector<8x1xf32>
    %897 = arith.minimumf %896, %895 : vector<8x1xf32>
    %cst_165 = arith.constant 1.000000e+00 : f32
    %898 = vector.broadcast %cst_165 : f32 to vector<8x1xf32>
    %899 = arith.addf %898, %897 : vector<8x1xf32>
    %900 = math.log %899 : vector<8x1xf32>
    %cst_166 = arith.constant 1.000000e+00 : f32
    %901 = vector.broadcast %cst_166 : f32 to vector<8x1xf32>
    %902 = arith.subf %901, %897 : vector<8x1xf32>
    %903 = math.log %902 : vector<8x1xf32>
    %904 = arith.subf %900, %903 : vector<8x1xf32>
    %cst_167 = arith.constant 5.000000e-01 : f32
    %905 = vector.broadcast %cst_167 : f32 to vector<8x1xf32>
    %906 = arith.mulf %905, %904 : vector<8x1xf32>
    %907 = tpu.reciprocal %897 : vector<8x1xf32> -> vector<8x1xf32>
    %908 = arith.mulf %906, %907 : vector<8x1xf32>
    %909 = arith.mulf %908, %908 : vector<8x1xf32>
    %910 = arith.mulf %909, %888 : vector<8x1xf32>
    %cst_168 = arith.constant 9.99999996E-13 : f32
    %911 = vector.broadcast %cst_168 : f32 to vector<8x1xf32>
    %912 = arith.addf %910, %911 : vector<8x1xf32>
    %913 = math.sqrt %912 : vector<8x1xf32>
    %914 = vector.broadcast %0 : f32 to vector<8x1xf32>
    %915 = arith.mulf %914, %913 : vector<8x1xf32>
    %cst_169 = arith.constant 9.99999997E-7 : f32
    %916 = vector.broadcast %cst_169 : f32 to vector<8x1xf32>
    %917 = arith.maximumf %915, %916 : vector<8x1xf32>
    %918 = math.tanh %917 : vector<8x1xf32>
    %919 = tpu.reciprocal %917 : vector<8x1xf32> -> vector<8x1xf32>
    %920 = arith.mulf %918, %919 : vector<8x1xf32>
    %921 = arith.mulf %908, %920 : vector<8x1xf32>
    %922 = vector.broadcast %879 : vector<1x16xf32> to vector<8x16xf32>
    %923 = arith.mulf %922, %868 : vector<8x16xf32>
    %924 = vector.broadcast %880 : vector<1x16xf32> to vector<8x16xf32>
    %925 = arith.mulf %924, %875 : vector<8x16xf32>
    %926 = arith.addf %923, %925 : vector<8x16xf32>
    %927 = vector.broadcast %921 : vector<8x1xf32> to vector<8x16xf32>
    %928 = arith.mulf %927, %926 : vector<8x16xf32>
    %929 = vector.broadcast %879 : vector<1x16xf32> to vector<8x16xf32>
    %930 = arith.mulf %929, %875 : vector<8x16xf32>
    %931 = vector.broadcast %880 : vector<1x16xf32> to vector<8x16xf32>
    %932 = arith.mulf %931, %868 : vector<8x16xf32>
    %933 = arith.subf %930, %932 : vector<8x16xf32>
    %934 = vector.broadcast %921 : vector<8x1xf32> to vector<8x16xf32>
    %935 = arith.mulf %934, %933 : vector<8x16xf32>
    %936 = arith.mulf %920, %920 : vector<8x1xf32>
    %937 = arith.mulf %936, %910 : vector<8x1xf32>
    %c15 = arith.constant 15 : index
    %c0_170 = arith.constant 0 : index
    %938 = vector.load %arg5[%c15, %c0_170] : memref<20x48xf32, #tpu.memory_space<vmem>>, vector<1x48xf32>
    %939 = vector.extract_strided_slice %938 {offsets = [0, 0], sizes = [1, 16], strides = [1, 1]} : vector<1x48xf32> to vector<1x16xf32>
    %940 = vector.extract_strided_slice %938 {offsets = [0, 16], sizes = [1, 16], strides = [1, 1]} : vector<1x48xf32> to vector<1x16xf32>
    %941 = vector.extract_strided_slice %938 {offsets = [0, 32], sizes = [1, 16], strides = [1, 1]} : vector<1x48xf32> to vector<1x16xf32>
    %942 = arith.mulf %928, %928 : vector<8x16xf32>
    %943 = arith.mulf %935, %935 : vector<8x16xf32>
    %944 = arith.addf %942, %943 : vector<8x16xf32>
    %945 = vector.broadcast %941 : vector<1x16xf32> to vector<8x16xf32>
    %946 = arith.mulf %945, %944 : vector<8x16xf32>
    %cst_171 = arith.constant dense<0.000000e+00> : vector<8xf32>
    %947 = vector.multi_reduction <add>, %946, %cst_171 [1] : vector<8x16xf32> to vector<8xf32>
    %948 = vector.shape_cast %947 : vector<8xf32> to vector<8x1xf32>
    %cst_172 = arith.constant 9.99999996E-13 : f32
    %949 = vector.broadcast %cst_172 : f32 to vector<8x1xf32>
    %950 = arith.addf %937, %949 : vector<8x1xf32>
    %951 = math.sqrt %950 : vector<8x1xf32>
    %952 = vector.broadcast %0 : f32 to vector<8x1xf32>
    %953 = arith.mulf %952, %951 : vector<8x1xf32>
    %cst_173 = arith.constant 9.99999997E-7 : f32
    %cst_174 = arith.constant 0.999989986 : f32
    %954 = vector.broadcast %cst_173 : f32 to vector<8x1xf32>
    %955 = arith.maximumf %954, %953 : vector<8x1xf32>
    %956 = vector.broadcast %cst_174 : f32 to vector<8x1xf32>
    %957 = arith.minimumf %956, %955 : vector<8x1xf32>
    %cst_175 = arith.constant 1.000000e+00 : f32
    %958 = vector.broadcast %cst_175 : f32 to vector<8x1xf32>
    %959 = arith.addf %958, %957 : vector<8x1xf32>
    %960 = math.log %959 : vector<8x1xf32>
    %cst_176 = arith.constant 1.000000e+00 : f32
    %961 = vector.broadcast %cst_176 : f32 to vector<8x1xf32>
    %962 = arith.subf %961, %957 : vector<8x1xf32>
    %963 = math.log %962 : vector<8x1xf32>
    %964 = arith.subf %960, %963 : vector<8x1xf32>
    %cst_177 = arith.constant 5.000000e-01 : f32
    %965 = vector.broadcast %cst_177 : f32 to vector<8x1xf32>
    %966 = arith.mulf %965, %964 : vector<8x1xf32>
    %967 = tpu.reciprocal %957 : vector<8x1xf32> -> vector<8x1xf32>
    %968 = arith.mulf %966, %967 : vector<8x1xf32>
    %969 = arith.mulf %968, %968 : vector<8x1xf32>
    %970 = arith.mulf %969, %948 : vector<8x1xf32>
    %cst_178 = arith.constant 9.99999996E-13 : f32
    %971 = vector.broadcast %cst_178 : f32 to vector<8x1xf32>
    %972 = arith.addf %970, %971 : vector<8x1xf32>
    %973 = math.sqrt %972 : vector<8x1xf32>
    %974 = vector.broadcast %0 : f32 to vector<8x1xf32>
    %975 = arith.mulf %974, %973 : vector<8x1xf32>
    %cst_179 = arith.constant 9.99999997E-7 : f32
    %976 = vector.broadcast %cst_179 : f32 to vector<8x1xf32>
    %977 = arith.maximumf %975, %976 : vector<8x1xf32>
    %978 = math.tanh %977 : vector<8x1xf32>
    %979 = tpu.reciprocal %977 : vector<8x1xf32> -> vector<8x1xf32>
    %980 = arith.mulf %978, %979 : vector<8x1xf32>
    %981 = arith.mulf %968, %980 : vector<8x1xf32>
    %982 = vector.broadcast %939 : vector<1x16xf32> to vector<8x16xf32>
    %983 = arith.mulf %982, %928 : vector<8x16xf32>
    %984 = vector.broadcast %940 : vector<1x16xf32> to vector<8x16xf32>
    %985 = arith.mulf %984, %935 : vector<8x16xf32>
    %986 = arith.addf %983, %985 : vector<8x16xf32>
    %987 = vector.broadcast %981 : vector<8x1xf32> to vector<8x16xf32>
    %988 = arith.mulf %987, %986 : vector<8x16xf32>
    %989 = vector.broadcast %939 : vector<1x16xf32> to vector<8x16xf32>
    %990 = arith.mulf %989, %935 : vector<8x16xf32>
    %991 = vector.broadcast %940 : vector<1x16xf32> to vector<8x16xf32>
    %992 = arith.mulf %991, %928 : vector<8x16xf32>
    %993 = arith.subf %990, %992 : vector<8x16xf32>
    %994 = vector.broadcast %981 : vector<8x1xf32> to vector<8x16xf32>
    %995 = arith.mulf %994, %993 : vector<8x16xf32>
    %996 = arith.mulf %980, %980 : vector<8x1xf32>
    %997 = arith.mulf %996, %970 : vector<8x1xf32>
    %c16 = arith.constant 16 : index
    %c0_180 = arith.constant 0 : index
    %998 = vector.load %arg5[%c16, %c0_180] : memref<20x48xf32, #tpu.memory_space<vmem>>, vector<1x48xf32>
    %999 = vector.extract_strided_slice %998 {offsets = [0, 0], sizes = [1, 16], strides = [1, 1]} : vector<1x48xf32> to vector<1x16xf32>
    %1000 = vector.extract_strided_slice %998 {offsets = [0, 16], sizes = [1, 16], strides = [1, 1]} : vector<1x48xf32> to vector<1x16xf32>
    %1001 = vector.extract_strided_slice %998 {offsets = [0, 32], sizes = [1, 16], strides = [1, 1]} : vector<1x48xf32> to vector<1x16xf32>
    %1002 = arith.mulf %988, %988 : vector<8x16xf32>
    %1003 = arith.mulf %995, %995 : vector<8x16xf32>
    %1004 = arith.addf %1002, %1003 : vector<8x16xf32>
    %1005 = vector.broadcast %1001 : vector<1x16xf32> to vector<8x16xf32>
    %1006 = arith.mulf %1005, %1004 : vector<8x16xf32>
    %cst_181 = arith.constant dense<0.000000e+00> : vector<8xf32>
    %1007 = vector.multi_reduction <add>, %1006, %cst_181 [1] : vector<8x16xf32> to vector<8xf32>
    %1008 = vector.shape_cast %1007 : vector<8xf32> to vector<8x1xf32>
    %cst_182 = arith.constant 9.99999996E-13 : f32
    %1009 = vector.broadcast %cst_182 : f32 to vector<8x1xf32>
    %1010 = arith.addf %997, %1009 : vector<8x1xf32>
    %1011 = math.sqrt %1010 : vector<8x1xf32>
    %1012 = vector.broadcast %0 : f32 to vector<8x1xf32>
    %1013 = arith.mulf %1012, %1011 : vector<8x1xf32>
    %cst_183 = arith.constant 9.99999997E-7 : f32
    %cst_184 = arith.constant 0.999989986 : f32
    %1014 = vector.broadcast %cst_183 : f32 to vector<8x1xf32>
    %1015 = arith.maximumf %1014, %1013 : vector<8x1xf32>
    %1016 = vector.broadcast %cst_184 : f32 to vector<8x1xf32>
    %1017 = arith.minimumf %1016, %1015 : vector<8x1xf32>
    %cst_185 = arith.constant 1.000000e+00 : f32
    %1018 = vector.broadcast %cst_185 : f32 to vector<8x1xf32>
    %1019 = arith.addf %1018, %1017 : vector<8x1xf32>
    %1020 = math.log %1019 : vector<8x1xf32>
    %cst_186 = arith.constant 1.000000e+00 : f32
    %1021 = vector.broadcast %cst_186 : f32 to vector<8x1xf32>
    %1022 = arith.subf %1021, %1017 : vector<8x1xf32>
    %1023 = math.log %1022 : vector<8x1xf32>
    %1024 = arith.subf %1020, %1023 : vector<8x1xf32>
    %cst_187 = arith.constant 5.000000e-01 : f32
    %1025 = vector.broadcast %cst_187 : f32 to vector<8x1xf32>
    %1026 = arith.mulf %1025, %1024 : vector<8x1xf32>
    %1027 = tpu.reciprocal %1017 : vector<8x1xf32> -> vector<8x1xf32>
    %1028 = arith.mulf %1026, %1027 : vector<8x1xf32>
    %1029 = arith.mulf %1028, %1028 : vector<8x1xf32>
    %1030 = arith.mulf %1029, %1008 : vector<8x1xf32>
    %cst_188 = arith.constant 9.99999996E-13 : f32
    %1031 = vector.broadcast %cst_188 : f32 to vector<8x1xf32>
    %1032 = arith.addf %1030, %1031 : vector<8x1xf32>
    %1033 = math.sqrt %1032 : vector<8x1xf32>
    %1034 = vector.broadcast %0 : f32 to vector<8x1xf32>
    %1035 = arith.mulf %1034, %1033 : vector<8x1xf32>
    %cst_189 = arith.constant 9.99999997E-7 : f32
    %1036 = vector.broadcast %cst_189 : f32 to vector<8x1xf32>
    %1037 = arith.maximumf %1035, %1036 : vector<8x1xf32>
    %1038 = math.tanh %1037 : vector<8x1xf32>
    %1039 = tpu.reciprocal %1037 : vector<8x1xf32> -> vector<8x1xf32>
    %1040 = arith.mulf %1038, %1039 : vector<8x1xf32>
    %1041 = arith.mulf %1028, %1040 : vector<8x1xf32>
    %1042 = vector.broadcast %999 : vector<1x16xf32> to vector<8x16xf32>
    %1043 = arith.mulf %1042, %988 : vector<8x16xf32>
    %1044 = vector.broadcast %1000 : vector<1x16xf32> to vector<8x16xf32>
    %1045 = arith.mulf %1044, %995 : vector<8x16xf32>
    %1046 = arith.addf %1043, %1045 : vector<8x16xf32>
    %1047 = vector.broadcast %1041 : vector<8x1xf32> to vector<8x16xf32>
    %1048 = arith.mulf %1047, %1046 : vector<8x16xf32>
    %1049 = vector.broadcast %999 : vector<1x16xf32> to vector<8x16xf32>
    %1050 = arith.mulf %1049, %995 : vector<8x16xf32>
    %1051 = vector.broadcast %1000 : vector<1x16xf32> to vector<8x16xf32>
    %1052 = arith.mulf %1051, %988 : vector<8x16xf32>
    %1053 = arith.subf %1050, %1052 : vector<8x16xf32>
    %1054 = vector.broadcast %1041 : vector<8x1xf32> to vector<8x16xf32>
    %1055 = arith.mulf %1054, %1053 : vector<8x16xf32>
    %1056 = arith.mulf %1040, %1040 : vector<8x1xf32>
    %1057 = arith.mulf %1056, %1030 : vector<8x1xf32>
    %c17 = arith.constant 17 : index
    %c0_190 = arith.constant 0 : index
    %1058 = vector.load %arg5[%c17, %c0_190] : memref<20x48xf32, #tpu.memory_space<vmem>>, vector<1x48xf32>
    %1059 = vector.extract_strided_slice %1058 {offsets = [0, 0], sizes = [1, 16], strides = [1, 1]} : vector<1x48xf32> to vector<1x16xf32>
    %1060 = vector.extract_strided_slice %1058 {offsets = [0, 16], sizes = [1, 16], strides = [1, 1]} : vector<1x48xf32> to vector<1x16xf32>
    %1061 = vector.extract_strided_slice %1058 {offsets = [0, 32], sizes = [1, 16], strides = [1, 1]} : vector<1x48xf32> to vector<1x16xf32>
    %1062 = arith.mulf %1048, %1048 : vector<8x16xf32>
    %1063 = arith.mulf %1055, %1055 : vector<8x16xf32>
    %1064 = arith.addf %1062, %1063 : vector<8x16xf32>
    %1065 = vector.broadcast %1061 : vector<1x16xf32> to vector<8x16xf32>
    %1066 = arith.mulf %1065, %1064 : vector<8x16xf32>
    %cst_191 = arith.constant dense<0.000000e+00> : vector<8xf32>
    %1067 = vector.multi_reduction <add>, %1066, %cst_191 [1] : vector<8x16xf32> to vector<8xf32>
    %1068 = vector.shape_cast %1067 : vector<8xf32> to vector<8x1xf32>
    %cst_192 = arith.constant 9.99999996E-13 : f32
    %1069 = vector.broadcast %cst_192 : f32 to vector<8x1xf32>
    %1070 = arith.addf %1057, %1069 : vector<8x1xf32>
    %1071 = math.sqrt %1070 : vector<8x1xf32>
    %1072 = vector.broadcast %0 : f32 to vector<8x1xf32>
    %1073 = arith.mulf %1072, %1071 : vector<8x1xf32>
    %cst_193 = arith.constant 9.99999997E-7 : f32
    %cst_194 = arith.constant 0.999989986 : f32
    %1074 = vector.broadcast %cst_193 : f32 to vector<8x1xf32>
    %1075 = arith.maximumf %1074, %1073 : vector<8x1xf32>
    %1076 = vector.broadcast %cst_194 : f32 to vector<8x1xf32>
    %1077 = arith.minimumf %1076, %1075 : vector<8x1xf32>
    %cst_195 = arith.constant 1.000000e+00 : f32
    %1078 = vector.broadcast %cst_195 : f32 to vector<8x1xf32>
    %1079 = arith.addf %1078, %1077 : vector<8x1xf32>
    %1080 = math.log %1079 : vector<8x1xf32>
    %cst_196 = arith.constant 1.000000e+00 : f32
    %1081 = vector.broadcast %cst_196 : f32 to vector<8x1xf32>
    %1082 = arith.subf %1081, %1077 : vector<8x1xf32>
    %1083 = math.log %1082 : vector<8x1xf32>
    %1084 = arith.subf %1080, %1083 : vector<8x1xf32>
    %cst_197 = arith.constant 5.000000e-01 : f32
    %1085 = vector.broadcast %cst_197 : f32 to vector<8x1xf32>
    %1086 = arith.mulf %1085, %1084 : vector<8x1xf32>
    %1087 = tpu.reciprocal %1077 : vector<8x1xf32> -> vector<8x1xf32>
    %1088 = arith.mulf %1086, %1087 : vector<8x1xf32>
    %1089 = arith.mulf %1088, %1088 : vector<8x1xf32>
    %1090 = arith.mulf %1089, %1068 : vector<8x1xf32>
    %cst_198 = arith.constant 9.99999996E-13 : f32
    %1091 = vector.broadcast %cst_198 : f32 to vector<8x1xf32>
    %1092 = arith.addf %1090, %1091 : vector<8x1xf32>
    %1093 = math.sqrt %1092 : vector<8x1xf32>
    %1094 = vector.broadcast %0 : f32 to vector<8x1xf32>
    %1095 = arith.mulf %1094, %1093 : vector<8x1xf32>
    %cst_199 = arith.constant 9.99999997E-7 : f32
    %1096 = vector.broadcast %cst_199 : f32 to vector<8x1xf32>
    %1097 = arith.maximumf %1095, %1096 : vector<8x1xf32>
    %1098 = math.tanh %1097 : vector<8x1xf32>
    %1099 = tpu.reciprocal %1097 : vector<8x1xf32> -> vector<8x1xf32>
    %1100 = arith.mulf %1098, %1099 : vector<8x1xf32>
    %1101 = arith.mulf %1088, %1100 : vector<8x1xf32>
    %1102 = vector.broadcast %1059 : vector<1x16xf32> to vector<8x16xf32>
    %1103 = arith.mulf %1102, %1048 : vector<8x16xf32>
    %1104 = vector.broadcast %1060 : vector<1x16xf32> to vector<8x16xf32>
    %1105 = arith.mulf %1104, %1055 : vector<8x16xf32>
    %1106 = arith.addf %1103, %1105 : vector<8x16xf32>
    %1107 = vector.broadcast %1101 : vector<8x1xf32> to vector<8x16xf32>
    %1108 = arith.mulf %1107, %1106 : vector<8x16xf32>
    %1109 = vector.broadcast %1059 : vector<1x16xf32> to vector<8x16xf32>
    %1110 = arith.mulf %1109, %1055 : vector<8x16xf32>
    %1111 = vector.broadcast %1060 : vector<1x16xf32> to vector<8x16xf32>
    %1112 = arith.mulf %1111, %1048 : vector<8x16xf32>
    %1113 = arith.subf %1110, %1112 : vector<8x16xf32>
    %1114 = vector.broadcast %1101 : vector<8x1xf32> to vector<8x16xf32>
    %1115 = arith.mulf %1114, %1113 : vector<8x16xf32>
    %1116 = arith.mulf %1100, %1100 : vector<8x1xf32>
    %1117 = arith.mulf %1116, %1090 : vector<8x1xf32>
    %c18 = arith.constant 18 : index
    %c0_200 = arith.constant 0 : index
    %1118 = vector.load %arg5[%c18, %c0_200] : memref<20x48xf32, #tpu.memory_space<vmem>>, vector<1x48xf32>
    %1119 = vector.extract_strided_slice %1118 {offsets = [0, 0], sizes = [1, 16], strides = [1, 1]} : vector<1x48xf32> to vector<1x16xf32>
    %1120 = vector.extract_strided_slice %1118 {offsets = [0, 16], sizes = [1, 16], strides = [1, 1]} : vector<1x48xf32> to vector<1x16xf32>
    %1121 = vector.extract_strided_slice %1118 {offsets = [0, 32], sizes = [1, 16], strides = [1, 1]} : vector<1x48xf32> to vector<1x16xf32>
    %1122 = arith.mulf %1108, %1108 : vector<8x16xf32>
    %1123 = arith.mulf %1115, %1115 : vector<8x16xf32>
    %1124 = arith.addf %1122, %1123 : vector<8x16xf32>
    %1125 = vector.broadcast %1121 : vector<1x16xf32> to vector<8x16xf32>
    %1126 = arith.mulf %1125, %1124 : vector<8x16xf32>
    %cst_201 = arith.constant dense<0.000000e+00> : vector<8xf32>
    %1127 = vector.multi_reduction <add>, %1126, %cst_201 [1] : vector<8x16xf32> to vector<8xf32>
    %1128 = vector.shape_cast %1127 : vector<8xf32> to vector<8x1xf32>
    %cst_202 = arith.constant 9.99999996E-13 : f32
    %1129 = vector.broadcast %cst_202 : f32 to vector<8x1xf32>
    %1130 = arith.addf %1117, %1129 : vector<8x1xf32>
    %1131 = math.sqrt %1130 : vector<8x1xf32>
    %1132 = vector.broadcast %0 : f32 to vector<8x1xf32>
    %1133 = arith.mulf %1132, %1131 : vector<8x1xf32>
    %cst_203 = arith.constant 9.99999997E-7 : f32
    %cst_204 = arith.constant 0.999989986 : f32
    %1134 = vector.broadcast %cst_203 : f32 to vector<8x1xf32>
    %1135 = arith.maximumf %1134, %1133 : vector<8x1xf32>
    %1136 = vector.broadcast %cst_204 : f32 to vector<8x1xf32>
    %1137 = arith.minimumf %1136, %1135 : vector<8x1xf32>
    %cst_205 = arith.constant 1.000000e+00 : f32
    %1138 = vector.broadcast %cst_205 : f32 to vector<8x1xf32>
    %1139 = arith.addf %1138, %1137 : vector<8x1xf32>
    %1140 = math.log %1139 : vector<8x1xf32>
    %cst_206 = arith.constant 1.000000e+00 : f32
    %1141 = vector.broadcast %cst_206 : f32 to vector<8x1xf32>
    %1142 = arith.subf %1141, %1137 : vector<8x1xf32>
    %1143 = math.log %1142 : vector<8x1xf32>
    %1144 = arith.subf %1140, %1143 : vector<8x1xf32>
    %cst_207 = arith.constant 5.000000e-01 : f32
    %1145 = vector.broadcast %cst_207 : f32 to vector<8x1xf32>
    %1146 = arith.mulf %1145, %1144 : vector<8x1xf32>
    %1147 = tpu.reciprocal %1137 : vector<8x1xf32> -> vector<8x1xf32>
    %1148 = arith.mulf %1146, %1147 : vector<8x1xf32>
    %1149 = arith.mulf %1148, %1148 : vector<8x1xf32>
    %1150 = arith.mulf %1149, %1128 : vector<8x1xf32>
    %cst_208 = arith.constant 9.99999996E-13 : f32
    %1151 = vector.broadcast %cst_208 : f32 to vector<8x1xf32>
    %1152 = arith.addf %1150, %1151 : vector<8x1xf32>
    %1153 = math.sqrt %1152 : vector<8x1xf32>
    %1154 = vector.broadcast %0 : f32 to vector<8x1xf32>
    %1155 = arith.mulf %1154, %1153 : vector<8x1xf32>
    %cst_209 = arith.constant 9.99999997E-7 : f32
    %1156 = vector.broadcast %cst_209 : f32 to vector<8x1xf32>
    %1157 = arith.maximumf %1155, %1156 : vector<8x1xf32>
    %1158 = math.tanh %1157 : vector<8x1xf32>
    %1159 = tpu.reciprocal %1157 : vector<8x1xf32> -> vector<8x1xf32>
    %1160 = arith.mulf %1158, %1159 : vector<8x1xf32>
    %1161 = arith.mulf %1148, %1160 : vector<8x1xf32>
    %1162 = vector.broadcast %1119 : vector<1x16xf32> to vector<8x16xf32>
    %1163 = arith.mulf %1162, %1108 : vector<8x16xf32>
    %1164 = vector.broadcast %1120 : vector<1x16xf32> to vector<8x16xf32>
    %1165 = arith.mulf %1164, %1115 : vector<8x16xf32>
    %1166 = arith.addf %1163, %1165 : vector<8x16xf32>
    %1167 = vector.broadcast %1161 : vector<8x1xf32> to vector<8x16xf32>
    %1168 = arith.mulf %1167, %1166 : vector<8x16xf32>
    %1169 = vector.broadcast %1119 : vector<1x16xf32> to vector<8x16xf32>
    %1170 = arith.mulf %1169, %1115 : vector<8x16xf32>
    %1171 = vector.broadcast %1120 : vector<1x16xf32> to vector<8x16xf32>
    %1172 = arith.mulf %1171, %1108 : vector<8x16xf32>
    %1173 = arith.subf %1170, %1172 : vector<8x16xf32>
    %1174 = vector.broadcast %1161 : vector<8x1xf32> to vector<8x16xf32>
    %1175 = arith.mulf %1174, %1173 : vector<8x16xf32>
    %1176 = arith.mulf %1160, %1160 : vector<8x1xf32>
    %1177 = arith.mulf %1176, %1150 : vector<8x1xf32>
    %c19 = arith.constant 19 : index
    %c0_210 = arith.constant 0 : index
    %1178 = vector.load %arg5[%c19, %c0_210] : memref<20x48xf32, #tpu.memory_space<vmem>>, vector<1x48xf32>
    %1179 = vector.extract_strided_slice %1178 {offsets = [0, 0], sizes = [1, 16], strides = [1, 1]} : vector<1x48xf32> to vector<1x16xf32>
    %1180 = vector.extract_strided_slice %1178 {offsets = [0, 16], sizes = [1, 16], strides = [1, 1]} : vector<1x48xf32> to vector<1x16xf32>
    %1181 = vector.extract_strided_slice %1178 {offsets = [0, 32], sizes = [1, 16], strides = [1, 1]} : vector<1x48xf32> to vector<1x16xf32>
    %1182 = arith.mulf %1168, %1168 : vector<8x16xf32>
    %1183 = arith.mulf %1175, %1175 : vector<8x16xf32>
    %1184 = arith.addf %1182, %1183 : vector<8x16xf32>
    %1185 = vector.broadcast %1181 : vector<1x16xf32> to vector<8x16xf32>
    %1186 = arith.mulf %1185, %1184 : vector<8x16xf32>
    %cst_211 = arith.constant dense<0.000000e+00> : vector<8xf32>
    %1187 = vector.multi_reduction <add>, %1186, %cst_211 [1] : vector<8x16xf32> to vector<8xf32>
    %1188 = vector.shape_cast %1187 : vector<8xf32> to vector<8x1xf32>
    %cst_212 = arith.constant 9.99999996E-13 : f32
    %1189 = vector.broadcast %cst_212 : f32 to vector<8x1xf32>
    %1190 = arith.addf %1177, %1189 : vector<8x1xf32>
    %1191 = math.sqrt %1190 : vector<8x1xf32>
    %1192 = vector.broadcast %0 : f32 to vector<8x1xf32>
    %1193 = arith.mulf %1192, %1191 : vector<8x1xf32>
    %cst_213 = arith.constant 9.99999997E-7 : f32
    %cst_214 = arith.constant 0.999989986 : f32
    %1194 = vector.broadcast %cst_213 : f32 to vector<8x1xf32>
    %1195 = arith.maximumf %1194, %1193 : vector<8x1xf32>
    %1196 = vector.broadcast %cst_214 : f32 to vector<8x1xf32>
    %1197 = arith.minimumf %1196, %1195 : vector<8x1xf32>
    %cst_215 = arith.constant 1.000000e+00 : f32
    %1198 = vector.broadcast %cst_215 : f32 to vector<8x1xf32>
    %1199 = arith.addf %1198, %1197 : vector<8x1xf32>
    %1200 = math.log %1199 : vector<8x1xf32>
    %cst_216 = arith.constant 1.000000e+00 : f32
    %1201 = vector.broadcast %cst_216 : f32 to vector<8x1xf32>
    %1202 = arith.subf %1201, %1197 : vector<8x1xf32>
    %1203 = math.log %1202 : vector<8x1xf32>
    %1204 = arith.subf %1200, %1203 : vector<8x1xf32>
    %cst_217 = arith.constant 5.000000e-01 : f32
    %1205 = vector.broadcast %cst_217 : f32 to vector<8x1xf32>
    %1206 = arith.mulf %1205, %1204 : vector<8x1xf32>
    %1207 = tpu.reciprocal %1197 : vector<8x1xf32> -> vector<8x1xf32>
    %1208 = arith.mulf %1206, %1207 : vector<8x1xf32>
    %1209 = arith.mulf %1208, %1208 : vector<8x1xf32>
    %1210 = arith.mulf %1209, %1188 : vector<8x1xf32>
    %cst_218 = arith.constant 9.99999996E-13 : f32
    %1211 = vector.broadcast %cst_218 : f32 to vector<8x1xf32>
    %1212 = arith.addf %1210, %1211 : vector<8x1xf32>
    %1213 = math.sqrt %1212 : vector<8x1xf32>
    %1214 = vector.broadcast %0 : f32 to vector<8x1xf32>
    %1215 = arith.mulf %1214, %1213 : vector<8x1xf32>
    %cst_219 = arith.constant 9.99999997E-7 : f32
    %1216 = vector.broadcast %cst_219 : f32 to vector<8x1xf32>
    %1217 = arith.maximumf %1215, %1216 : vector<8x1xf32>
    %1218 = math.tanh %1217 : vector<8x1xf32>
    %1219 = tpu.reciprocal %1217 : vector<8x1xf32> -> vector<8x1xf32>
    %1220 = arith.mulf %1218, %1219 : vector<8x1xf32>
    %1221 = arith.mulf %1208, %1220 : vector<8x1xf32>
    %1222 = vector.broadcast %1179 : vector<1x16xf32> to vector<8x16xf32>
    %1223 = arith.mulf %1222, %1168 : vector<8x16xf32>
    %1224 = vector.broadcast %1180 : vector<1x16xf32> to vector<8x16xf32>
    %1225 = arith.mulf %1224, %1175 : vector<8x16xf32>
    %1226 = arith.addf %1223, %1225 : vector<8x16xf32>
    %1227 = vector.broadcast %1221 : vector<8x1xf32> to vector<8x16xf32>
    %1228 = arith.mulf %1227, %1226 : vector<8x16xf32>
    %1229 = vector.broadcast %1179 : vector<1x16xf32> to vector<8x16xf32>
    %1230 = arith.mulf %1229, %1175 : vector<8x16xf32>
    %1231 = vector.broadcast %1180 : vector<1x16xf32> to vector<8x16xf32>
    %1232 = arith.mulf %1231, %1168 : vector<8x16xf32>
    %1233 = arith.subf %1230, %1232 : vector<8x16xf32>
    %1234 = vector.broadcast %1221 : vector<8x1xf32> to vector<8x16xf32>
    %1235 = arith.mulf %1234, %1233 : vector<8x16xf32>
    %1236 = arith.addf %1228, %634 : vector<8x16xf32>
    %1237 = arith.addf %1235, %635 : vector<8x16xf32>
    %1238 = tpu.concatenate %1236, %1237 in 1 : vector<8x16xf32>, vector<8x16xf32> -> vector<8x32xf32>
    %c0_220 = arith.constant 0 : index
    %c0_221 = arith.constant 0 : index
    %1239 = vector.load %arg6[%c0_220, %c0_221] : memref<1x32xf32, #tpu.memory_space<vmem>>, vector<1x32xf32>
    %c0_222 = arith.constant 0 : index
    %c0_223 = arith.constant 0 : index
    %1240 = vector.load %arg7[%c0_222, %c0_223] : memref<1x32xf32, #tpu.memory_space<vmem>>, vector<1x32xf32>
    %cst_224 = arith.constant dense<0.000000e+00> : vector<32xf32>
    %1241 = vector.multi_reduction <add>, %1238, %cst_224 [0] : vector<8x32xf32> to vector<32xf32>
    %1242 = vector.shape_cast %1241 : vector<32xf32> to vector<1x32xf32>
    %cst_225 = arith.constant 8.000000e+00 : f32
    %1243 = vector.broadcast %cst_225 : f32 to vector<1x32xf32>
    %1244 = arith.divf %1242, %1243 : vector<1x32xf32>
    %1245 = vector.broadcast %1244 : vector<1x32xf32> to vector<8x32xf32>
    %1246 = arith.subf %1238, %1245 : vector<8x32xf32>
    %1247 = arith.mulf %1246, %1246 : vector<8x32xf32>
    %cst_226 = arith.constant dense<0.000000e+00> : vector<32xf32>
    %1248 = vector.multi_reduction <add>, %1247, %cst_226 [0] : vector<8x32xf32> to vector<32xf32>
    %1249 = vector.shape_cast %1248 : vector<32xf32> to vector<1x32xf32>
    %cst_227 = arith.constant 8.000000e+00 : f32
    %1250 = vector.broadcast %cst_227 : f32 to vector<1x32xf32>
    %1251 = arith.divf %1249, %1250 : vector<1x32xf32>
    %cst_228 = arith.constant 9.99999974E-6 : f32
    %1252 = vector.broadcast %cst_228 : f32 to vector<1x32xf32>
    %1253 = arith.addf %1251, %1252 : vector<1x32xf32>
    %1254 = math.rsqrt %1253 : vector<1x32xf32>
    %1255 = arith.mulf %1254, %1239 : vector<1x32xf32>
    %1256 = arith.mulf %1244, %1255 : vector<1x32xf32>
    %1257 = arith.subf %1240, %1256 : vector<1x32xf32>
    %1258 = vector.broadcast %1255 : vector<1x32xf32> to vector<8x32xf32>
    %1259 = arith.mulf %1238, %1258 : vector<8x32xf32>
    %1260 = vector.broadcast %1257 : vector<1x32xf32> to vector<8x32xf32>
    %1261 = arith.addf %1259, %1260 : vector<8x32xf32>
    %cst_229 = arith.constant 0.000000e+00 : f32
    %1262 = vector.broadcast %cst_229 : f32 to vector<8x32xf32>
    %1263 = arith.maximumf %1261, %1262 : vector<8x32xf32>
    %c0_230 = arith.constant 0 : index
    %c0_231 = arith.constant 0 : index
    %1264 = vector.load %arg8[%c0_230, %c0_231] : memref<32x128xf32, #tpu.memory_space<vmem>>, vector<32x128xf32>
    %cst_232 = arith.constant dense<0.000000e+00> : vector<8x128xf32>
    %1265 = tpu.matmul %1263, %1264, %cst_232 {dimension_numbers = #tpu.dot_dimension_numbers<[1], [0], [0], [1], [0, 0, 1, 1], [], []>} : vector<8x32xf32>, vector<32x128xf32>, vector<8x128xf32> -> vector<8x128xf32>
    %c0_233 = arith.constant 0 : index
    %c0_234 = arith.constant 0 : index
    %1266 = vector.load %arg9[%c0_233, %c0_234] : memref<1x128xf32, #tpu.memory_space<vmem>>, vector<1x128xf32>
    %1267 = vector.broadcast %1266 : vector<1x128xf32> to vector<8x128xf32>
    %1268 = arith.addf %1265, %1267 : vector<8x128xf32>
    %c0_235 = arith.constant 0 : index
    %c0_236 = arith.constant 0 : index
    %1269 = vector.load %arg10[%c0_235, %c0_236] : memref<8x128xf32, #tpu.memory_space<vmem>>, vector<8x128xf32>
    tpu.vector_store %arg10[%c0_235, %c0_236], %1268 {strides = array<i32>} : memref<8x128xf32, #tpu.memory_space<vmem>>, vector<8x128xf32>,
    return
  }
}

</mosaic_0001>

<bundles_post_ra>
// kernel: deep_hyper_butterfly_fwd.1
= control target key start
LH: loop header
LB: loop body
LE: loop exit
PB: predicated region body
PF: predicated region fallthrough
CT: control target
= control target key end

     0   :  { %v2357_v1 = vmov 0.0   ;;  %vm2358_vm0 = vmmov 0   ;;  %s2964_s0 = inlined_call_operand.vmem [shape: f32[8,64], index: 0, kind: input, shape index: {}]   ;;  %s2965_s1 = inlined_call_operand.vmem [shape: f32[64,32], index: 1, kind: input, shape index: {}]   ;;  %s2966_s2 = inlined_call_operand.vmem [shape: f32[1,32], index: 2, kind: input, shape index: {}]   ;;  %s2967_s3 = inlined_call_operand.vmem [shape: f32[1,32], index: 3, kind: input, shape index: {}]   ;;  %s2968_s4 = inlined_call_operand.vmem [shape: f32[1,32], index: 4, kind: input, shape index: {}]   ;;  %s2969_s5 = inlined_call_operand.vmem [shape: f32[20,48], index: 5, kind: input, shape index: {}]   ;;  %s2970_s6 = inlined_call_operand.vmem [shape: f32[1,32], index: 6, kind: input, shape index: {}]   ;;  %s2971_s7 = inlined_call_operand.vmem [shape: f32[1,32], index: 7, kind: input, shape index: {}]   ;;  %s2972_s8 = inlined_call_operand.vmem [shape: f32[32,128], index: 8, kind: input, shape index: {}]   ;;  %s2973_s9 = inlined_call_operand.vmem [shape: f32[1,128], index: 9, kind: input, shape index: {}]   ;;  %s2974_s10 = inlined_call_operand.hbm [shape: f32[8,128], index: 10, kind: output, shape index: {}]  }
   0x1   :  { %v44_v0 = vld [vmem:[%s2965_s1 + $0x38] sm:$0xff]  ;;  %2014 = vmatprep.subr.mxu0 %v2357_v1  ;;  %v43_v2 = vld [vmem:[%s2965_s1 + $0x30] sm:$0xff]  ;;  %2030 = vmatprep.mubr.msk.f32.mxu0 %vm2358_vm0, %v2357_v1  ;;  %v42_v3 = vld [vmem:[%s2965_s1 + $0x28] sm:$0xff] }
   0x2   :  { %2015 = vmatpush3.msra.mxu0 %v44_v0  ;;  %2033 = vmatprep.subr.mxu1 %v2357_v1 }
   0x3   :  { %2016 = vmatprep.subr.mxu0 %v2357_v1  ;;  %2041 = vmatprep.mubr.msk.f32.mxu1 %vm2358_vm0, %v2357_v1 }
   0x4   :  { %15 = vsyncpa [#allocation3], 0  ;;  %2017 = vmatpush3.msra.mxu0 %v43_v2  ;;  %v41_v4 = vld [vmem:[%s2965_s1 + $0x20] sm:$0xff]  ;;  %v40_v5 = vld [vmem:[%s2965_s1 + $0x18] sm:$0xff]  ;;  %vm52_vm1 = vcmask 523264   ;;  %vm128_vm2 = vcmask 261120   ;;  %v153_v33 = vlaneseq }
   0x5   :  { %2018 = vmatprep.subr.mxu0 %v2357_v1  ;;  %v39_v6 = vld [vmem:[%s2965_s1 + $0x10] sm:$0xff]  ;;  %v38_v7 = vld [vmem:[%s2965_s1 + $0x8] sm:$0xff]  ;;  %v37_v8 = vld [vmem:[%s2965_s1] sm:$0xff]  ;;  %s2360_s14 = smov 32   ;;  %s2362_s17 = smov 96   ;;  %vm173_vm3 = vcmask 130048  }
   0x6   :  { %2019 = vmatpush3.msra.mxu0 %v42_v3  ;;  %v36_v9 = vld [vmem:[%s2964_s0] sm:$0xff]  ;;  %v154_v34 = vshrl.u32 %v153_v33, 7 }
   0x7   :  { %2020 = vmatprep.subr.mxu0 %v2357_v1  ;;  %v1976_v10 = vld [vmem:[%s2966_s2] ss:$0 sm:$0xff] }
   0x8   :  { %2021 = vmatpush3.msra.mxu0 %v41_v4  ;;  %v126_v35 = vld [vmem:[%s2967_s3] sm:$0x1]  ;;  %v2465_v36 = vsub.s32 0, %v154_v34  ;;  %s2359_s3 = smov 112  }
   0x9   :  { %2022 = vmatprep.subr.mxu0 %v2357_v1  ;;  %v127_v39 = vld [vmem:[%s2968_s4] sm:$0x1]  ;;  %s2361_s4 = smov 16  }
   0xa   :  { %2023 = vmatpush3.msra.mxu0 %v40_v5  ;;  %v2483_v51 = vld [vmem:[%s2969_s5] ss:$0 sm:$0xff] }
   0xb   :  { %2024 = vmatprep.subr.mxu0 %v2357_v1 }
   0xc   :  { %2025 = vmatpush3.msra.mxu0 %v39_v6 }
   0xd   :  { %2026 = vmatprep.subr.mxu0 %v2357_v1 }
   0xe   :  { %2027 = vmatpush3.msra.mxu0 %v38_v7 }
   0xf   :  { %2028 = vmatprep.subr.mxu0 %v2357_v1 }
  0x10   :  { %2029 = vmatpush3.msra.mxu0 %v37_v8 }
  0x11   :  { %2031 = vmatmul.mubr.msk.f32.vlgmr.msra.gmra.mxu0 %vm52_vm1, %v36_v9 }
  0xd1   :  { %v122_v11 = vpop.f32.mrf.mxu0 }
  0xd2   :  { %v123_v12 = vadd.f32 %v1976_v10, %v122_v11 }
  0xd3   :  { %v2032_v13 = vpop.f32.mrf.mxu0 }
  0xd4   :  { %v129_v14 = vsel %vm128_vm2, %v123_v12, 0.0 }
  0xd5   :  { %v130_v15 = vrot.slane %v129_v14, 4 }
  0xd7   :  { %v131_v16 = vadd.f32 %v130_v15, %v129_v14 }
  0xd9   :  { %v132_v17 = vrot.slane %v131_v16, 2 }
  0xdb   :  { %v133_v18 = vadd.f32 %v132_v17, %v131_v16 }
  0xdd   :  { %v134_v19 = vrot.slane %v133_v18, 1 }
  0xdf   :  { %v135_v20 = vadd.f32 %v134_v19, %v133_v18 }
  0xe1   :  { %v137_v21 = vmul.f32 0.125, %v135_v20 }
  0xe3   :  { %v138_v22 = vsub.f32 %v123_v12, %v137_v21 }
  0xe5   :  { %v139_v23 = vmul.f32 %v138_v22, %v138_v22 }
  0xe7   :  { %v140_v24 = vsel %vm128_vm2, %v139_v23, 0.0 }
  0xe8   :  { %v141_v25 = vrot.slane %v140_v24, 4 }
  0xea   :  { %v142_v26 = vadd.f32 %v141_v25, %v140_v24 }
  0xec   :  { %v143_v27 = vrot.slane %v142_v26, 2 }
  0xee   :  { %v144_v28 = vadd.f32 %v143_v27, %v142_v26 }
  0xf0   :  { %v145_v29 = vrot.slane %v144_v28, 1 }
  0xf2   :  { %v146_v30 = vadd.f32 %v145_v29, %v144_v28 }
  0xf4   :  { %v147_v31 = vmul.f32 0.125, %v146_v30 }
  0xf6   :  { %v148_v32 = vadd.f32 1e-05, %v147_v31 }
  0xf8   :  { %2051 = vrsqrt.f32 %v148_v32 }
 0x105   :  { %v2052_v37 = vpop.eup %2051 }
 0x106   :  { %v150_v38 = vmul.f32 %v2052_v37, %v126_v35 }
 0x108   :  { %v151_v40 = vmul.f32 %v150_v38, %v137_v21  ;;  %v156_v41 = vrot.slane %v150_v38, %v2465_v36 }
 0x10a   :  { %v152_v42 = vsub.f32 %v127_v39, %v151_v40  ;;  %v157_v43 = vmul.f32 %v156_v41, %v123_v12 }
 0x10c   :  { %v162_v44 = vrot.slane %v152_v42, %v2465_v36 }
 0x10e   :  { %v164_v45 = vadd.f32 %v162_v44, %v157_v43 }
 0x110   :  { %v2472_v46 = vmax.f32 %v164_v45, 0.0  ;;  %v1979_v45 = vld [vmem:[%s2969_s5 + $0x1] ss:$0 sm:$0xff] }
 0x112   :  { %v167_v47 = vmul.f32 %v2472_v46, %v2472_v46  ;;  %v230_v58 = vmul.f32 %v2483_v51, %v2472_v46 }
 0x114   :  { %169 = vrot.lane.b32.xlu0 %v167_v47, %s2359_s3 }
 0x186   :  { %v170_v48 = vpop.permute.xlu0 %169 }
 0x187   :  { %v172_v49 = vadd.f32 %v170_v48, %v167_v47 }
 0x189   :  { %182 = vrot.lane.b32.xlu0 %v172_v49, %s2360_s14  ;;  %v174_v53 = vsel %vm173_vm3, %v172_v49, 0.0 }
 0x18d   :  { %242 = vrot.lane.b32.xlu0 %v2472_v46, %s2361_s4 }
 0x1fb   :  { %v183_v50 = vpop.permute.xlu0 %182 }
 0x1fc   :  { %v185_v52 = vmul.f32 %v2483_v51, %v183_v50 }
 0x1fe   :  { %187 = vrot.lane.b32.xlu1 %v185_v52, %s2362_s17 }
 0x1ff   :  { %v243_v54 = vpop.permute.xlu0 %242 }
 0x200   :  { %v245_v55 = vmul.f32 %v2483_v51, %v243_v54 }
 0x222   :  { %175 = vadd.xlane.f32.xlu1 %v174_v53 }
 0x233   :  { %238 = vrot.lane.b32.xlu1 %v2472_v46, %s2359_s3 }
 0x237   :  { %247 = vrot.lane.b32.xlu1 %v245_v55, %s2359_s3 }
 0x270   :  { %v188_v56 = vpop.permute.xlu1 %187 }
 0x271   :  { %v190_v57 = vsel %vm173_vm3, %v188_v56, 0.0 }
 0x272   :  { %191 = vadd.xlane.f32.xlu0 %v190_v57 }
 0x288   :  { %232 = vrot.lane.b32.xlu0 %v230_v58, %s2359_s3 }
 0x2ab   :  { %v176_v59 = vpop.xlane.xlu1 %175 }
 0x2ac   :  { %v193_v60 = vadd.f32 1e-12, %v176_v59 }
 0x2ae   :  { %2053 = vrsqrt.f32 %v193_v60  ;;  %vm196_vm4 = vcmp.eq.f32.partialorder %v193_v60, inf  ;;  %v199_v0 = vand.u32 2147483648, %v193_v60  ;;  %vm198_vm5 = vcmp.eq.f32.partialorder %v193_v60, 0.0 }
 0x2af   :  { %v2496_v27 = vpop.permute.xlu1 %238 }
 0x2b0   :  { %v241_v32 = vmul.f32 %v2483_v51, %v2496_v27 }
 0x2b3   :  { %v248_v30 = vpop.permute.xlu1 %247 }
 0x2b4   :  { %v250_v34 = vsub.f32 %v241_v32, %v248_v30 }
 0x2bb   :  { %v2054_v61 = vpop.eup %2053 }
 0x2bc   :  { %v195_v62 = vmul.f32 %v2054_v61, %v193_v60 }
 0x2be   :  { %v197_v63 = vsel %vm196_vm4, %v193_v60, %v195_v62 }
 0x2bf   :  { %v200_v2 = vsel %vm198_vm5, %v199_v0, %v197_v63 }
 0x2c0   :  { %v201_v3 = vmul.f32 0.03162278, %v200_v2 }
 0x2c2   :  { %v202_v4 = vmax.f32 %v201_v3, 1e-06 }
 0x2c4   :  { %v203_v5 = vmin.f32 %v202_v4, 0.99999 }
 0x2c6   :  { %v204_v6 = vadd.f32 1.0, %v203_v5  ;;  %v207_v7 = vsub.f32 1.0, %v203_v5 }
 0x2c8   :  { %2055 = vlog2.f32 %v204_v6 }
 0x2c9   :  { %2057 = vlog2.f32 %v207_v7 }
 0x2ca   :  { %2059 = vrcp.f32 %v203_v5 }
 0x2d5   :  { %v2056_v8 = vpop.eup %2055 }
 0x2d6   :  { %v2058_v9 = vpop.eup %2057  ;;  %v206_v10 = vmul.f32 0.6931472, %v2056_v8 }
 0x2d7   :  { %v209_v11 = vmul.f32 0.6931472, %v2058_v9  ;;  %v2060_v14 = vpop.eup %2059 }
 0x2d9   :  { %v210_v12 = vsub.f32 %v206_v10, %v209_v11 }
 0x2db   :  { %v211_v13 = vmul.f32 0.5, %v210_v12 }
 0x2dd   :  { %v213_v15 = vmul.f32 %v2060_v14, %v211_v13 }
 0x2df   :  { %v214_v16 = vmul.f32 %v213_v15, %v213_v15 }
 0x2fb   :  { %v192_v17 = vpop.xlane.xlu0 %191 }
 0x2fc   :  { %v215_v18 = vmul.f32 %v214_v16, %v192_v17 }
 0x2fe   :  { %v216_v19 = vadd.f32 1e-12, %v215_v18 }
 0x2ff   :  { %v233_v31 = vpop.permute.xlu0 %232 }
 0x300   :  { %2061 = vrsqrt.f32 %v216_v19  ;;  %vm219_vm6 = vcmp.eq.f32.partialorder %v216_v19, inf  ;;  %v222_v22 = vand.u32 2147483648, %v216_v19  ;;  %vm221_vm7 = vcmp.eq.f32.partialorder %v216_v19, 0.0 }
 0x301   :  { %v235_v38 = vadd.f32 %v233_v31, %v230_v58 }
 0x30d   :  { %v2062_v20 = vpop.eup %2061 }
 0x30e   :  { %v218_v21 = vmul.f32 %v2062_v20, %v216_v19 }
 0x310   :  { %v220_v23 = vsel %vm219_vm6, %v216_v19, %v218_v21 }
 0x311   :  { %v223_v24 = vsel %vm221_vm7, %v222_v22, %v220_v23 }
 0x312   :  { %v224_v25 = vmul.f32 0.03162278, %v223_v24 }
 0x314   :  { %v225_v26 = vmax.f32 %v224_v25, 1e-06 }
 0x316   :  { %2063 = vtanh.f32 %v225_v26 }
 0x317   :  { %2065 = vrcp.f32 %v225_v26 }
 0x323   :  { %v2064_v28 = vpop.eup %2063 }
 0x324   :  { %v2066_v29 = vpop.eup %2065 }
 0x325   :  { %v228_v33 = vmul.f32 %v2066_v29, %v2064_v28 }
 0x327   :  { %v252_v35 = vmul.f32 %v228_v33, %v228_v33  ;;  %v229_v37 = vmul.f32 %v228_v33, %v213_v15 }
 0x329   :  { %v253_v39 = vmul.f32 %v252_v35, %v215_v18  ;;  %v2500_v40 = vmul.f32 %v235_v38, %v229_v37  ;;  %v2502_v41 = vmul.f32 %v250_v34, %v229_v37 }
 0x32b   :  { %v255_v42 = vmul.f32 %v2500_v40, %v2500_v40  ;;  %v256_v43 = vmul.f32 %v2502_v41, %v2502_v41  ;;  %v274_v55 = vadd.f32 1e-12, %v253_v39  ;;  %v311_v26 = vmul.f32 %v1979_v45, %v2500_v40 }
 0x32c   :  { %v323_v28 = vmul.f32 %v1979_v45, %v2502_v41 }
 0x32d   :  { %v257_v44 = vadd.f32 %v256_v43, %v255_v42  ;;  %2067 = vrsqrt.f32 %v274_v55  ;;  %vm277_vm8 = vcmp.eq.f32.partialorder %v274_v55, inf  ;;  %v280_v59 = vand.u32 2147483648, %v274_v55 }
 0x32e   :  { %vm279_vm9 = vcmp.eq.f32.partialorder %v274_v55, 0.0 }
 0x32f   :  { %263 = vrot.lane.b32.xlu1 %v257_v44, %s2360_s14 }
 0x333   :  { %313 = vrot.lane.b32.xlu1 %v2502_v41, %s2361_s4 }
 0x33a   :  { %v2068_v56 = vpop.eup %2067 }
 0x33b   :  { %v276_v57 = vmul.f32 %v2068_v56, %v274_v55 }
 0x33d   :  { %v278_v58 = vsel %vm277_vm8, %v274_v55, %v276_v57 }
 0x33e   :  { %v281_v60 = vsel %vm279_vm9, %v280_v59, %v278_v58 }
 0x33f   :  { %v282_v61 = vmul.f32 0.03162278, %v281_v60 }
 0x341   :  { %v283_v62 = vmax.f32 %v282_v61, 1e-06 }
 0x343   :  { %v284_v63 = vmin.f32 %v283_v62, 0.99999 }
 0x345   :  { %v285_v0 = vadd.f32 1.0, %v284_v63  ;;  %v288_v2 = vsub.f32 1.0, %v284_v63 }
 0x347   :  { %2069 = vlog2.f32 %v285_v0 }
 0x348   :  { %2071 = vlog2.f32 %v288_v2 }
 0x349   :  { %2073 = vrcp.f32 %v284_v63 }
 0x354   :  { %v2070_v3 = vpop.eup %2069 }
 0x355   :  { %v2072_v4 = vpop.eup %2071  ;;  %v287_v5 = vmul.f32 0.6931472, %v2070_v3 }
 0x356   :  { %v290_v6 = vmul.f32 0.6931472, %v2072_v4  ;;  %v2074_v9 = vpop.eup %2073 }
 0x358   :  { %v291_v7 = vsub.f32 %v287_v5, %v290_v6 }
 0x35a   :  { %v292_v8 = vmul.f32 0.5, %v291_v7 }
 0x35c   :  { %v294_v10 = vmul.f32 %v2074_v9, %v292_v8 }
 0x35e   :  { %v295_v11 = vmul.f32 %v294_v10, %v294_v10 }
 0x3a1   :  { %v264_v47 = vpop.permute.xlu1 %263 }
 0x3a2   :  { %v266_v48 = vmul.f32 %v1979_v45, %v264_v47 }
 0x3a4   :  { %268 = vrot.lane.b32.xlu0 %v266_v48, %s2362_s17 }
 0x3a5   :  { %v314_v49 = vpop.permute.xlu1 %313 }
 0x3a6   :  { %v316_v50 = vmul.f32 %v1979_v45, %v314_v49 }
 0x3a8   :  { %325 = vrot.lane.b32.xlu0 %v2500_v40, %s2361_s4  ;;  %v1980_v40 = vld [vmem:[%s2969_s5 + $0x2] ss:$0 sm:$0xff] }
 0x3ac   :  { %318 = vrot.lane.b32.xlu0 %v316_v50, %s2359_s3 }
 0x416   :  { %v269_v51 = vpop.permute.xlu0 %268 }
 0x417   :  { %v271_v52 = vsel %vm173_vm3, %v269_v51, 0.0 }
 0x418   :  { %272 = vadd.xlane.f32.xlu1 %v271_v52 }
 0x41a   :  { %v326_v53 = vpop.permute.xlu0 %325 }
 0x41b   :  { %v328_v54 = vmul.f32 %v1979_v45, %v326_v53 }
 0x41d   :  { %330 = vrot.lane.b32.xlu0 %v328_v54, %s2359_s3 }
 0x41e   :  { %v319_v22 = vpop.permute.xlu0 %318 }
 0x41f   :  { %v321_v30 = vadd.f32 %v319_v22, %v311_v26 }
 0x48f   :  { %v331_v25 = vpop.permute.xlu0 %330 }
 0x490   :  { %v333_v31 = vsub.f32 %v323_v28, %v331_v25 }
 0x4a1   :  { %v273_v12 = vpop.xlane.xlu1 %272 }
 0x4a2   :  { %v296_v13 = vmul.f32 %v295_v11, %v273_v12 }
 0x4a4   :  { %v297_v14 = vadd.f32 1e-12, %v296_v13 }
 0x4a6   :  { %2075 = vrsqrt.f32 %v297_v14  ;;  %vm300_vm10 = vcmp.eq.f32.partialorder %v297_v14, inf  ;;  %v303_v17 = vand.u32 2147483648, %v297_v14  ;;  %vm302_vm11 = vcmp.eq.f32.partialorder %v297_v14, 0.0 }
 0x4b3   :  { %v2076_v15 = vpop.eup %2075 }
 0x4b4   :  { %v299_v16 = vmul.f32 %v2076_v15, %v297_v14 }
 0x4b6   :  { %v301_v18 = vsel %vm300_vm10, %v297_v14, %v299_v16 }
 0x4b7   :  { %v304_v19 = vsel %vm302_vm11, %v303_v17, %v301_v18 }
 0x4b8   :  { %v305_v20 = vmul.f32 0.03162278, %v304_v19 }
 0x4ba   :  { %v306_v21 = vmax.f32 %v305_v20, 1e-06 }
 0x4bc   :  { %2077 = vtanh.f32 %v306_v21 }
 0x4bd   :  { %2079 = vrcp.f32 %v306_v21 }
 0x4c9   :  { %v2078_v23 = vpop.eup %2077 }
 0x4ca   :  { %v2080_v24 = vpop.eup %2079 }
 0x4cb   :  { %v309_v29 = vmul.f32 %v2080_v24, %v2078_v23 }
 0x4cd   :  { %v310_v32 = vmul.f32 %v309_v29, %v294_v10  ;;  %v335_v33 = vmul.f32 %v309_v29, %v309_v29 }
 0x4cf   :  { %v2522_v34 = vmul.f32 %v321_v30, %v310_v32  ;;  %v2524_v35 = vmul.f32 %v333_v31, %v310_v32  ;;  %v336_v37 = vmul.f32 %v335_v33, %v296_v13 }
 0x4d1   :  { %v338_v38 = vmul.f32 %v2522_v34, %v2522_v34  ;;  %v339_v39 = vmul.f32 %v2524_v35, %v2524_v35  ;;  %v357_v51 = vadd.f32 1e-12, %v336_v37  ;;  %v394_v22 = vmul.f32 %v1980_v40, %v2522_v34 }
 0x4d2   :  { %v406_v23 = vmul.f32 %v1980_v40, %v2524_v35 }
 0x4d3   :  { %v340_v42 = vadd.f32 %v339_v39, %v338_v38  ;;  %2081 = vrsqrt.f32 %v357_v51  ;;  %vm360_vm12 = vcmp.eq.f32.partialorder %v357_v51, inf  ;;  %v363_v55 = vand.u32 2147483648, %v357_v51 }
 0x4d4   :  { %vm362_vm13 = vcmp.eq.f32.partialorder %v357_v51, 0.0 }
 0x4d5   :  { %346 = vrot.lane.b32.xlu0 %v340_v42, %s2360_s14 }
 0x4e0   :  { %v2082_v52 = vpop.eup %2081 }
 0x4e1   :  { %v359_v53 = vmul.f32 %v2082_v52, %v357_v51 }
 0x4e3   :  { %v361_v54 = vsel %vm360_vm12, %v357_v51, %v359_v53 }
 0x4e4   :  { %v364_v56 = vsel %vm362_vm13, %v363_v55, %v361_v54 }
 0x4e5   :  { %v365_v57 = vmul.f32 0.03162278, %v364_v56 }
 0x4e7   :  { %v366_v58 = vmax.f32 %v365_v57, 1e-06 }
 0x4e9   :  { %v367_v59 = vmin.f32 %v366_v58, 0.99999 }
 0x4eb   :  { %v368_v60 = vadd.f32 1.0, %v367_v59  ;;  %v371_v61 = vsub.f32 1.0, %v367_v59 }
 0x4ed   :  { %2083 = vlog2.f32 %v368_v60 }
 0x4ee   :  { %2085 = vlog2.f32 %v371_v61 }
 0x4ef   :  { %2087 = vrcp.f32 %v367_v59 }
 0x4fa   :  { %v2084_v62 = vpop.eup %2083 }
 0x4fb   :  { %v2086_v63 = vpop.eup %2085  ;;  %v370_v0 = vmul.f32 0.6931472, %v2084_v62 }
 0x4fc   :  { %v373_v2 = vmul.f32 0.6931472, %v2086_v63  ;;  %v2088_v5 = vpop.eup %2087 }
 0x4fe   :  { %v374_v3 = vsub.f32 %v370_v0, %v373_v2 }
 0x500   :  { %v375_v4 = vmul.f32 0.5, %v374_v3 }
 0x502   :  { %v377_v6 = vmul.f32 %v2088_v5, %v375_v4 }
 0x504   :  { %v378_v7 = vmul.f32 %v377_v6, %v377_v6 }
 0x547   :  { %v347_v41 = vpop.permute.xlu0 %346 }
 0x548   :  { %v349_v43 = vmul.f32 %v1980_v40, %v347_v41 }
 0x54a   :  { %351 = vrot.lane.b32.xlu0 %v349_v43, %s2362_s17 }
 0x54e   :  { %396 = vrot.lane.b32.xlu0 %v2524_v35, %s2361_s4 }
 0x552   :  { %408 = vrot.lane.b32.xlu0 %v2522_v34, %s2361_s4  ;;  %v1981_v34 = vld [vmem:[%s2969_s5 + $0x3] ss:$0 sm:$0xff] }
 0x5bc   :  { %v352_v44 = vpop.permute.xlu0 %351 }
 0x5bd   :  { %v354_v45 = vsel %vm173_vm3, %v352_v44, 0.0 }
 0x5be   :  { %355 = vadd.xlane.f32.xlu0 %v354_v45 }
 0x5c0   :  { %v397_v47 = vpop.permute.xlu0 %396 }
 0x5c1   :  { %v399_v48 = vmul.f32 %v1980_v40, %v397_v47 }
 0x5c3   :  { %401 = vrot.lane.b32.xlu1 %v399_v48, %s2359_s3 }
 0x5c4   :  { %v409_v49 = vpop.permute.xlu0 %408 }
 0x5c5   :  { %v411_v50 = vmul.f32 %v1980_v40, %v409_v49 }
 0x5c7   :  { %413 = vrot.lane.b32.xlu1 %v411_v50, %s2359_s3 }
 0x635   :  { %v402_v18 = vpop.permute.xlu1 %401 }
 0x636   :  { %v404_v25 = vadd.f32 %v402_v18, %v394_v22 }
 0x639   :  { %v414_v21 = vpop.permute.xlu1 %413 }
 0x63a   :  { %v416_v26 = vsub.f32 %v406_v23, %v414_v21 }
 0x647   :  { %v356_v8 = vpop.xlane.xlu0 %355 }
 0x648   :  { %v379_v9 = vmul.f32 %v378_v7, %v356_v8 }
 0x64a   :  { %v380_v10 = vadd.f32 1e-12, %v379_v9 }
 0x64c   :  { %2089 = vrsqrt.f32 %v380_v10  ;;  %vm383_vm14 = vcmp.eq.f32.partialorder %v380_v10, inf  ;;  %v386_v13 = vand.u32 2147483648, %v380_v10  ;;  %vm385_vm15 = vcmp.eq.f32.partialorder %v380_v10, 0.0 }
 0x659   :  { %v2090_v11 = vpop.eup %2089 }
 0x65a   :  { %v382_v12 = vmul.f32 %v2090_v11, %v380_v10 }
 0x65c   :  { %v384_v14 = vsel %vm383_vm14, %v380_v10, %v382_v12 }
 0x65d   :  { %v387_v15 = vsel %vm385_vm15, %v386_v13, %v384_v14 }
 0x65e   :  { %v388_v16 = vmul.f32 0.03162278, %v387_v15 }
 0x660   :  { %v389_v17 = vmax.f32 %v388_v16, 1e-06 }
 0x662   :  { %2091 = vtanh.f32 %v389_v17 }
 0x663   :  { %2093 = vrcp.f32 %v389_v17 }
 0x66f   :  { %v2092_v19 = vpop.eup %2091 }
 0x670   :  { %v2094_v20 = vpop.eup %2093 }
 0x671   :  { %v392_v24 = vmul.f32 %v2094_v20, %v2092_v19 }
 0x673   :  { %v393_v28 = vmul.f32 %v392_v24, %v377_v6  ;;  %v418_v29 = vmul.f32 %v392_v24, %v392_v24 }
 0x675   :  { %v2544_v30 = vmul.f32 %v404_v25, %v393_v28  ;;  %v2546_v31 = vmul.f32 %v416_v26, %v393_v28  ;;  %v419_v32 = vmul.f32 %v418_v29, %v379_v9 }
 0x677   :  { %v421_v33 = vmul.f32 %v2544_v30, %v2544_v30  ;;  %v422_v37 = vmul.f32 %v2546_v31, %v2546_v31  ;;  %v440_v47 = vadd.f32 1e-12, %v419_v32  ;;  %v477_v18 = vmul.f32 %v1981_v34, %v2544_v30 }
 0x678   :  { %v489_v19 = vmul.f32 %v1981_v34, %v2546_v31 }
 0x679   :  { %v423_v38 = vadd.f32 %v422_v37, %v421_v33  ;;  %2095 = vrsqrt.f32 %v440_v47  ;;  %vm443_vm0 = vcmp.eq.f32.partialorder %v440_v47, inf  ;;  %v446_v51 = vand.u32 2147483648, %v440_v47 }
 0x67a   :  { %vm445_vm1 = vcmp.eq.f32.partialorder %v440_v47, 0.0 }
 0x67b   :  { %429 = vrot.lane.b32.xlu1 %v423_v38, %s2360_s14 }
 0x67f   :  { %479 = vrot.lane.b32.xlu1 %v2546_v31, %s2361_s4 }
 0x683   :  { %491 = vrot.lane.b32.xlu1 %v2544_v30, %s2361_s4  ;;  %v1982_v30 = vld [vmem:[%s2969_s5 + $0x4] ss:$0 sm:$0xff] }
 0x686   :  { %v2096_v48 = vpop.eup %2095 }
 0x687   :  { %v442_v49 = vmul.f32 %v2096_v48, %v440_v47 }
 0x689   :  { %v444_v50 = vsel %vm443_vm0, %v440_v47, %v442_v49 }
 0x68a   :  { %v447_v52 = vsel %vm445_vm1, %v446_v51, %v444_v50 }
 0x68b   :  { %v448_v53 = vmul.f32 0.03162278, %v447_v52 }
 0x68d   :  { %v449_v54 = vmax.f32 %v448_v53, 1e-06 }
 0x68f   :  { %v450_v55 = vmin.f32 %v449_v54, 0.99999 }
 0x691   :  { %v451_v56 = vadd.f32 1.0, %v450_v55  ;;  %v454_v57 = vsub.f32 1.0, %v450_v55 }
 0x693   :  { %2097 = vlog2.f32 %v451_v56 }
 0x694   :  { %2099 = vlog2.f32 %v454_v57 }
 0x695   :  { %2101 = vrcp.f32 %v450_v55 }
 0x6a0   :  { %v2098_v58 = vpop.eup %2097 }
 0x6a1   :  { %v2100_v59 = vpop.eup %2099  ;;  %v453_v60 = vmul.f32 0.6931472, %v2098_v58 }
 0x6a2   :  { %v456_v61 = vmul.f32 0.6931472, %v2100_v59  ;;  %v2102_v0 = vpop.eup %2101 }
 0x6a4   :  { %v457_v62 = vsub.f32 %v453_v60, %v456_v61 }
 0x6a6   :  { %v458_v63 = vmul.f32 0.5, %v457_v62 }
 0x6a8   :  { %v460_v2 = vmul.f32 %v2102_v0, %v458_v63 }
 0x6aa   :  { %v461_v3 = vmul.f32 %v460_v2, %v460_v2 }
 0x6ed   :  { %v430_v35 = vpop.permute.xlu1 %429 }
 0x6ee   :  { %v432_v39 = vmul.f32 %v1981_v34, %v430_v35 }
 0x6f0   :  { %434 = vrot.lane.b32.xlu0 %v432_v39, %s2362_s17 }
 0x6f1   :  { %v480_v42 = vpop.permute.xlu1 %479 }
 0x6f2   :  { %v482_v40 = vmul.f32 %v1981_v34, %v480_v42 }
 0x6f4   :  { %484 = vrot.lane.b32.xlu0 %v482_v40, %s2359_s3 }
 0x6f5   :  { %v492_v41 = vpop.permute.xlu1 %491 }
 0x6f6   :  { %v494_v43 = vmul.f32 %v1981_v34, %v492_v41 }
 0x6f8   :  { %496 = vrot.lane.b32.xlu0 %v494_v43, %s2359_s3 }
 0x762   :  { %v435_v44 = vpop.permute.xlu0 %434 }
 0x763   :  { %v437_v45 = vsel %vm173_vm3, %v435_v44, 0.0 }
 0x764   :  { %438 = vadd.xlane.f32.xlu1 %v437_v45 }
 0x766   :  { %v485_v14 = vpop.permute.xlu0 %484 }
 0x767   :  { %v487_v21 = vadd.f32 %v485_v14, %v477_v18 }
 0x76a   :  { %v497_v17 = vpop.permute.xlu0 %496 }
 0x76b   :  { %v499_v22 = vsub.f32 %v489_v19, %v497_v17 }
 0x7ed   :  { %v439_v4 = vpop.xlane.xlu1 %438 }
 0x7ee   :  { %v462_v5 = vmul.f32 %v461_v3, %v439_v4 }
 0x7f0   :  { %v463_v6 = vadd.f32 1e-12, %v462_v5 }
 0x7f2   :  { %2103 = vrsqrt.f32 %v463_v6  ;;  %vm466_vm4 = vcmp.eq.f32.partialorder %v463_v6, inf  ;;  %v469_v9 = vand.u32 2147483648, %v463_v6  ;;  %vm468_vm5 = vcmp.eq.f32.partialorder %v463_v6, 0.0 }
 0x7ff   :  { %v2104_v7 = vpop.eup %2103 }
 0x800   :  { %v465_v8 = vmul.f32 %v2104_v7, %v463_v6 }
 0x802   :  { %v467_v10 = vsel %vm466_vm4, %v463_v6, %v465_v8 }
 0x803   :  { %v470_v11 = vsel %vm468_vm5, %v469_v9, %v467_v10 }
 0x804   :  { %v471_v12 = vmul.f32 0.03162278, %v470_v11 }
 0x806   :  { %v472_v13 = vmax.f32 %v471_v12, 1e-06 }
 0x808   :  { %2105 = vtanh.f32 %v472_v13 }
 0x809   :  { %2107 = vrcp.f32 %v472_v13 }
 0x815   :  { %v2106_v15 = vpop.eup %2105 }
 0x816   :  { %v2108_v16 = vpop.eup %2107 }
 0x817   :  { %v475_v20 = vmul.f32 %v2108_v16, %v2106_v15 }
 0x819   :  { %v476_v23 = vmul.f32 %v475_v20, %v460_v2  ;;  %v501_v24 = vmul.f32 %v475_v20, %v475_v20 }
 0x81b   :  { %v2566_v25 = vmul.f32 %v487_v21, %v476_v23  ;;  %v2568_v26 = vmul.f32 %v499_v22, %v476_v23  ;;  %v502_v28 = vmul.f32 %v501_v24, %v462_v5 }
 0x81d   :  { %v504_v29 = vmul.f32 %v2566_v25, %v2566_v25  ;;  %v505_v32 = vmul.f32 %v2568_v26, %v2568_v26  ;;  %v523_v41 = vadd.f32 1e-12, %v502_v28  ;;  %v560_v14 = vmul.f32 %v1982_v30, %v2566_v25  ;;  %v1983_v28 = vld [vmem:[%s2969_s5 + $0x5] ss:$0 sm:$0xff] }
 0x81e   :  { %v572_v15 = vmul.f32 %v1982_v30, %v2568_v26 }
 0x81f   :  { %v506_v33 = vadd.f32 %v505_v32, %v504_v29  ;;  %2109 = vrsqrt.f32 %v523_v41  ;;  %vm526_vm6 = vcmp.eq.f32.partialorder %v523_v41, inf  ;;  %v529_v47 = vand.u32 2147483648, %v523_v41 }
 0x820   :  { %vm528_vm7 = vcmp.eq.f32.partialorder %v523_v41, 0.0 }
 0x821   :  { %512 = vrot.lane.b32.xlu0 %v506_v33, %s2360_s14 }
 0x82c   :  { %v2110_v43 = vpop.eup %2109 }
 0x82d   :  { %v525_v44 = vmul.f32 %v2110_v43, %v523_v41 }
 0x82f   :  { %v527_v45 = vsel %vm526_vm6, %v523_v41, %v525_v44 }
 0x830   :  { %v530_v48 = vsel %vm528_vm7, %v529_v47, %v527_v45 }
 0x831   :  { %v531_v49 = vmul.f32 0.03162278, %v530_v48 }
 0x833   :  { %v532_v50 = vmax.f32 %v531_v49, 1e-06 }
 0x835   :  { %v533_v51 = vmin.f32 %v532_v50, 0.99999 }
 0x837   :  { %v534_v52 = vadd.f32 1.0, %v533_v51  ;;  %v537_v53 = vsub.f32 1.0, %v533_v51 }
 0x839   :  { %2111 = vlog2.f32 %v534_v52 }
 0x83a   :  { %2113 = vlog2.f32 %v537_v53 }
 0x83b   :  { %2115 = vrcp.f32 %v533_v51 }
 0x846   :  { %v2112_v54 = vpop.eup %2111 }
 0x847   :  { %v2114_v55 = vpop.eup %2113  ;;  %v536_v56 = vmul.f32 0.6931472, %v2112_v54 }
 0x848   :  { %v539_v57 = vmul.f32 0.6931472, %v2114_v55  ;;  %v2116_v60 = vpop.eup %2115 }
 0x84a   :  { %v540_v58 = vsub.f32 %v536_v56, %v539_v57 }
 0x84c   :  { %v541_v59 = vmul.f32 0.5, %v540_v58 }
 0x84e   :  { %v543_v61 = vmul.f32 %v2116_v60, %v541_v59 }
 0x850   :  { %v544_v62 = vmul.f32 %v543_v61, %v543_v61 }
 0x893   :  { %v513_v31 = vpop.permute.xlu0 %512 }
 0x894   :  { %v515_v37 = vmul.f32 %v1982_v30, %v513_v31 }
 0x896   :  { %517 = vrot.lane.b32.xlu0 %v515_v37, %s2362_s17 }
 0x89a   :  { %562 = vrot.lane.b32.xlu0 %v2568_v26, %s2361_s4 }
 0x89e   :  { %574 = vrot.lane.b32.xlu0 %v2566_v25, %s2361_s4 }
 0x908   :  { %v518_v38 = vpop.permute.xlu0 %517 }
 0x909   :  { %v520_v34 = vsel %vm173_vm3, %v518_v38, 0.0 }
 0x90a   :  { %521 = vadd.xlane.f32.xlu0 %v520_v34 }
 0x90c   :  { %v563_v35 = vpop.permute.xlu0 %562 }
 0x90d   :  { %v565_v39 = vmul.f32 %v1982_v30, %v563_v35 }
 0x90f   :  { %567 = vrot.lane.b32.xlu1 %v565_v39, %s2359_s3 }
 0x910   :  { %v575_v42 = vpop.permute.xlu0 %574 }
 0x911   :  { %v577_v40 = vmul.f32 %v1982_v30, %v575_v42 }
 0x913   :  { %579 = vrot.lane.b32.xlu1 %v577_v40, %s2359_s3 }
 0x981   :  { %v568_v10 = vpop.permute.xlu1 %567 }
 0x982   :  { %v570_v17 = vadd.f32 %v568_v10, %v560_v14 }
 0x985   :  { %v580_v13 = vpop.permute.xlu1 %579 }
 0x986   :  { %v582_v18 = vsub.f32 %v572_v15, %v580_v13 }
 0x993   :  { %v522_v63 = vpop.xlane.xlu0 %521 }
 0x994   :  { %v545_v0 = vmul.f32 %v544_v62, %v522_v63 }
 0x996   :  { %v546_v2 = vadd.f32 1e-12, %v545_v0 }
 0x998   :  { %2117 = vrsqrt.f32 %v546_v2  ;;  %vm549_vm8 = vcmp.eq.f32.partialorder %v546_v2, inf  ;;  %v552_v5 = vand.u32 2147483648, %v546_v2  ;;  %vm551_vm9 = vcmp.eq.f32.partialorder %v546_v2, 0.0 }
 0x9a5   :  { %v2118_v3 = vpop.eup %2117 }
 0x9a6   :  { %v548_v4 = vmul.f32 %v2118_v3, %v546_v2 }
 0x9a8   :  { %v550_v6 = vsel %vm549_vm8, %v546_v2, %v548_v4 }
 0x9a9   :  { %v553_v7 = vsel %vm551_vm9, %v552_v5, %v550_v6 }
 0x9aa   :  { %v554_v8 = vmul.f32 0.03162278, %v553_v7 }
 0x9ac   :  { %v555_v9 = vmax.f32 %v554_v8, 1e-06 }
 0x9ae   :  { %2119 = vtanh.f32 %v555_v9 }
 0x9af   :  { %2121 = vrcp.f32 %v555_v9 }
 0x9bb   :  { %v2120_v11 = vpop.eup %2119 }
 0x9bc   :  { %v2122_v12 = vpop.eup %2121 }
 0x9bd   :  { %v558_v16 = vmul.f32 %v2122_v12, %v2120_v11 }
 0x9bf   :  { %v584_v19 = vmul.f32 %v558_v16, %v558_v16  ;;  %v559_v20 = vmul.f32 %v558_v16, %v543_v61 }
 0x9c1   :  { %v585_v21 = vmul.f32 %v584_v19, %v545_v0  ;;  %v2588_v22 = vmul.f32 %v570_v17, %v559_v20  ;;  %v2590_v23 = vmul.f32 %v582_v18, %v559_v20 }
 0x9c3   :  { %657 = vrot.lane.b32.xlu0 %v2588_v22, %s2361_s4  ;;  %v587_v24 = vmul.f32 %v2588_v22, %v2588_v22  ;;  %v588_v25 = vmul.f32 %v2590_v23, %v2590_v23  ;;  %v606_v35 = vadd.f32 1e-12, %v585_v21  ;;  %v643_v10 = vmul.f32 %v1983_v28, %v2588_v22 }
 0x9c4   :  { %v655_v11 = vmul.f32 %v1983_v28, %v2590_v23 }
 0x9c5   :  { %v589_v26 = vadd.f32 %v588_v25, %v587_v24  ;;  %2123 = vrsqrt.f32 %v606_v35  ;;  %vm609_vm10 = vcmp.eq.f32.partialorder %v606_v35, inf  ;;  %v612_v41 = vand.u32 2147483648, %v606_v35 }
 0x9c6   :  { %vm611_vm11 = vcmp.eq.f32.partialorder %v606_v35, 0.0 }
 0x9c7   :  { %595 = vrot.lane.b32.xlu1 %v589_v26, %s2360_s14 }
 0x9d2   :  { %v2124_v39 = vpop.eup %2123 }
 0x9d3   :  { %v608_v42 = vmul.f32 %v2124_v39, %v606_v35 }
 0x9d5   :  { %v610_v40 = vsel %vm609_vm10, %v606_v35, %v608_v42 }
 0x9d6   :  { %v613_v43 = vsel %vm611_vm11, %v612_v41, %v610_v40 }
 0x9d7   :  { %v614_v44 = vmul.f32 0.03162278, %v613_v43 }
 0x9d9   :  { %v615_v45 = vmax.f32 %v614_v44, 1e-06 }
 0x9db   :  { %v616_v47 = vmin.f32 %v615_v45, 0.99999 }
 0x9dd   :  { %v617_v48 = vadd.f32 1.0, %v616_v47  ;;  %v620_v49 = vsub.f32 1.0, %v616_v47 }
 0x9df   :  { %2125 = vlog2.f32 %v617_v48 }
 0x9e0   :  { %2127 = vlog2.f32 %v620_v49 }
 0x9e1   :  { %2129 = vrcp.f32 %v616_v47 }
 0x9ec   :  { %v2126_v50 = vpop.eup %2125 }
 0x9ed   :  { %v2128_v51 = vpop.eup %2127  ;;  %v619_v52 = vmul.f32 0.6931472, %v2126_v50 }
 0x9ee   :  { %v622_v53 = vmul.f32 0.6931472, %v2128_v51  ;;  %v2130_v56 = vpop.eup %2129 }
 0x9f0   :  { %v623_v54 = vsub.f32 %v619_v52, %v622_v53 }
 0x9f2   :  { %v624_v55 = vmul.f32 0.5, %v623_v54 }
 0x9f4   :  { %v626_v57 = vmul.f32 %v2130_v56, %v624_v55 }
 0x9f6   :  { %v627_v58 = vmul.f32 %v626_v57, %v626_v57 }
 0xa35   :  { %v658_v38 = vpop.permute.xlu0 %657 }
 0xa36   :  { %v660_v34 = vmul.f32 %v1983_v28, %v658_v38 }
 0xa39   :  { %v596_v29 = vpop.permute.xlu1 %595 }
 0xa3a   :  { %v598_v32 = vmul.f32 %v1983_v28, %v596_v29 }
 0xa3c   :  { %600 = vrot.lane.b32.xlu1 %v598_v32, %s2362_s17 }
 0xa40   :  { %645 = vrot.lane.b32.xlu1 %v2590_v23, %s2361_s4  ;;  %v1984_v23 = vld [vmem:[%s2969_s5 + $0x6] ss:$0 sm:$0xff] }
 0xaae   :  { %v601_v33 = vpop.permute.xlu1 %600 }
 0xaaf   :  { %v603_v30 = vsel %vm173_vm3, %v601_v33, 0.0 }
 0xab0   :  { %604 = vadd.xlane.f32.xlu1 %v603_v30 }
 0xab2   :  { %v646_v31 = vpop.permute.xlu1 %645 }
 0xab3   :  { %v648_v37 = vmul.f32 %v1983_v28, %v646_v31 }
 0xab5   :  { %650 = vrot.lane.b32.xlu0 %v648_v37, %s2359_s3 }
 0xab9   :  { %662 = vrot.lane.b32.xlu0 %v660_v34, %s2359_s3 }
 0xb27   :  { %v651_v6 = vpop.permute.xlu0 %650 }
 0xb28   :  { %v653_v13 = vadd.f32 %v651_v6, %v643_v10 }
 0xb2b   :  { %v663_v9 = vpop.permute.xlu0 %662 }
 0xb2c   :  { %v665_v14 = vsub.f32 %v655_v11, %v663_v9 }
 0xb39   :  { %v605_v59 = vpop.xlane.xlu1 %604 }
 0xb3a   :  { %v628_v60 = vmul.f32 %v627_v58, %v605_v59 }
 0xb3c   :  { %v629_v61 = vadd.f32 1e-12, %v628_v60 }
 0xb3e   :  { %2131 = vrsqrt.f32 %v629_v61  ;;  %vm632_vm12 = vcmp.eq.f32.partialorder %v629_v61, inf  ;;  %v635_v0 = vand.u32 2147483648, %v629_v61  ;;  %vm634_vm13 = vcmp.eq.f32.partialorder %v629_v61, 0.0 }
 0xb4b   :  { %v2132_v62 = vpop.eup %2131 }
 0xb4c   :  { %v631_v63 = vmul.f32 %v2132_v62, %v629_v61 }
 0xb4e   :  { %v633_v2 = vsel %vm632_vm12, %v629_v61, %v631_v63 }
 0xb4f   :  { %v636_v3 = vsel %vm634_vm13, %v635_v0, %v633_v2 }
 0xb50   :  { %v637_v4 = vmul.f32 0.03162278, %v636_v3 }
 0xb52   :  { %v638_v5 = vmax.f32 %v637_v4, 1e-06 }
 0xb54   :  { %2133 = vtanh.f32 %v638_v5 }
 0xb55   :  { %2135 = vrcp.f32 %v638_v5 }
 0xb61   :  { %v2134_v7 = vpop.eup %2133 }
 0xb62   :  { %v2136_v8 = vpop.eup %2135 }
 0xb63   :  { %v641_v12 = vmul.f32 %v2136_v8, %v2134_v7 }
 0xb65   :  { %v667_v15 = vmul.f32 %v641_v12, %v641_v12  ;;  %v642_v16 = vmul.f32 %v641_v12, %v626_v57 }
 0xb67   :  { %v668_v17 = vmul.f32 %v667_v15, %v628_v60  ;;  %v2610_v18 = vmul.f32 %v653_v13, %v642_v16  ;;  %v2612_v19 = vmul.f32 %v665_v14, %v642_v16 }
 0xb69   :  { %740 = vrot.lane.b32.xlu1 %v2610_v18, %s2361_s4  ;;  %v670_v20 = vmul.f32 %v2610_v18, %v2610_v18  ;;  %v671_v21 = vmul.f32 %v2612_v19, %v2612_v19  ;;  %v689_v31 = vadd.f32 1e-12, %v668_v17  ;;  %v726_v6 = vmul.f32 %v1984_v23, %v2610_v18 }
 0xb6a   :  { %v738_v7 = vmul.f32 %v1984_v23, %v2612_v19 }
 0xb6b   :  { %v672_v22 = vadd.f32 %v671_v21, %v670_v20  ;;  %2137 = vrsqrt.f32 %v689_v31  ;;  %vm692_vm14 = vcmp.eq.f32.partialorder %v689_v31, inf  ;;  %v695_v35 = vand.u32 2147483648, %v689_v31 }
 0xb6c   :  { %vm694_vm15 = vcmp.eq.f32.partialorder %v689_v31, 0.0 }
 0xb6d   :  { %678 = vrot.lane.b32.xlu0 %v672_v22, %s2360_s14 }
 0xb78   :  { %v2138_v37 = vpop.eup %2137 }
 0xb79   :  { %v691_v38 = vmul.f32 %v2138_v37, %v689_v31 }
 0xb7b   :  { %v693_v34 = vsel %vm692_vm14, %v689_v31, %v691_v38 }
 0xb7c   :  { %v696_v39 = vsel %vm694_vm15, %v695_v35, %v693_v34 }
 0xb7d   :  { %v697_v42 = vmul.f32 0.03162278, %v696_v39 }
 0xb7f   :  { %v698_v40 = vmax.f32 %v697_v42, 1e-06 }
 0xb81   :  { %v699_v41 = vmin.f32 %v698_v40, 0.99999 }
 0xb83   :  { %v700_v43 = vadd.f32 1.0, %v699_v41  ;;  %v703_v44 = vsub.f32 1.0, %v699_v41 }
 0xb85   :  { %2139 = vlog2.f32 %v700_v43 }
 0xb86   :  { %2141 = vlog2.f32 %v703_v44 }
 0xb87   :  { %2143 = vrcp.f32 %v699_v41 }
 0xb92   :  { %v2140_v45 = vpop.eup %2139 }
 0xb93   :  { %v2142_v47 = vpop.eup %2141  ;;  %v702_v48 = vmul.f32 0.6931472, %v2140_v45 }
 0xb94   :  { %v705_v49 = vmul.f32 0.6931472, %v2142_v47  ;;  %v2144_v52 = vpop.eup %2143 }
 0xb96   :  { %v706_v50 = vsub.f32 %v702_v48, %v705_v49 }
 0xb98   :  { %v707_v51 = vmul.f32 0.5, %v706_v50 }
 0xb9a   :  { %v709_v53 = vmul.f32 %v2144_v52, %v707_v51 }
 0xb9c   :  { %v710_v54 = vmul.f32 %v709_v53, %v709_v53 }
 0xbdb   :  { %v741_v33 = vpop.permute.xlu1 %740 }
 0xbdc   :  { %v743_v30 = vmul.f32 %v1984_v23, %v741_v33 }
 0xbdf   :  { %v679_v24 = vpop.permute.xlu0 %678 }
 0xbe0   :  { %v681_v25 = vmul.f32 %v1984_v23, %v679_v24 }
 0xbe2   :  { %683 = vrot.lane.b32.xlu0 %v681_v25, %s2362_s17 }
 0xbe6   :  { %728 = vrot.lane.b32.xlu0 %v2612_v19, %s2361_s4  ;;  %v1985_v19 = vld [vmem:[%s2969_s5 + $0x7] ss:$0 sm:$0xff] }
 0xc54   :  { %v684_v26 = vpop.permute.xlu0 %683 }
 0xc55   :  { %v686_v28 = vsel %vm173_vm3, %v684_v26, 0.0 }
 0xc56   :  { %687 = vadd.xlane.f32.xlu0 %v686_v28 }
 0xc58   :  { %v729_v29 = vpop.permute.xlu0 %728 }
 0xc59   :  { %v731_v32 = vmul.f32 %v1984_v23, %v729_v29 }
 0xc5b   :  { %733 = vrot.lane.b32.xlu1 %v731_v32, %s2359_s3 }
 0xc5f   :  { %745 = vrot.lane.b32.xlu1 %v743_v30, %s2359_s3 }
 0xccd   :  { %v734_v2 = vpop.permute.xlu1 %733 }
 0xcce   :  { %v736_v9 = vadd.f32 %v734_v2, %v726_v6 }
 0xcd1   :  { %v746_v5 = vpop.permute.xlu1 %745 }
 0xcd2   :  { %v748_v10 = vsub.f32 %v738_v7, %v746_v5 }
 0xcdf   :  { %v688_v55 = vpop.xlane.xlu0 %687 }
 0xce0   :  { %v711_v56 = vmul.f32 %v710_v54, %v688_v55 }
 0xce2   :  { %v712_v57 = vadd.f32 1e-12, %v711_v56 }
 0xce4   :  { %2145 = vrsqrt.f32 %v712_v57  ;;  %vm715_vm0 = vcmp.eq.f32.partialorder %v712_v57, inf  ;;  %v718_v60 = vand.u32 2147483648, %v712_v57  ;;  %vm717_vm1 = vcmp.eq.f32.partialorder %v712_v57, 0.0 }
 0xcf1   :  { %v2146_v58 = vpop.eup %2145 }
 0xcf2   :  { %v714_v59 = vmul.f32 %v2146_v58, %v712_v57 }
 0xcf4   :  { %v716_v61 = vsel %vm715_vm0, %v712_v57, %v714_v59 }
 0xcf5   :  { %v719_v62 = vsel %vm717_vm1, %v718_v60, %v716_v61 }
 0xcf6   :  { %v720_v63 = vmul.f32 0.03162278, %v719_v62 }
 0xcf8   :  { %v721_v0 = vmax.f32 %v720_v63, 1e-06 }
 0xcfa   :  { %2147 = vtanh.f32 %v721_v0 }
 0xcfb   :  { %2149 = vrcp.f32 %v721_v0 }
 0xd07   :  { %v2148_v3 = vpop.eup %2147 }
 0xd08   :  { %v2150_v4 = vpop.eup %2149 }
 0xd09   :  { %v724_v8 = vmul.f32 %v2150_v4, %v2148_v3 }
 0xd0b   :  { %v750_v11 = vmul.f32 %v724_v8, %v724_v8  ;;  %v725_v12 = vmul.f32 %v724_v8, %v709_v53 }
 0xd0d   :  { %v751_v13 = vmul.f32 %v750_v11, %v711_v56  ;;  %v2632_v14 = vmul.f32 %v736_v9, %v725_v12  ;;  %v2634_v15 = vmul.f32 %v748_v10, %v725_v12 }
 0xd0f   :  { %823 = vrot.lane.b32.xlu0 %v2632_v14, %s2361_s4  ;;  %v753_v16 = vmul.f32 %v2632_v14, %v2632_v14  ;;  %v754_v17 = vmul.f32 %v2634_v15, %v2634_v15  ;;  %v772_v29 = vadd.f32 1e-12, %v751_v13  ;;  %v809_v2 = vmul.f32 %v1985_v19, %v2632_v14 }
 0xd10   :  { %v821_v3 = vmul.f32 %v1985_v19, %v2634_v15 }
 0xd11   :  { %v755_v18 = vadd.f32 %v754_v17, %v753_v16  ;;  %2151 = vrsqrt.f32 %v772_v29  ;;  %vm775_vm4 = vcmp.eq.f32.partialorder %v772_v29, inf  ;;  %v778_v31 = vand.u32 2147483648, %v772_v29 }
 0xd12   :  { %vm777_vm5 = vcmp.eq.f32.partialorder %v772_v29, 0.0 }
 0xd13   :  { %761 = vrot.lane.b32.xlu1 %v755_v18, %s2360_s14 }
 0xd1e   :  { %v2152_v32 = vpop.eup %2151 }
 0xd1f   :  { %v774_v33 = vmul.f32 %v2152_v32, %v772_v29 }
 0xd21   :  { %v776_v30 = vsel %vm775_vm4, %v772_v29, %v774_v33 }
 0xd22   :  { %v779_v37 = vsel %vm777_vm5, %v778_v31, %v776_v30 }
 0xd23   :  { %v780_v38 = vmul.f32 0.03162278, %v779_v37 }
 0xd25   :  { %v781_v34 = vmax.f32 %v780_v38, 1e-06 }
 0xd27   :  { %v782_v35 = vmin.f32 %v781_v34, 0.99999 }
 0xd29   :  { %v783_v39 = vadd.f32 1.0, %v782_v35  ;;  %v786_v42 = vsub.f32 1.0, %v782_v35 }
 0xd2b   :  { %2153 = vlog2.f32 %v783_v39 }
 0xd2c   :  { %2155 = vlog2.f32 %v786_v42 }
 0xd2d   :  { %2157 = vrcp.f32 %v782_v35 }
 0xd38   :  { %v2154_v40 = vpop.eup %2153 }
 0xd39   :  { %v2156_v41 = vpop.eup %2155  ;;  %v785_v43 = vmul.f32 0.6931472, %v2154_v40 }
 0xd3a   :  { %v788_v44 = vmul.f32 0.6931472, %v2156_v41  ;;  %v2158_v48 = vpop.eup %2157 }
 0xd3c   :  { %v789_v45 = vsub.f32 %v785_v43, %v788_v44 }
 0xd3e   :  { %v790_v47 = vmul.f32 0.5, %v789_v45 }
 0xd40   :  { %v792_v49 = vmul.f32 %v2158_v48, %v790_v47 }
 0xd42   :  { %v793_v50 = vmul.f32 %v792_v49, %v792_v49 }
 0xd81   :  { %v824_v26 = vpop.permute.xlu0 %823 }
 0xd82   :  { %v826_v28 = vmul.f32 %v1985_v19, %v824_v26 }
 0xd85   :  { %v762_v20 = vpop.permute.xlu1 %761 }
 0xd86   :  { %v764_v21 = vmul.f32 %v1985_v19, %v762_v20 }
 0xd88   :  { %766 = vrot.lane.b32.xlu1 %v764_v21, %s2362_s17 }
 0xd8c   :  { %811 = vrot.lane.b32.xlu1 %v2634_v15, %s2361_s4  ;;  %v1986_v15 = vld [vmem:[%s2969_s5 + $0x8] ss:$0 sm:$0xff] }
 0xdfa   :  { %v767_v22 = vpop.permute.xlu1 %766 }
 0xdfb   :  { %v769_v23 = vsel %vm173_vm3, %v767_v22, 0.0 }
 0xdfc   :  { %770 = vadd.xlane.f32.xlu1 %v769_v23 }
 0xdfe   :  { %v812_v24 = vpop.permute.xlu1 %811 }
 0xdff   :  { %v814_v25 = vmul.f32 %v1985_v19, %v812_v24 }
 0xe01   :  { %816 = vrot.lane.b32.xlu0 %v814_v25, %s2359_s3 }
 0xe05   :  { %828 = vrot.lane.b32.xlu0 %v826_v28, %s2359_s3 }
 0xe73   :  { %v817_v61 = vpop.permute.xlu0 %816 }
 0xe74   :  { %v819_v5 = vadd.f32 %v817_v61, %v809_v2 }
 0xe77   :  { %v829_v0 = vpop.permute.xlu0 %828 }
 0xe78   :  { %v831_v6 = vsub.f32 %v821_v3, %v829_v0 }
 0xe85   :  { %v771_v51 = vpop.xlane.xlu1 %770 }
 0xe86   :  { %v794_v52 = vmul.f32 %v793_v50, %v771_v51 }
 0xe88   :  { %v795_v53 = vadd.f32 1e-12, %v794_v52 }
 0xe8a   :  { %2159 = vrsqrt.f32 %v795_v53  ;;  %vm798_vm6 = vcmp.eq.f32.partialorder %v795_v53, inf  ;;  %v801_v56 = vand.u32 2147483648, %v795_v53  ;;  %vm800_vm7 = vcmp.eq.f32.partialorder %v795_v53, 0.0 }
 0xe97   :  { %v2160_v54 = vpop.eup %2159 }
 0xe98   :  { %v797_v55 = vmul.f32 %v2160_v54, %v795_v53 }
 0xe9a   :  { %v799_v57 = vsel %vm798_vm6, %v795_v53, %v797_v55 }
 0xe9b   :  { %v802_v58 = vsel %vm800_vm7, %v801_v56, %v799_v57 }
 0xe9c   :  { %v803_v59 = vmul.f32 0.03162278, %v802_v58 }
 0xe9e   :  { %v804_v60 = vmax.f32 %v803_v59, 1e-06 }
 0xea0   :  { %2161 = vtanh.f32 %v804_v60 }
 0xea1   :  { %2163 = vrcp.f32 %v804_v60 }
 0xead   :  { %v2162_v62 = vpop.eup %2161 }
 0xeae   :  { %v2164_v63 = vpop.eup %2163 }
 0xeaf   :  { %v807_v4 = vmul.f32 %v2164_v63, %v2162_v62 }
 0xeb1   :  { %v833_v7 = vmul.f32 %v807_v4, %v807_v4  ;;  %v808_v8 = vmul.f32 %v807_v4, %v792_v49 }
 0xeb3   :  { %v834_v9 = vmul.f32 %v833_v7, %v794_v52  ;;  %v2654_v10 = vmul.f32 %v819_v5, %v808_v8  ;;  %v2656_v11 = vmul.f32 %v831_v6, %v808_v8 }
 0xeb5   :  { %906 = vrot.lane.b32.xlu1 %v2654_v10, %s2361_s4  ;;  %v836_v12 = vmul.f32 %v2654_v10, %v2654_v10  ;;  %v837_v13 = vmul.f32 %v2656_v11, %v2656_v11  ;;  %v855_v24 = vadd.f32 1e-12, %v834_v9  ;;  %v892_v61 = vmul.f32 %v1986_v15, %v2654_v10 }
 0xeb6   :  { %v904_v62 = vmul.f32 %v1986_v15, %v2656_v11 }
 0xeb7   :  { %v838_v14 = vadd.f32 %v837_v13, %v836_v12  ;;  %2165 = vrsqrt.f32 %v855_v24  ;;  %vm858_vm8 = vcmp.eq.f32.partialorder %v855_v24, inf  ;;  %v861_v29 = vand.u32 2147483648, %v855_v24 }
 0xeb8   :  { %vm860_vm9 = vcmp.eq.f32.partialorder %v855_v24, 0.0 }
 0xeb9   :  { %844 = vrot.lane.b32.xlu0 %v838_v14, %s2360_s14 }
 0xec4   :  { %v2166_v25 = vpop.eup %2165 }
 0xec5   :  { %v857_v26 = vmul.f32 %v2166_v25, %v855_v24 }
 0xec7   :  { %v859_v28 = vsel %vm858_vm8, %v855_v24, %v857_v26 }
 0xec8   :  { %v862_v32 = vsel %vm860_vm9, %v861_v29, %v859_v28 }
 0xec9   :  { %v863_v33 = vmul.f32 0.03162278, %v862_v32 }
 0xecb   :  { %v864_v30 = vmax.f32 %v863_v33, 1e-06 }
 0xecd   :  { %v865_v31 = vmin.f32 %v864_v30, 0.99999 }
 0xecf   :  { %v866_v37 = vadd.f32 1.0, %v865_v31  ;;  %v869_v38 = vsub.f32 1.0, %v865_v31 }
 0xed1   :  { %2167 = vlog2.f32 %v866_v37 }
 0xed2   :  { %2169 = vlog2.f32 %v869_v38 }
 0xed3   :  { %2171 = vrcp.f32 %v865_v31 }
 0xede   :  { %v2168_v34 = vpop.eup %2167 }
 0xedf   :  { %v2170_v35 = vpop.eup %2169  ;;  %v868_v39 = vmul.f32 0.6931472, %v2168_v34 }
 0xee0   :  { %v871_v42 = vmul.f32 0.6931472, %v2170_v35  ;;  %v2172_v43 = vpop.eup %2171 }
 0xee2   :  { %v872_v40 = vsub.f32 %v868_v39, %v871_v42 }
 0xee4   :  { %v873_v41 = vmul.f32 0.5, %v872_v40 }
 0xee6   :  { %v875_v44 = vmul.f32 %v2172_v43, %v873_v41 }
 0xee8   :  { %v876_v45 = vmul.f32 %v875_v44, %v875_v44 }
 0xf27   :  { %v907_v22 = vpop.permute.xlu1 %906 }
 0xf28   :  { %v909_v23 = vmul.f32 %v1986_v15, %v907_v22 }
 0xf2b   :  { %v845_v16 = vpop.permute.xlu0 %844 }
 0xf2c   :  { %v847_v17 = vmul.f32 %v1986_v15, %v845_v16 }
 0xf2e   :  { %849 = vrot.lane.b32.xlu0 %v847_v17, %s2362_s17 }
 0xf32   :  { %894 = vrot.lane.b32.xlu0 %v2656_v11, %s2361_s4  ;;  %v1987_v11 = vld [vmem:[%s2969_s5 + $0x9] ss:$0 sm:$0xff] }
 0xfa0   :  { %v850_v18 = vpop.permute.xlu0 %849 }
 0xfa1   :  { %v852_v19 = vsel %vm173_vm3, %v850_v18, 0.0 }
 0xfa2   :  { %853 = vadd.xlane.f32.xlu0 %v852_v19 }
 0xfa4   :  { %v895_v20 = vpop.permute.xlu0 %894 }
 0xfa5   :  { %v897_v21 = vmul.f32 %v1986_v15, %v895_v20 }
 0xfa7   :  { %899 = vrot.lane.b32.xlu1 %v897_v21, %s2359_s3 }
 0xfab   :  { %911 = vrot.lane.b32.xlu1 %v909_v23, %s2359_s3 }
0x1019   :  { %v900_v57 = vpop.permute.xlu1 %899 }
0x101a   :  { %v902_v0 = vadd.f32 %v900_v57, %v892_v61 }
0x101d   :  { %v912_v60 = vpop.permute.xlu1 %911 }
0x101e   :  { %v914_v2 = vsub.f32 %v904_v62, %v912_v60 }
0x102b   :  { %v854_v47 = vpop.xlane.xlu0 %853 }
0x102c   :  { %v877_v48 = vmul.f32 %v876_v45, %v854_v47 }
0x102e   :  { %v878_v49 = vadd.f32 1e-12, %v877_v48 }
0x1030   :  { %2173 = vrsqrt.f32 %v878_v49  ;;  %vm881_vm10 = vcmp.eq.f32.partialorder %v878_v49, inf  ;;  %v884_v52 = vand.u32 2147483648, %v878_v49  ;;  %vm883_vm11 = vcmp.eq.f32.partialorder %v878_v49, 0.0 }
0x103d   :  { %v2174_v50 = vpop.eup %2173 }
0x103e   :  { %v880_v51 = vmul.f32 %v2174_v50, %v878_v49 }
0x1040   :  { %v882_v53 = vsel %vm881_vm10, %v878_v49, %v880_v51 }
0x1041   :  { %v885_v54 = vsel %vm883_vm11, %v884_v52, %v882_v53 }
0x1042   :  { %v886_v55 = vmul.f32 0.03162278, %v885_v54 }
0x1044   :  { %v887_v56 = vmax.f32 %v886_v55, 1e-06 }
0x1046   :  { %2175 = vtanh.f32 %v887_v56 }
0x1047   :  { %2177 = vrcp.f32 %v887_v56 }
0x1053   :  { %v2176_v58 = vpop.eup %2175 }
0x1054   :  { %v2178_v59 = vpop.eup %2177 }
0x1055   :  { %v890_v63 = vmul.f32 %v2178_v59, %v2176_v58 }
0x1057   :  { %v916_v3 = vmul.f32 %v890_v63, %v890_v63  ;;  %v891_v4 = vmul.f32 %v890_v63, %v875_v44 }
0x1059   :  { %v917_v5 = vmul.f32 %v916_v3, %v877_v48  ;;  %v2676_v6 = vmul.f32 %v902_v0, %v891_v4  ;;  %v2678_v7 = vmul.f32 %v914_v2, %v891_v4 }
0x105b   :  { %989 = vrot.lane.b32.xlu0 %v2676_v6, %s2361_s4  ;;  %v919_v8 = vmul.f32 %v2676_v6, %v2676_v6  ;;  %v920_v9 = vmul.f32 %v2678_v7, %v2678_v7  ;;  %v938_v20 = vadd.f32 1e-12, %v917_v5  ;;  %v975_v57 = vmul.f32 %v1987_v11, %v2676_v6 }
0x105c   :  { %v987_v58 = vmul.f32 %v1987_v11, %v2678_v7 }
0x105d   :  { %v921_v10 = vadd.f32 %v920_v9, %v919_v8  ;;  %2179 = vrsqrt.f32 %v938_v20  ;;  %vm941_vm12 = vcmp.eq.f32.partialorder %v938_v20, inf  ;;  %v944_v24 = vand.u32 2147483648, %v938_v20 }
0x105e   :  { %vm943_vm13 = vcmp.eq.f32.partialorder %v938_v20, 0.0 }
0x105f   :  { %927 = vrot.lane.b32.xlu1 %v921_v10, %s2360_s14 }
0x106a   :  { %v2180_v21 = vpop.eup %2179 }
0x106b   :  { %v940_v22 = vmul.f32 %v2180_v21, %v938_v20 }
0x106d   :  { %v942_v23 = vsel %vm941_vm12, %v938_v20, %v940_v22 }
0x106e   :  { %v945_v25 = vsel %vm943_vm13, %v944_v24, %v942_v23 }
0x106f   :  { %v946_v26 = vmul.f32 0.03162278, %v945_v25 }
0x1071   :  { %v947_v28 = vmax.f32 %v946_v26, 1e-06 }
0x1073   :  { %v948_v29 = vmin.f32 %v947_v28, 0.99999 }
0x1075   :  { %v949_v32 = vadd.f32 1.0, %v948_v29  ;;  %v952_v33 = vsub.f32 1.0, %v948_v29 }
0x1077   :  { %2181 = vlog2.f32 %v949_v32 }
0x1078   :  { %2183 = vlog2.f32 %v952_v33 }
0x1079   :  { %2185 = vrcp.f32 %v948_v29 }
0x1084   :  { %v2182_v30 = vpop.eup %2181 }
0x1085   :  { %v2184_v31 = vpop.eup %2183  ;;  %v951_v37 = vmul.f32 0.6931472, %v2182_v30 }
0x1086   :  { %v954_v38 = vmul.f32 0.6931472, %v2184_v31  ;;  %v2186_v39 = vpop.eup %2185 }
0x1088   :  { %v955_v34 = vsub.f32 %v951_v37, %v954_v38 }
0x108a   :  { %v956_v35 = vmul.f32 0.5, %v955_v34 }
0x108c   :  { %v958_v42 = vmul.f32 %v2186_v39, %v956_v35 }
0x108e   :  { %v959_v40 = vmul.f32 %v958_v42, %v958_v42 }
0x10cd   :  { %v990_v18 = vpop.permute.xlu0 %989 }
0x10ce   :  { %v992_v19 = vmul.f32 %v1987_v11, %v990_v18 }
0x10d1   :  { %v928_v12 = vpop.permute.xlu1 %927 }
0x10d2   :  { %v930_v13 = vmul.f32 %v1987_v11, %v928_v12 }
0x10d4   :  { %932 = vrot.lane.b32.xlu1 %v930_v13, %s2362_s17 }
0x10d8   :  { %977 = vrot.lane.b32.xlu1 %v2678_v7, %s2361_s4 }
0x1146   :  { %v933_v14 = vpop.permute.xlu1 %932 }
0x1147   :  { %v935_v15 = vsel %vm173_vm3, %v933_v14, 0.0 }
0x1148   :  { %936 = vadd.xlane.f32.xlu1 %v935_v15 }
0x114a   :  { %v978_v16 = vpop.permute.xlu1 %977 }
0x114b   :  { %v980_v17 = vmul.f32 %v1987_v11, %v978_v16 }
0x114d   :  { %982 = vrot.lane.b32.xlu0 %v980_v17, %s2359_s3 }
0x1151   :  { %994 = vrot.lane.b32.xlu0 %v992_v19, %s2359_s3 }
0x11bf   :  { %v983_v53 = vpop.permute.xlu0 %982 }
0x11c0   :  { %v985_v60 = vadd.f32 %v983_v53, %v975_v57 }
0x11c3   :  { %v995_v56 = vpop.permute.xlu0 %994 }
0x11c4   :  { %v997_v61 = vsub.f32 %v987_v58, %v995_v56 }
0x11d1   :  { %v937_v41 = vpop.xlane.xlu1 %936 }
0x11d2   :  { %v960_v43 = vmul.f32 %v959_v40, %v937_v41 }
0x11d4   :  { %v961_v44 = vadd.f32 1e-12, %v960_v43 }
0x11d6   :  { %2187 = vrsqrt.f32 %v961_v44  ;;  %vm964_vm14 = vcmp.eq.f32.partialorder %v961_v44, inf  ;;  %v967_v48 = vand.u32 2147483648, %v961_v44  ;;  %vm966_vm15 = vcmp.eq.f32.partialorder %v961_v44, 0.0 }
0x11e3   :  { %v2188_v45 = vpop.eup %2187 }
0x11e4   :  { %v963_v47 = vmul.f32 %v2188_v45, %v961_v44 }
0x11e6   :  { %v965_v49 = vsel %vm964_vm14, %v961_v44, %v963_v47 }
0x11e7   :  { %v968_v50 = vsel %vm966_vm15, %v967_v48, %v965_v49 }
0x11e8   :  { %v969_v51 = vmul.f32 0.03162278, %v968_v50 }
0x11ea   :  { %v970_v52 = vmax.f32 %v969_v51, 1e-06 }
0x11ec   :  { %2189 = vtanh.f32 %v970_v52 }
0x11ed   :  { %2191 = vrcp.f32 %v970_v52 }
0x11f9   :  { %v2190_v54 = vpop.eup %2189 }
0x11fa   :  { %v2192_v55 = vpop.eup %2191 }
0x11fb   :  { %v973_v59 = vmul.f32 %v2192_v55, %v2190_v54 }
0x11fd   :  { %v974_v62 = vmul.f32 %v973_v59, %v958_v42 }
0x11ff   :  { %v986_v63 = vmul.f32 %v985_v60, %v974_v62  ;;  %v998_v0 = vmul.f32 %v997_v61, %v974_v62 }
0x1201   :  { %v2699_v2 = vadd.f32 %v998_v0, %v2496_v27  ;;  %v2702_v3 = vadd.f32 %v986_v63, %v2472_v46  ;;  %v1988_v46 = vld [vmem:[%s2969_s5 + $0xa] ss:$0 sm:$0xff] }
0x1203   :  { %1063 = vrot.lane.b32.xlu1 %v2699_v2, %s2361_s4  ;;  %v1002_v4 = vmul.f32 %v2702_v3, %v2702_v3  ;;  %v1003_v5 = vmul.f32 %v2699_v2, %v2699_v2  ;;  %v1061_v53 = vmul.f32 %v1988_v46, %v2702_v3  ;;  %v1073_v54 = vmul.f32 %v1988_v46, %v2699_v2 }
0x1205   :  { %v1004_v6 = vadd.f32 %v1003_v5, %v1002_v4  ;;  %v1989_v5 = vld [vmem:[%s2969_s5 + $0xb] ss:$0 sm:$0xff] }
0x1207   :  { %1075 = vrot.lane.b32.xlu1 %v2702_v3, %s2361_s4  ;;  %1013 = vrot.lane.b32.xlu0 %v1004_v6, %s2360_s14  ;;  %v1005_v8 = vsel %vm173_vm3, %v1004_v6, 0.0 }
0x1275   :  { %v1064_v9 = vpop.permute.xlu1 %1063 }
0x1276   :  { %v1066_v10 = vmul.f32 %v1988_v46, %v1064_v9 }
0x1279   :  { %v1014_v27 = vpop.permute.xlu0 %1013  ;;  %v1076_v11 = vpop.permute.xlu1 %1075 }
0x127a   :  { %v1016_v7 = vmul.f32 %v1988_v46, %v1014_v27  ;;  %v1078_v12 = vmul.f32 %v1988_v46, %v1076_v11 }
0x127c   :  { %1018 = vrot.lane.b32.xlu0 %v1016_v7, %s2362_s17 }
0x129b   :  { %1006 = vadd.xlane.f32.xlu0 %v1005_v8 }
0x12b1   :  { %1068 = vrot.lane.b32.xlu0 %v1066_v10, %s2359_s3 }
0x12b5   :  { %1080 = vrot.lane.b32.xlu0 %v1078_v12, %s2359_s3 }
0x12ee   :  { %v1019_v13 = vpop.permute.xlu0 %1018 }
0x12ef   :  { %v1021_v14 = vsel %vm173_vm3, %v1019_v13, 0.0 }
0x12f0   :  { %1022 = vadd.xlane.f32.xlu1 %v1021_v14 }
0x1324   :  { %v1007_v15 = vpop.xlane.xlu0 %1006 }
0x1325   :  { %v1024_v16 = vadd.f32 1e-12, %v1007_v15 }
0x1327   :  { %2193 = vrsqrt.f32 %v1024_v16  ;;  %vm1027_vm0 = vcmp.eq.f32.partialorder %v1024_v16, inf  ;;  %v1030_v20 = vand.u32 2147483648, %v1024_v16  ;;  %vm1029_vm1 = vcmp.eq.f32.partialorder %v1024_v16, 0.0 }
0x1328   :  { %v1069_v49 = vpop.permute.xlu0 %1068 }
0x1329   :  { %v1071_v56 = vadd.f32 %v1069_v49, %v1061_v53 }
0x132c   :  { %v1081_v52 = vpop.permute.xlu0 %1080 }
0x132d   :  { %v1083_v57 = vsub.f32 %v1073_v54, %v1081_v52 }
0x1334   :  { %v2194_v17 = vpop.eup %2193 }
0x1335   :  { %v1026_v18 = vmul.f32 %v2194_v17, %v1024_v16 }
0x1337   :  { %v1028_v19 = vsel %vm1027_vm0, %v1024_v16, %v1026_v18 }
0x1338   :  { %v1031_v21 = vsel %vm1029_vm1, %v1030_v20, %v1028_v19 }
0x1339   :  { %v1032_v22 = vmul.f32 0.03162278, %v1031_v21 }
0x133b   :  { %v1033_v23 = vmax.f32 %v1032_v22, 1e-06 }
0x133d   :  { %v1034_v24 = vmin.f32 %v1033_v23, 0.99999 }
0x133f   :  { %v1035_v25 = vadd.f32 1.0, %v1034_v24  ;;  %v1038_v26 = vsub.f32 1.0, %v1034_v24 }
0x1341   :  { %2195 = vlog2.f32 %v1035_v25 }
0x1342   :  { %2197 = vlog2.f32 %v1038_v26 }
0x1343   :  { %2199 = vrcp.f32 %v1034_v24 }
0x134e   :  { %v2196_v28 = vpop.eup %2195 }
0x134f   :  { %v2198_v29 = vpop.eup %2197  ;;  %v1037_v32 = vmul.f32 0.6931472, %v2196_v28 }
0x1350   :  { %v1040_v33 = vmul.f32 0.6931472, %v2198_v29  ;;  %v2200_v37 = vpop.eup %2199 }
0x1352   :  { %v1041_v30 = vsub.f32 %v1037_v32, %v1040_v33 }
0x1354   :  { %v1042_v31 = vmul.f32 0.5, %v1041_v30 }
0x1356   :  { %v1044_v38 = vmul.f32 %v2200_v37, %v1042_v31 }
0x1358   :  { %v1045_v34 = vmul.f32 %v1044_v38, %v1044_v38 }
0x1379   :  { %v1023_v35 = vpop.xlane.xlu1 %1022 }
0x137a   :  { %v1046_v39 = vmul.f32 %v1045_v34, %v1023_v35 }
0x137c   :  { %v1047_v42 = vadd.f32 1e-12, %v1046_v39 }
0x137e   :  { %2201 = vrsqrt.f32 %v1047_v42  ;;  %vm1050_vm4 = vcmp.eq.f32.partialorder %v1047_v42, inf  ;;  %v1053_v43 = vand.u32 2147483648, %v1047_v42  ;;  %vm1052_vm5 = vcmp.eq.f32.partialorder %v1047_v42, 0.0 }
0x138b   :  { %v2202_v40 = vpop.eup %2201 }
0x138c   :  { %v1049_v41 = vmul.f32 %v2202_v40, %v1047_v42 }
0x138e   :  { %v1051_v44 = vsel %vm1050_vm4, %v1047_v42, %v1049_v41 }
0x138f   :  { %v1054_v45 = vsel %vm1052_vm5, %v1053_v43, %v1051_v44 }
0x1390   :  { %v1055_v47 = vmul.f32 0.03162278, %v1054_v45 }
0x1392   :  { %v1056_v48 = vmax.f32 %v1055_v47, 1e-06 }
0x1394   :  { %2203 = vtanh.f32 %v1056_v48 }
0x1395   :  { %2205 = vrcp.f32 %v1056_v48 }
0x13a1   :  { %v2204_v50 = vpop.eup %2203 }
0x13a2   :  { %v2206_v51 = vpop.eup %2205 }
0x13a3   :  { %v1059_v55 = vmul.f32 %v2206_v51, %v2204_v50 }
0x13a5   :  { %v1060_v58 = vmul.f32 %v1059_v55, %v1044_v38  ;;  %v1085_v59 = vmul.f32 %v1059_v55, %v1059_v55 }
0x13a7   :  { %v2723_v60 = vmul.f32 %v1071_v56, %v1060_v58  ;;  %v2725_v61 = vmul.f32 %v1083_v57, %v1060_v58  ;;  %v1086_v62 = vmul.f32 %v1085_v59, %v1046_v39 }
0x13a9   :  { %v1088_v63 = vmul.f32 %v2723_v60, %v2723_v60  ;;  %v1089_v0 = vmul.f32 %v2725_v61, %v2725_v61  ;;  %v1107_v12 = vadd.f32 1e-12, %v1086_v62  ;;  %v1144_v49 = vmul.f32 %v1989_v5, %v2723_v60 }
0x13aa   :  { %v1156_v50 = vmul.f32 %v1989_v5, %v2725_v61 }
0x13ab   :  { %v1090_v4 = vadd.f32 %v1089_v0, %v1088_v63  ;;  %2207 = vrsqrt.f32 %v1107_v12  ;;  %vm1110_vm6 = vcmp.eq.f32.partialorder %v1107_v12, inf  ;;  %v1113_v16 = vand.u32 2147483648, %v1107_v12 }
0x13ac   :  { %vm1112_vm7 = vcmp.eq.f32.partialorder %v1107_v12, 0.0 }
0x13ad   :  { %1096 = vrot.lane.b32.xlu0 %v1090_v4, %s2360_s14 }
0x13b1   :  { %1146 = vrot.lane.b32.xlu0 %v2725_v61, %s2361_s4 }
0x13b5   :  { %1158 = vrot.lane.b32.xlu0 %v2723_v60, %s2361_s4  ;;  %v1990_v60 = vld [vmem:[%s2969_s5 + $0xc] ss:$0 sm:$0xff] }
0x13b8   :  { %v2208_v13 = vpop.eup %2207 }
0x13b9   :  { %v1109_v14 = vmul.f32 %v2208_v13, %v1107_v12 }
0x13bb   :  { %v1111_v15 = vsel %vm1110_vm6, %v1107_v12, %v1109_v14 }
0x13bc   :  { %v1114_v17 = vsel %vm1112_vm7, %v1113_v16, %v1111_v15 }
0x13bd   :  { %v1115_v18 = vmul.f32 0.03162278, %v1114_v17 }
0x13bf   :  { %v1116_v19 = vmax.f32 %v1115_v18, 1e-06 }
0x13c1   :  { %v1117_v20 = vmin.f32 %v1116_v19, 0.99999 }
0x13c3   :  { %v1118_v21 = vadd.f32 1.0, %v1117_v20  ;;  %v1121_v22 = vsub.f32 1.0, %v1117_v20 }
0x13c5   :  { %2209 = vlog2.f32 %v1118_v21 }
0x13c6   :  { %2211 = vlog2.f32 %v1121_v22 }
0x13c7   :  { %2213 = vrcp.f32 %v1117_v20 }
0x13d2   :  { %v2210_v23 = vpop.eup %2209 }
0x13d3   :  { %v2212_v24 = vpop.eup %2211  ;;  %v1120_v25 = vmul.f32 0.6931472, %v2210_v23 }
0x13d4   :  { %v1123_v26 = vmul.f32 0.6931472, %v2212_v24  ;;  %v2214_v32 = vpop.eup %2213 }
0x13d6   :  { %v1124_v28 = vsub.f32 %v1120_v25, %v1123_v26 }
0x13d8   :  { %v1125_v29 = vmul.f32 0.5, %v1124_v28 }
0x13da   :  { %v1127_v33 = vmul.f32 %v2214_v32, %v1125_v29 }
0x13dc   :  { %v1128_v30 = vmul.f32 %v1127_v33, %v1127_v33 }
0x141f   :  { %v1097_v6 = vpop.permute.xlu0 %1096 }
0x1420   :  { %v1099_v46 = vmul.f32 %v1989_v5, %v1097_v6 }
0x1422   :  { %1101 = vrot.lane.b32.xlu1 %v1099_v46, %s2362_s17 }
0x1423   :  { %v1147_v27 = vpop.permute.xlu0 %1146 }
0x1424   :  { %v1149_v7 = vmul.f32 %v1989_v5, %v1147_v27 }
0x1426   :  { %1151 = vrot.lane.b32.xlu1 %v1149_v7, %s2359_s3 }
0x1427   :  { %v1159_v8 = vpop.permute.xlu0 %1158 }
0x1428   :  { %v1161_v9 = vmul.f32 %v1989_v5, %v1159_v8 }
0x142a   :  { %1163 = vrot.lane.b32.xlu1 %v1161_v9, %s2359_s3 }
0x1494   :  { %v1102_v10 = vpop.permute.xlu1 %1101 }
0x1495   :  { %v1104_v11 = vsel %vm173_vm3, %v1102_v10, 0.0 }
0x1496   :  { %1105 = vadd.xlane.f32.xlu0 %v1104_v11 }
0x1498   :  { %v1152_v44 = vpop.permute.xlu1 %1151 }
0x1499   :  { %v1154_v52 = vadd.f32 %v1152_v44, %v1144_v49 }
0x149c   :  { %v1164_v48 = vpop.permute.xlu1 %1163 }
0x149d   :  { %v1166_v53 = vsub.f32 %v1156_v50, %v1164_v48 }
0x151f   :  { %v1106_v31 = vpop.xlane.xlu0 %1105 }
0x1520   :  { %v1129_v37 = vmul.f32 %v1128_v30, %v1106_v31 }
0x1522   :  { %v1130_v38 = vadd.f32 1e-12, %v1129_v37 }
0x1524   :  { %2215 = vrsqrt.f32 %v1130_v38  ;;  %vm1133_vm8 = vcmp.eq.f32.partialorder %v1130_v38, inf  ;;  %v1136_v39 = vand.u32 2147483648, %v1130_v38  ;;  %vm1135_vm9 = vcmp.eq.f32.partialorder %v1130_v38, 0.0 }
0x1531   :  { %v2216_v34 = vpop.eup %2215 }
0x1532   :  { %v1132_v35 = vmul.f32 %v2216_v34, %v1130_v38 }
0x1534   :  { %v1134_v42 = vsel %vm1133_vm8, %v1130_v38, %v1132_v35 }
0x1535   :  { %v1137_v40 = vsel %vm1135_vm9, %v1136_v39, %v1134_v42 }
0x1536   :  { %v1138_v41 = vmul.f32 0.03162278, %v1137_v40 }
0x1538   :  { %v1139_v43 = vmax.f32 %v1138_v41, 1e-06 }
0x153a   :  { %2217 = vtanh.f32 %v1139_v43 }
0x153b   :  { %2219 = vrcp.f32 %v1139_v43 }
0x1547   :  { %v2218_v45 = vpop.eup %2217 }
0x1548   :  { %v2220_v47 = vpop.eup %2219 }
0x1549   :  { %v1142_v51 = vmul.f32 %v2220_v47, %v2218_v45 }
0x154b   :  { %v1143_v54 = vmul.f32 %v1142_v51, %v1127_v33  ;;  %v1168_v55 = vmul.f32 %v1142_v51, %v1142_v51 }
0x154d   :  { %v2745_v56 = vmul.f32 %v1154_v52, %v1143_v54  ;;  %v2747_v57 = vmul.f32 %v1166_v53, %v1143_v54  ;;  %v1169_v58 = vmul.f32 %v1168_v55, %v1129_v37 }
0x154f   :  { %v1171_v59 = vmul.f32 %v2745_v56, %v2745_v56  ;;  %v1172_v62 = vmul.f32 %v2747_v57, %v2747_v57  ;;  %v1190_v8 = vadd.f32 1e-12, %v1169_v58  ;;  %v1227_v44 = vmul.f32 %v1990_v60, %v2745_v56  ;;  %v1991_v58 = vld [vmem:[%s2969_s5 + $0xd] ss:$0 sm:$0xff] }
0x1550   :  { %v1239_v45 = vmul.f32 %v1990_v60, %v2747_v57 }
0x1551   :  { %v1173_v63 = vadd.f32 %v1172_v62, %v1171_v59  ;;  %2221 = vrsqrt.f32 %v1190_v8  ;;  %vm1193_vm10 = vcmp.eq.f32.partialorder %v1190_v8, inf  ;;  %v1196_v12 = vand.u32 2147483648, %v1190_v8 }
0x1552   :  { %vm1195_vm11 = vcmp.eq.f32.partialorder %v1190_v8, 0.0 }
0x1553   :  { %1179 = vrot.lane.b32.xlu1 %v1173_v63, %s2360_s14 }
0x155e   :  { %v2222_v9 = vpop.eup %2221 }
0x155f   :  { %v1192_v10 = vmul.f32 %v2222_v9, %v1190_v8 }
0x1561   :  { %v1194_v11 = vsel %vm1193_vm10, %v1190_v8, %v1192_v10 }
0x1562   :  { %v1197_v13 = vsel %vm1195_vm11, %v1196_v12, %v1194_v11 }
0x1563   :  { %v1198_v14 = vmul.f32 0.03162278, %v1197_v13 }
0x1565   :  { %v1199_v15 = vmax.f32 %v1198_v14, 1e-06 }
0x1567   :  { %v1200_v16 = vmin.f32 %v1199_v15, 0.99999 }
0x1569   :  { %v1201_v17 = vadd.f32 1.0, %v1200_v16  ;;  %v1204_v18 = vsub.f32 1.0, %v1200_v16 }
0x156b   :  { %2223 = vlog2.f32 %v1201_v17 }
0x156c   :  { %2225 = vlog2.f32 %v1204_v18 }
0x156d   :  { %2227 = vrcp.f32 %v1200_v16 }
0x1578   :  { %v2224_v19 = vpop.eup %2223 }
0x1579   :  { %v2226_v20 = vpop.eup %2225  ;;  %v1203_v21 = vmul.f32 0.6931472, %v2224_v19 }
0x157a   :  { %v1206_v22 = vmul.f32 0.6931472, %v2226_v20  ;;  %v2228_v25 = vpop.eup %2227 }
0x157c   :  { %v1207_v23 = vsub.f32 %v1203_v21, %v1206_v22 }
0x157e   :  { %v1208_v24 = vmul.f32 0.5, %v1207_v23 }
0x1580   :  { %v1210_v26 = vmul.f32 %v2228_v25, %v1208_v24 }
0x1582   :  { %v1211_v28 = vmul.f32 %v1210_v26, %v1210_v26 }
0x15c5   :  { %v1180_v61 = vpop.permute.xlu1 %1179 }
0x15c6   :  { %v1182_v0 = vmul.f32 %v1990_v60, %v1180_v61 }
0x15c8   :  { %1184 = vrot.lane.b32.xlu1 %v1182_v0, %s2362_s17 }
0x15cc   :  { %1229 = vrot.lane.b32.xlu1 %v2747_v57, %s2361_s4 }
0x15d0   :  { %1241 = vrot.lane.b32.xlu1 %v2745_v56, %s2361_s4 }
0x163a   :  { %v1185_v4 = vpop.permute.xlu1 %1184 }
0x163b   :  { %v1187_v5 = vsel %vm173_vm3, %v1185_v4, 0.0 }
0x163c   :  { %1188 = vadd.xlane.f32.xlu1 %v1187_v5 }
0x163e   :  { %v1230_v6 = vpop.permute.xlu1 %1229 }
0x163f   :  { %v1232_v46 = vmul.f32 %v1990_v60, %v1230_v6 }
0x1641   :  { %1234 = vrot.lane.b32.xlu0 %v1232_v46, %s2359_s3 }
0x1642   :  { %v1242_v27 = vpop.permute.xlu1 %1241 }
0x1643   :  { %v1244_v7 = vmul.f32 %v1990_v60, %v1242_v27 }
0x1645   :  { %1246 = vrot.lane.b32.xlu0 %v1244_v7, %s2359_s3 }
0x16b3   :  { %v1235_v42 = vpop.permute.xlu0 %1234 }
0x16b4   :  { %v1237_v48 = vadd.f32 %v1235_v42, %v1227_v44 }
0x16b7   :  { %v1247_v43 = vpop.permute.xlu0 %1246 }
0x16b8   :  { %v1249_v49 = vsub.f32 %v1239_v45, %v1247_v43 }
0x16c5   :  { %v1189_v29 = vpop.xlane.xlu1 %1188 }
0x16c6   :  { %v1212_v32 = vmul.f32 %v1211_v28, %v1189_v29 }
0x16c8   :  { %v1213_v33 = vadd.f32 1e-12, %v1212_v32 }
0x16ca   :  { %2229 = vrsqrt.f32 %v1213_v33  ;;  %vm1216_vm12 = vcmp.eq.f32.partialorder %v1213_v33, inf  ;;  %v1219_v37 = vand.u32 2147483648, %v1213_v33  ;;  %vm1218_vm13 = vcmp.eq.f32.partialorder %v1213_v33, 0.0 }
0x16d7   :  { %v2230_v30 = vpop.eup %2229 }
0x16d8   :  { %v1215_v31 = vmul.f32 %v2230_v30, %v1213_v33 }
0x16da   :  { %v1217_v38 = vsel %vm1216_vm12, %v1213_v33, %v1215_v31 }
0x16db   :  { %v1220_v34 = vsel %vm1218_vm13, %v1219_v37, %v1217_v38 }
0x16dc   :  { %v1221_v35 = vmul.f32 0.03162278, %v1220_v34 }
0x16de   :  { %v1222_v39 = vmax.f32 %v1221_v35, 1e-06 }
0x16e0   :  { %2231 = vtanh.f32 %v1222_v39 }
0x16e1   :  { %2233 = vrcp.f32 %v1222_v39 }
0x16ed   :  { %v2232_v40 = vpop.eup %2231 }
0x16ee   :  { %v2234_v41 = vpop.eup %2233 }
0x16ef   :  { %v1225_v47 = vmul.f32 %v2234_v41, %v2232_v40 }
0x16f1   :  { %v1251_v50 = vmul.f32 %v1225_v47, %v1225_v47  ;;  %v1226_v51 = vmul.f32 %v1225_v47, %v1210_v26 }
0x16f3   :  { %v1252_v52 = vmul.f32 %v1251_v50, %v1212_v32  ;;  %v2767_v53 = vmul.f32 %v1237_v48, %v1226_v51  ;;  %v2769_v54 = vmul.f32 %v1249_v49, %v1226_v51 }
0x16f5   :  { %1324 = vrot.lane.b32.xlu1 %v2767_v53, %s2361_s4  ;;  %v1254_v55 = vmul.f32 %v2767_v53, %v2767_v53  ;;  %v1255_v56 = vmul.f32 %v2769_v54, %v2769_v54  ;;  %v1273_v6 = vadd.f32 1e-12, %v1252_v52  ;;  %v1310_v42 = vmul.f32 %v1991_v58, %v2767_v53 }
0x16f6   :  { %v1322_v40 = vmul.f32 %v1991_v58, %v2769_v54 }
0x16f7   :  { %v1256_v57 = vadd.f32 %v1255_v56, %v1254_v55  ;;  %2235 = vrsqrt.f32 %v1273_v6  ;;  %vm1276_vm14 = vcmp.eq.f32.partialorder %v1273_v6, inf  ;;  %v1279_v8 = vand.u32 2147483648, %v1273_v6 }
0x16f8   :  { %vm1278_vm15 = vcmp.eq.f32.partialorder %v1273_v6, 0.0 }
0x16f9   :  { %1262 = vrot.lane.b32.xlu0 %v1256_v57, %s2360_s14 }
0x1704   :  { %v2236_v46 = vpop.eup %2235 }
0x1705   :  { %v1275_v27 = vmul.f32 %v2236_v46, %v1273_v6 }
0x1707   :  { %v1277_v7 = vsel %vm1276_vm14, %v1273_v6, %v1275_v27 }
0x1708   :  { %v1280_v9 = vsel %vm1278_vm15, %v1279_v8, %v1277_v7 }
0x1709   :  { %v1281_v10 = vmul.f32 0.03162278, %v1280_v9 }
0x170b   :  { %v1282_v11 = vmax.f32 %v1281_v10, 1e-06 }
0x170d   :  { %v1283_v12 = vmin.f32 %v1282_v11, 0.99999 }
0x170f   :  { %v1284_v13 = vadd.f32 1.0, %v1283_v12  ;;  %v1287_v14 = vsub.f32 1.0, %v1283_v12 }
0x1711   :  { %2237 = vlog2.f32 %v1284_v13 }
0x1712   :  { %2239 = vlog2.f32 %v1287_v14 }
0x1713   :  { %2241 = vrcp.f32 %v1283_v12 }
0x171e   :  { %v2238_v15 = vpop.eup %2237 }
0x171f   :  { %v2240_v16 = vpop.eup %2239  ;;  %v1286_v17 = vmul.f32 0.6931472, %v2238_v15 }
0x1720   :  { %v1289_v18 = vmul.f32 0.6931472, %v2240_v16  ;;  %v2242_v21 = vpop.eup %2241 }
0x1722   :  { %v1290_v19 = vsub.f32 %v1286_v17, %v1289_v18 }
0x1724   :  { %v1291_v20 = vmul.f32 0.5, %v1290_v19 }
0x1726   :  { %v1293_v22 = vmul.f32 %v2242_v21, %v1291_v20 }
0x1728   :  { %v1294_v23 = vmul.f32 %v1293_v22, %v1293_v22 }
0x1767   :  { %v1325_v4 = vpop.permute.xlu1 %1324 }
0x1768   :  { %v1327_v5 = vmul.f32 %v1991_v58, %v1325_v4 }
0x176b   :  { %v1263_v59 = vpop.permute.xlu0 %1262 }
0x176c   :  { %v1265_v62 = vmul.f32 %v1991_v58, %v1263_v59 }
0x176e   :  { %1267 = vrot.lane.b32.xlu0 %v1265_v62, %s2362_s17 }
0x1772   :  { %1312 = vrot.lane.b32.xlu0 %v2769_v54, %s2361_s4  ;;  %v1992_v54 = vld [vmem:[%s2969_s5 + $0xe] ss:$0 sm:$0xff] }
0x17e0   :  { %v1268_v63 = vpop.permute.xlu0 %1267 }
0x17e1   :  { %v1270_v60 = vsel %vm173_vm3, %v1268_v63, 0.0 }
0x17e2   :  { %1271 = vadd.xlane.f32.xlu0 %v1270_v60 }
0x17e4   :  { %v1313_v61 = vpop.permute.xlu0 %1312 }
0x17e5   :  { %v1315_v0 = vmul.f32 %v1991_v58, %v1313_v61 }
0x17e7   :  { %1317 = vrot.lane.b32.xlu1 %v1315_v0, %s2359_s3 }
0x17eb   :  { %1329 = vrot.lane.b32.xlu1 %v1327_v5, %s2359_s3 }
0x1859   :  { %v1318_v38 = vpop.permute.xlu1 %1317 }
0x185a   :  { %v1320_v43 = vadd.f32 %v1318_v38, %v1310_v42 }
0x185d   :  { %v1330_v39 = vpop.permute.xlu1 %1329 }
0x185e   :  { %v1332_v44 = vsub.f32 %v1322_v40, %v1330_v39 }
0x186b   :  { %v1272_v24 = vpop.xlane.xlu0 %1271 }
0x186c   :  { %v1295_v25 = vmul.f32 %v1294_v23, %v1272_v24 }
0x186e   :  { %v1296_v26 = vadd.f32 1e-12, %v1295_v25 }
0x1870   :  { %2243 = vrsqrt.f32 %v1296_v26  ;;  %vm1299_vm0 = vcmp.eq.f32.partialorder %v1296_v26, inf  ;;  %v1302_v32 = vand.u32 2147483648, %v1296_v26  ;;  %vm1301_vm1 = vcmp.eq.f32.partialorder %v1296_v26, 0.0 }
0x187d   :  { %v2244_v28 = vpop.eup %2243 }
0x187e   :  { %v1298_v29 = vmul.f32 %v2244_v28, %v1296_v26 }
0x1880   :  { %v1300_v33 = vsel %vm1299_vm0, %v1296_v26, %v1298_v29 }
0x1881   :  { %v1303_v30 = vsel %vm1301_vm1, %v1302_v32, %v1300_v33 }
0x1882   :  { %v1304_v31 = vmul.f32 0.03162278, %v1303_v30 }
0x1884   :  { %v1305_v37 = vmax.f32 %v1304_v31, 1e-06 }
0x1886   :  { %2245 = vtanh.f32 %v1305_v37 }
0x1887   :  { %2247 = vrcp.f32 %v1305_v37 }
0x1893   :  { %v2246_v34 = vpop.eup %2245 }
0x1894   :  { %v2248_v35 = vpop.eup %2247 }
0x1895   :  { %v1308_v41 = vmul.f32 %v2248_v35, %v2246_v34 }
0x1897   :  { %v1309_v45 = vmul.f32 %v1308_v41, %v1293_v22  ;;  %v1334_v47 = vmul.f32 %v1308_v41, %v1308_v41 }
0x1899   :  { %v2789_v48 = vmul.f32 %v1332_v44, %v1309_v45  ;;  %v1335_v49 = vmul.f32 %v1334_v47, %v1295_v25  ;;  %v2791_v50 = vmul.f32 %v1320_v43, %v1309_v45 }
0x189b   :  { %1407 = vrot.lane.b32.xlu0 %v2791_v50, %s2361_s4  ;;  %v1337_v51 = vmul.f32 %v2791_v50, %v2791_v50  ;;  %v1338_v52 = vmul.f32 %v2789_v48, %v2789_v48  ;;  %v1356_v61 = vadd.f32 1e-12, %v1335_v49  ;;  %v1393_v38 = vmul.f32 %v1992_v54, %v2791_v50  ;;  %v1993_v50 = vld [vmem:[%s2969_s5 + $0xf] ss:$0 sm:$0xff] }
0x189c   :  { %v1405_v34 = vmul.f32 %v1992_v54, %v2789_v48 }
0x189d   :  { %v1339_v53 = vadd.f32 %v1338_v52, %v1337_v51  ;;  %2249 = vrsqrt.f32 %v1356_v61  ;;  %vm1359_vm4 = vcmp.eq.f32.partialorder %v1356_v61, inf  ;;  %v1362_v6 = vand.u32 2147483648, %v1356_v61 }
0x189e   :  { %vm1361_vm5 = vcmp.eq.f32.partialorder %v1356_v61, 0.0 }
0x189f   :  { %1345 = vrot.lane.b32.xlu1 %v1339_v53, %s2360_s14 }
0x18aa   :  { %v2250_v0 = vpop.eup %2249 }
0x18ab   :  { %v1358_v4 = vmul.f32 %v2250_v0, %v1356_v61 }
0x18ad   :  { %v1360_v5 = vsel %vm1359_vm4, %v1356_v61, %v1358_v4 }
0x18ae   :  { %v1363_v46 = vsel %vm1361_vm5, %v1362_v6, %v1360_v5 }
0x18af   :  { %v1364_v27 = vmul.f32 0.03162278, %v1363_v46 }
0x18b1   :  { %v1365_v7 = vmax.f32 %v1364_v27, 1e-06 }
0x18b3   :  { %v1366_v8 = vmin.f32 %v1365_v7, 0.99999 }
0x18b5   :  { %v1367_v9 = vadd.f32 1.0, %v1366_v8  ;;  %v1370_v10 = vsub.f32 1.0, %v1366_v8 }
0x18b7   :  { %2251 = vlog2.f32 %v1367_v9 }
0x18b8   :  { %2253 = vlog2.f32 %v1370_v10 }
0x18b9   :  { %2255 = vrcp.f32 %v1366_v8 }
0x18c4   :  { %v2252_v11 = vpop.eup %2251 }
0x18c5   :  { %v2254_v12 = vpop.eup %2253  ;;  %v1369_v13 = vmul.f32 0.6931472, %v2252_v11 }
0x18c6   :  { %v1372_v14 = vmul.f32 0.6931472, %v2254_v12  ;;  %v2256_v17 = vpop.eup %2255 }
0x18c8   :  { %v1373_v15 = vsub.f32 %v1369_v13, %v1372_v14 }
0x18ca   :  { %v1374_v16 = vmul.f32 0.5, %v1373_v15 }
0x18cc   :  { %v1376_v18 = vmul.f32 %v2256_v17, %v1374_v16 }
0x18ce   :  { %v1377_v19 = vmul.f32 %v1376_v18, %v1376_v18 }
0x190d   :  { %v1408_v63 = vpop.permute.xlu0 %1407 }
0x190e   :  { %v1410_v60 = vmul.f32 %v1992_v54, %v1408_v63 }
0x1911   :  { %v1346_v55 = vpop.permute.xlu1 %1345 }
0x1912   :  { %v1348_v56 = vmul.f32 %v1992_v54, %v1346_v55 }
0x1914   :  { %1350 = vrot.lane.b32.xlu1 %v1348_v56, %s2362_s17 }
0x1918   :  { %1395 = vrot.lane.b32.xlu1 %v2789_v48, %s2361_s4 }
0x1986   :  { %v1351_v57 = vpop.permute.xlu1 %1350 }
0x1987   :  { %v1353_v58 = vsel %vm173_vm3, %v1351_v57, 0.0 }
0x1988   :  { %1354 = vadd.xlane.f32.xlu1 %v1353_v58 }
0x198a   :  { %v1396_v59 = vpop.permute.xlu1 %1395 }
0x198b   :  { %v1398_v62 = vmul.f32 %v1992_v54, %v1396_v59 }
0x198d   :  { %1400 = vrot.lane.b32.xlu0 %v1398_v62, %s2359_s3 }
0x1991   :  { %1412 = vrot.lane.b32.xlu0 %v1410_v60, %s2359_s3 }
0x19ff   :  { %v1401_v33 = vpop.permute.xlu0 %1400 }
0x1a00   :  { %v1403_v39 = vadd.f32 %v1401_v33, %v1393_v38 }
0x1a03   :  { %v1413_v37 = vpop.permute.xlu0 %1412 }
0x1a04   :  { %v1415_v42 = vsub.f32 %v1405_v34, %v1413_v37 }
0x1a11   :  { %v1355_v20 = vpop.xlane.xlu1 %1354 }
0x1a12   :  { %v1378_v21 = vmul.f32 %v1377_v19, %v1355_v20 }
0x1a14   :  { %v1379_v22 = vadd.f32 1e-12, %v1378_v21 }
0x1a16   :  { %2257 = vrsqrt.f32 %v1379_v22  ;;  %vm1382_vm6 = vcmp.eq.f32.partialorder %v1379_v22, inf  ;;  %v1385_v25 = vand.u32 2147483648, %v1379_v22  ;;  %vm1384_vm7 = vcmp.eq.f32.partialorder %v1379_v22, 0.0 }
0x1a23   :  { %v2258_v23 = vpop.eup %2257 }
0x1a24   :  { %v1381_v24 = vmul.f32 %v2258_v23, %v1379_v22 }
0x1a26   :  { %v1383_v26 = vsel %vm1382_vm6, %v1379_v22, %v1381_v24 }
0x1a27   :  { %v1386_v28 = vsel %vm1384_vm7, %v1385_v25, %v1383_v26 }
0x1a28   :  { %v1387_v29 = vmul.f32 0.03162278, %v1386_v28 }
0x1a2a   :  { %v1388_v32 = vmax.f32 %v1387_v29, 1e-06 }
0x1a2c   :  { %2259 = vtanh.f32 %v1388_v32 }
0x1a2d   :  { %2261 = vrcp.f32 %v1388_v32 }
0x1a39   :  { %v2260_v30 = vpop.eup %2259 }
0x1a3a   :  { %v2262_v31 = vpop.eup %2261 }
0x1a3b   :  { %v1391_v35 = vmul.f32 %v2262_v31, %v2260_v30 }
0x1a3d   :  { %v1392_v40 = vmul.f32 %v1391_v35, %v1376_v18  ;;  %v1417_v41 = vmul.f32 %v1391_v35, %v1391_v35 }
0x1a3f   :  { %v2811_v43 = vmul.f32 %v1415_v42, %v1392_v40  ;;  %v1418_v44 = vmul.f32 %v1417_v41, %v1378_v21  ;;  %v2813_v45 = vmul.f32 %v1403_v39, %v1392_v40 }
0x1a41   :  { %1490 = vrot.lane.b32.xlu1 %v2813_v45, %s2361_s4  ;;  %v1420_v47 = vmul.f32 %v2813_v45, %v2813_v45  ;;  %v1421_v49 = vmul.f32 %v2811_v43, %v2811_v43  ;;  %v1439_v59 = vadd.f32 1e-12, %v1418_v44  ;;  %v1476_v33 = vmul.f32 %v1993_v50, %v2813_v45  ;;  %v1994_v45 = vld [vmem:[%s2969_s5 + $0x10] ss:$0 sm:$0xff] }
0x1a42   :  { %v1488_v30 = vmul.f32 %v1993_v50, %v2811_v43 }
0x1a43   :  { %v1422_v48 = vadd.f32 %v1421_v49, %v1420_v47  ;;  %2263 = vrsqrt.f32 %v1439_v59  ;;  %vm1442_vm8 = vcmp.eq.f32.partialorder %v1439_v59, inf  ;;  %v1445_v61 = vand.u32 2147483648, %v1439_v59 }
0x1a44   :  { %vm1444_vm9 = vcmp.eq.f32.partialorder %v1439_v59, 0.0 }
0x1a45   :  { %1428 = vrot.lane.b32.xlu0 %v1422_v48, %s2360_s14 }
0x1a50   :  { %v2264_v62 = vpop.eup %2263 }
0x1a51   :  { %v1441_v63 = vmul.f32 %v2264_v62, %v1439_v59 }
0x1a53   :  { %v1443_v60 = vsel %vm1442_vm8, %v1439_v59, %v1441_v63 }
0x1a54   :  { %v1446_v0 = vsel %vm1444_vm9, %v1445_v61, %v1443_v60 }
0x1a55   :  { %v1447_v4 = vmul.f32 0.03162278, %v1446_v0 }
0x1a57   :  { %v1448_v5 = vmax.f32 %v1447_v4, 1e-06 }
0x1a59   :  { %v1449_v6 = vmin.f32 %v1448_v5, 0.99999 }
0x1a5b   :  { %v1450_v46 = vadd.f32 1.0, %v1449_v6  ;;  %v1453_v27 = vsub.f32 1.0, %v1449_v6 }
0x1a5d   :  { %2265 = vlog2.f32 %v1450_v46 }
0x1a5e   :  { %2267 = vlog2.f32 %v1453_v27 }
0x1a5f   :  { %2269 = vrcp.f32 %v1449_v6 }
0x1a6a   :  { %v2266_v7 = vpop.eup %2265 }
0x1a6b   :  { %v2268_v8 = vpop.eup %2267  ;;  %v1452_v9 = vmul.f32 0.6931472, %v2266_v7 }
0x1a6c   :  { %v1455_v10 = vmul.f32 0.6931472, %v2268_v8  ;;  %v2270_v13 = vpop.eup %2269 }
0x1a6e   :  { %v1456_v11 = vsub.f32 %v1452_v9, %v1455_v10 }
0x1a70   :  { %v1457_v12 = vmul.f32 0.5, %v1456_v11 }
0x1a72   :  { %v1459_v14 = vmul.f32 %v2270_v13, %v1457_v12 }
0x1a74   :  { %v1460_v15 = vmul.f32 %v1459_v14, %v1459_v14 }
0x1ab3   :  { %v1491_v57 = vpop.permute.xlu1 %1490 }
0x1ab4   :  { %v1493_v58 = vmul.f32 %v1993_v50, %v1491_v57 }
0x1ab7   :  { %v1429_v51 = vpop.permute.xlu0 %1428 }
0x1ab8   :  { %v1431_v52 = vmul.f32 %v1993_v50, %v1429_v51 }
0x1aba   :  { %1433 = vrot.lane.b32.xlu0 %v1431_v52, %s2362_s17 }
0x1abe   :  { %1478 = vrot.lane.b32.xlu0 %v2811_v43, %s2361_s4 }
0x1b2c   :  { %v1434_v53 = vpop.permute.xlu0 %1433 }
0x1b2d   :  { %v1436_v54 = vsel %vm173_vm3, %v1434_v53, 0.0 }
0x1b2e   :  { %1437 = vadd.xlane.f32.xlu0 %v1436_v54 }
0x1b30   :  { %v1479_v55 = vpop.permute.xlu0 %1478 }
0x1b31   :  { %v1481_v56 = vmul.f32 %v1993_v50, %v1479_v55 }
0x1b33   :  { %1483 = vrot.lane.b32.xlu1 %v1481_v56, %s2359_s3 }
0x1b37   :  { %1495 = vrot.lane.b32.xlu1 %v1493_v58, %s2359_s3 }
0x1ba5   :  { %v1484_v26 = vpop.permute.xlu1 %1483 }
0x1ba6   :  { %v1486_v37 = vadd.f32 %v1484_v26, %v1476_v33 }
0x1ba9   :  { %v1496_v32 = vpop.permute.xlu1 %1495 }
0x1baa   :  { %v1498_v38 = vsub.f32 %v1488_v30, %v1496_v32 }
0x1bb7   :  { %v1438_v16 = vpop.xlane.xlu0 %1437 }
0x1bb8   :  { %v1461_v17 = vmul.f32 %v1460_v15, %v1438_v16 }
0x1bba   :  { %v1462_v18 = vadd.f32 1e-12, %v1461_v17 }
0x1bbc   :  { %2271 = vrsqrt.f32 %v1462_v18  ;;  %vm1465_vm10 = vcmp.eq.f32.partialorder %v1462_v18, inf  ;;  %v1468_v21 = vand.u32 2147483648, %v1462_v18  ;;  %vm1467_vm11 = vcmp.eq.f32.partialorder %v1462_v18, 0.0 }
0x1bc9   :  { %v2272_v19 = vpop.eup %2271 }
0x1bca   :  { %v1464_v20 = vmul.f32 %v2272_v19, %v1462_v18 }
0x1bcc   :  { %v1466_v22 = vsel %vm1465_vm10, %v1462_v18, %v1464_v20 }
0x1bcd   :  { %v1469_v23 = vsel %vm1467_vm11, %v1468_v21, %v1466_v22 }
0x1bce   :  { %v1470_v24 = vmul.f32 0.03162278, %v1469_v23 }
0x1bd0   :  { %v1471_v25 = vmax.f32 %v1470_v24, 1e-06 }
0x1bd2   :  { %2273 = vtanh.f32 %v1471_v25 }
0x1bd3   :  { %2275 = vrcp.f32 %v1471_v25 }
0x1bdf   :  { %v2274_v28 = vpop.eup %2273 }
0x1be0   :  { %v2276_v29 = vpop.eup %2275 }
0x1be1   :  { %v1474_v31 = vmul.f32 %v2276_v29, %v2274_v28 }
0x1be3   :  { %v1475_v34 = vmul.f32 %v1474_v31, %v1459_v14  ;;  %v1500_v35 = vmul.f32 %v1474_v31, %v1474_v31 }
0x1be5   :  { %v2833_v39 = vmul.f32 %v1498_v38, %v1475_v34  ;;  %v1501_v42 = vmul.f32 %v1500_v35, %v1461_v17  ;;  %v2835_v40 = vmul.f32 %v1486_v37, %v1475_v34 }
0x1be7   :  { %1573 = vrot.lane.b32.xlu0 %v2835_v40, %s2361_s4  ;;  %v1503_v41 = vmul.f32 %v2835_v40, %v2835_v40  ;;  %v1504_v44 = vmul.f32 %v2833_v39, %v2833_v39  ;;  %v1522_v55 = vadd.f32 1e-12, %v1501_v42  ;;  %v1559_v26 = vmul.f32 %v1994_v45, %v2835_v40  ;;  %v1995_v40 = vld [vmem:[%s2969_s5 + $0x11] ss:$0 sm:$0xff] }
0x1be8   :  { %v1571_v28 = vmul.f32 %v1994_v45, %v2833_v39 }
0x1be9   :  { %v1505_v43 = vadd.f32 %v1504_v44, %v1503_v41  ;;  %2277 = vrsqrt.f32 %v1522_v55  ;;  %vm1525_vm12 = vcmp.eq.f32.partialorder %v1522_v55, inf  ;;  %v1528_v59 = vand.u32 2147483648, %v1522_v55 }
0x1bea   :  { %vm1527_vm13 = vcmp.eq.f32.partialorder %v1522_v55, 0.0 }
0x1beb   :  { %1511 = vrot.lane.b32.xlu1 %v1505_v43, %s2360_s14 }
0x1bf6   :  { %v2278_v56 = vpop.eup %2277 }
0x1bf7   :  { %v1524_v57 = vmul.f32 %v2278_v56, %v1522_v55 }
0x1bf9   :  { %v1526_v58 = vsel %vm1525_vm12, %v1522_v55, %v1524_v57 }
0x1bfa   :  { %v1529_v62 = vsel %vm1527_vm13, %v1528_v59, %v1526_v58 }
0x1bfb   :  { %v1530_v63 = vmul.f32 0.03162278, %v1529_v62 }
0x1bfd   :  { %v1531_v60 = vmax.f32 %v1530_v63, 1e-06 }
0x1bff   :  { %v1532_v61 = vmin.f32 %v1531_v60, 0.99999 }
0x1c01   :  { %v1533_v0 = vadd.f32 1.0, %v1532_v61  ;;  %v1536_v4 = vsub.f32 1.0, %v1532_v61 }
0x1c03   :  { %2279 = vlog2.f32 %v1533_v0 }
0x1c04   :  { %2281 = vlog2.f32 %v1536_v4 }
0x1c05   :  { %2283 = vrcp.f32 %v1532_v61 }
0x1c10   :  { %v2280_v5 = vpop.eup %2279 }
0x1c11   :  { %v2282_v6 = vpop.eup %2281  ;;  %v1535_v46 = vmul.f32 0.6931472, %v2280_v5 }
0x1c12   :  { %v1538_v27 = vmul.f32 0.6931472, %v2282_v6  ;;  %v2284_v9 = vpop.eup %2283 }
0x1c14   :  { %v1539_v7 = vsub.f32 %v1535_v46, %v1538_v27 }
0x1c16   :  { %v1540_v8 = vmul.f32 0.5, %v1539_v7 }
0x1c18   :  { %v1542_v10 = vmul.f32 %v2284_v9, %v1540_v8 }
0x1c1a   :  { %v1543_v11 = vmul.f32 %v1542_v10, %v1542_v10 }
0x1c59   :  { %v1574_v53 = vpop.permute.xlu0 %1573 }
0x1c5a   :  { %v1576_v54 = vmul.f32 %v1994_v45, %v1574_v53 }
0x1c5d   :  { %v1512_v47 = vpop.permute.xlu1 %1511 }
0x1c5e   :  { %v1514_v49 = vmul.f32 %v1994_v45, %v1512_v47 }
0x1c60   :  { %1516 = vrot.lane.b32.xlu1 %v1514_v49, %s2362_s17 }
0x1c64   :  { %1561 = vrot.lane.b32.xlu1 %v2833_v39, %s2361_s4 }
0x1cd2   :  { %v1517_v48 = vpop.permute.xlu1 %1516 }
0x1cd3   :  { %v1519_v50 = vsel %vm173_vm3, %v1517_v48, 0.0 }
0x1cd4   :  { %1520 = vadd.xlane.f32.xlu1 %v1519_v50 }
0x1cd6   :  { %v1562_v51 = vpop.permute.xlu1 %1561 }
0x1cd7   :  { %v1564_v52 = vmul.f32 %v1994_v45, %v1562_v51 }
0x1cd9   :  { %1566 = vrot.lane.b32.xlu0 %v1564_v52, %s2359_s3 }
0x1cdd   :  { %1578 = vrot.lane.b32.xlu0 %v1576_v54, %s2359_s3 }
0x1d4b   :  { %v1567_v22 = vpop.permute.xlu0 %1566 }
0x1d4c   :  { %v1569_v32 = vadd.f32 %v1567_v22, %v1559_v26 }
0x1d4f   :  { %v1579_v25 = vpop.permute.xlu0 %1578 }
0x1d50   :  { %v1581_v33 = vsub.f32 %v1571_v28, %v1579_v25 }
0x1d5d   :  { %v1521_v12 = vpop.xlane.xlu1 %1520 }
0x1d5e   :  { %v1544_v13 = vmul.f32 %v1543_v11, %v1521_v12 }
0x1d60   :  { %v1545_v14 = vadd.f32 1e-12, %v1544_v13 }
0x1d62   :  { %2285 = vrsqrt.f32 %v1545_v14  ;;  %vm1548_vm14 = vcmp.eq.f32.partialorder %v1545_v14, inf  ;;  %v1551_v17 = vand.u32 2147483648, %v1545_v14  ;;  %vm1550_vm15 = vcmp.eq.f32.partialorder %v1545_v14, 0.0 }
0x1d6f   :  { %v2286_v15 = vpop.eup %2285 }
0x1d70   :  { %v1547_v16 = vmul.f32 %v2286_v15, %v1545_v14 }
0x1d72   :  { %v1549_v18 = vsel %vm1548_vm14, %v1545_v14, %v1547_v16 }
0x1d73   :  { %v1552_v19 = vsel %vm1550_vm15, %v1551_v17, %v1549_v18 }
0x1d74   :  { %v1553_v20 = vmul.f32 0.03162278, %v1552_v19 }
0x1d76   :  { %v1554_v21 = vmax.f32 %v1553_v20, 1e-06 }
0x1d78   :  { %2287 = vtanh.f32 %v1554_v21 }
0x1d79   :  { %2289 = vrcp.f32 %v1554_v21 }
0x1d85   :  { %v2288_v23 = vpop.eup %2287 }
0x1d86   :  { %v2290_v24 = vpop.eup %2289 }
0x1d87   :  { %v1557_v29 = vmul.f32 %v2290_v24, %v2288_v23 }
0x1d89   :  { %v1558_v30 = vmul.f32 %v1557_v29, %v1542_v10  ;;  %v1583_v31 = vmul.f32 %v1557_v29, %v1557_v29 }
0x1d8b   :  { %v2855_v37 = vmul.f32 %v1581_v33, %v1558_v30  ;;  %v1584_v38 = vmul.f32 %v1583_v31, %v1544_v13  ;;  %v2857_v34 = vmul.f32 %v1569_v32, %v1558_v30 }
0x1d8d   :  { %1656 = vrot.lane.b32.xlu1 %v2857_v34, %s2361_s4  ;;  %v1586_v35 = vmul.f32 %v2857_v34, %v2857_v34  ;;  %v1587_v42 = vmul.f32 %v2855_v37, %v2855_v37  ;;  %v1605_v51 = vadd.f32 1e-12, %v1584_v38  ;;  %v1642_v22 = vmul.f32 %v1995_v40, %v2857_v34  ;;  %v1996_v34 = vld [vmem:[%s2969_s5 + $0x12] ss:$0 sm:$0xff] }
0x1d8e   :  { %v1654_v23 = vmul.f32 %v1995_v40, %v2855_v37 }
0x1d8f   :  { %v1588_v39 = vadd.f32 %v1587_v42, %v1586_v35  ;;  %2291 = vrsqrt.f32 %v1605_v51  ;;  %vm1608_vm0 = vcmp.eq.f32.partialorder %v1605_v51, inf  ;;  %v1611_v55 = vand.u32 2147483648, %v1605_v51 }
0x1d90   :  { %vm1610_vm1 = vcmp.eq.f32.partialorder %v1605_v51, 0.0 }
0x1d91   :  { %1594 = vrot.lane.b32.xlu0 %v1588_v39, %s2360_s14 }
0x1d9c   :  { %v2292_v52 = vpop.eup %2291 }
0x1d9d   :  { %v1607_v53 = vmul.f32 %v2292_v52, %v1605_v51 }
0x1d9f   :  { %v1609_v54 = vsel %vm1608_vm0, %v1605_v51, %v1607_v53 }
0x1da0   :  { %v1612_v56 = vsel %vm1610_vm1, %v1611_v55, %v1609_v54 }
0x1da1   :  { %v1613_v57 = vmul.f32 0.03162278, %v1612_v56 }
0x1da3   :  { %v1614_v58 = vmax.f32 %v1613_v57, 1e-06 }
0x1da5   :  { %v1615_v59 = vmin.f32 %v1614_v58, 0.99999 }
0x1da7   :  { %v1616_v62 = vadd.f32 1.0, %v1615_v59  ;;  %v1619_v63 = vsub.f32 1.0, %v1615_v59 }
0x1da9   :  { %2293 = vlog2.f32 %v1616_v62 }
0x1daa   :  { %2295 = vlog2.f32 %v1619_v63 }
0x1dab   :  { %2297 = vrcp.f32 %v1615_v59 }
0x1db6   :  { %v2294_v60 = vpop.eup %2293 }
0x1db7   :  { %v2296_v61 = vpop.eup %2295  ;;  %v1618_v0 = vmul.f32 0.6931472, %v2294_v60 }
0x1db8   :  { %v1621_v4 = vmul.f32 0.6931472, %v2296_v61  ;;  %v2298_v46 = vpop.eup %2297 }
0x1dba   :  { %v1622_v5 = vsub.f32 %v1618_v0, %v1621_v4 }
0x1dbc   :  { %v1623_v6 = vmul.f32 0.5, %v1622_v5 }
0x1dbe   :  { %v1625_v27 = vmul.f32 %v2298_v46, %v1623_v6 }
0x1dc0   :  { %v1626_v7 = vmul.f32 %v1625_v27, %v1625_v27 }
0x1dff   :  { %v1657_v48 = vpop.permute.xlu1 %1656 }
0x1e00   :  { %v1659_v50 = vmul.f32 %v1995_v40, %v1657_v48 }
0x1e03   :  { %v1595_v41 = vpop.permute.xlu0 %1594 }
0x1e04   :  { %v1597_v44 = vmul.f32 %v1995_v40, %v1595_v41 }
0x1e06   :  { %1599 = vrot.lane.b32.xlu0 %v1597_v44, %s2362_s17 }
0x1e0a   :  { %1644 = vrot.lane.b32.xlu0 %v2855_v37, %s2361_s4 }
0x1e78   :  { %v1600_v43 = vpop.permute.xlu0 %1599 }
0x1e79   :  { %v1602_v45 = vsel %vm173_vm3, %v1600_v43, 0.0 }
0x1e7a   :  { %1603 = vadd.xlane.f32.xlu0 %v1602_v45 }
0x1e7c   :  { %v1645_v47 = vpop.permute.xlu0 %1644 }
0x1e7d   :  { %v1647_v49 = vmul.f32 %v1995_v40, %v1645_v47 }
0x1e7f   :  { %1649 = vrot.lane.b32.xlu1 %v1647_v49, %s2359_s3 }
0x1e83   :  { %1661 = vrot.lane.b32.xlu1 %v1659_v50, %s2359_s3 }
0x1ef1   :  { %v1650_v18 = vpop.permute.xlu1 %1649 }
0x1ef2   :  { %v1652_v25 = vadd.f32 %v1650_v18, %v1642_v22 }
0x1ef5   :  { %v1662_v21 = vpop.permute.xlu1 %1661 }
0x1ef6   :  { %v1664_v26 = vsub.f32 %v1654_v23, %v1662_v21 }
0x1f03   :  { %v1604_v8 = vpop.xlane.xlu0 %1603 }
0x1f04   :  { %v1627_v9 = vmul.f32 %v1626_v7, %v1604_v8 }
0x1f06   :  { %v1628_v10 = vadd.f32 1e-12, %v1627_v9 }
0x1f08   :  { %2299 = vrsqrt.f32 %v1628_v10  ;;  %vm1631_vm4 = vcmp.eq.f32.partialorder %v1628_v10, inf  ;;  %v1634_v13 = vand.u32 2147483648, %v1628_v10  ;;  %vm1633_vm5 = vcmp.eq.f32.partialorder %v1628_v10, 0.0 }
0x1f15   :  { %v2300_v11 = vpop.eup %2299 }
0x1f16   :  { %v1630_v12 = vmul.f32 %v2300_v11, %v1628_v10 }
0x1f18   :  { %v1632_v14 = vsel %vm1631_vm4, %v1628_v10, %v1630_v12 }
0x1f19   :  { %v1635_v15 = vsel %vm1633_vm5, %v1634_v13, %v1632_v14 }
0x1f1a   :  { %v1636_v16 = vmul.f32 0.03162278, %v1635_v15 }
0x1f1c   :  { %v1637_v17 = vmax.f32 %v1636_v16, 1e-06 }
0x1f1e   :  { %2301 = vtanh.f32 %v1637_v17 }
0x1f1f   :  { %2303 = vrcp.f32 %v1637_v17 }
0x1f2b   :  { %v2302_v19 = vpop.eup %2301 }
0x1f2c   :  { %v2304_v20 = vpop.eup %2303 }
0x1f2d   :  { %v1640_v24 = vmul.f32 %v2304_v20, %v2302_v19 }
0x1f2f   :  { %v1641_v28 = vmul.f32 %v1640_v24, %v1625_v27  ;;  %v1666_v29 = vmul.f32 %v1640_v24, %v1640_v24 }
0x1f31   :  { %v2877_v32 = vmul.f32 %v1664_v26, %v1641_v28  ;;  %v1667_v33 = vmul.f32 %v1666_v29, %v1627_v9  ;;  %v2879_v30 = vmul.f32 %v1652_v25, %v1641_v28 }
0x1f33   :  { %1739 = vrot.lane.b32.xlu0 %v2879_v30, %s2361_s4  ;;  %v1669_v31 = vmul.f32 %v2879_v30, %v2879_v30  ;;  %v1670_v38 = vmul.f32 %v2877_v32, %v2877_v32  ;;  %v1688_v47 = vadd.f32 1e-12, %v1667_v33  ;;  %v1725_v18 = vmul.f32 %v1996_v34, %v2879_v30 }
0x1f34   :  { %v1737_v19 = vmul.f32 %v1996_v34, %v2877_v32 }
0x1f35   :  { %v1671_v37 = vadd.f32 %v1670_v38, %v1669_v31  ;;  %2305 = vrsqrt.f32 %v1688_v47  ;;  %vm1691_vm6 = vcmp.eq.f32.partialorder %v1688_v47, inf  ;;  %v1694_v51 = vand.u32 2147483648, %v1688_v47 }
0x1f36   :  { %vm1693_vm7 = vcmp.eq.f32.partialorder %v1688_v47, 0.0 }
0x1f37   :  { %1677 = vrot.lane.b32.xlu1 %v1671_v37, %s2360_s14 }
0x1f42   :  { %v2306_v49 = vpop.eup %2305 }
0x1f43   :  { %v1690_v48 = vmul.f32 %v2306_v49, %v1688_v47 }
0x1f45   :  { %v1692_v50 = vsel %vm1691_vm6, %v1688_v47, %v1690_v48 }
0x1f46   :  { %v1695_v52 = vsel %vm1693_vm7, %v1694_v51, %v1692_v50 }
0x1f47   :  { %v1696_v53 = vmul.f32 0.03162278, %v1695_v52 }
0x1f49   :  { %v1697_v54 = vmax.f32 %v1696_v53, 1e-06 }
0x1f4b   :  { %v1698_v55 = vmin.f32 %v1697_v54, 0.99999 }
0x1f4d   :  { %v1699_v56 = vadd.f32 1.0, %v1698_v55  ;;  %v1702_v57 = vsub.f32 1.0, %v1698_v55 }
0x1f4f   :  { %2307 = vlog2.f32 %v1699_v56 }
0x1f50   :  { %2309 = vlog2.f32 %v1702_v57 }
0x1f51   :  { %2311 = vrcp.f32 %v1698_v55 }
0x1f5c   :  { %v2308_v58 = vpop.eup %2307 }
0x1f5d   :  { %v2310_v59 = vpop.eup %2309  ;;  %v1701_v62 = vmul.f32 0.6931472, %v2308_v58 }
0x1f5e   :  { %v1704_v63 = vmul.f32 0.6931472, %v2310_v59  ;;  %v2312_v0 = vpop.eup %2311 }
0x1f60   :  { %v1705_v60 = vsub.f32 %v1701_v62, %v1704_v63 }
0x1f62   :  { %v1706_v61 = vmul.f32 0.5, %v1705_v60 }
0x1f64   :  { %v1708_v4 = vmul.f32 %v2312_v0, %v1706_v61 }
0x1f66   :  { %v1709_v5 = vmul.f32 %v1708_v4, %v1708_v4 }
0x1fa5   :  { %v1740_v43 = vpop.permute.xlu0 %1739 }
0x1fa6   :  { %v1742_v45 = vmul.f32 %v1996_v34, %v1740_v43 }
0x1fa9   :  { %v1678_v35 = vpop.permute.xlu1 %1677 }
0x1faa   :  { %v1680_v42 = vmul.f32 %v1996_v34, %v1678_v35 }
0x1fac   :  { %1682 = vrot.lane.b32.xlu1 %v1680_v42, %s2362_s17 }
0x1fb0   :  { %1727 = vrot.lane.b32.xlu1 %v2877_v32, %s2361_s4  ;;  %v2911_v32 = vld [vmem:[%s2969_s5 + $0x13] ss:$0 sm:$0xff] }
0x201e   :  { %v1683_v39 = vpop.permute.xlu1 %1682 }
0x201f   :  { %v1685_v40 = vsel %vm173_vm3, %v1683_v39, 0.0 }
0x2020   :  { %1686 = vadd.xlane.f32.xlu1 %v1685_v40 }
0x2022   :  { %v1728_v41 = vpop.permute.xlu1 %1727 }
0x2023   :  { %v1730_v44 = vmul.f32 %v1996_v34, %v1728_v41 }
0x2025   :  { %1732 = vrot.lane.b32.xlu0 %v1730_v44, %s2359_s3 }
0x2029   :  { %1744 = vrot.lane.b32.xlu0 %v1742_v45, %s2359_s3 }
0x2097   :  { %v1733_v14 = vpop.permute.xlu0 %1732 }
0x2098   :  { %v1735_v21 = vadd.f32 %v1733_v14, %v1725_v18 }
0x209b   :  { %v1745_v17 = vpop.permute.xlu0 %1744 }
0x209c   :  { %v1747_v22 = vsub.f32 %v1737_v19, %v1745_v17  ;;  %v1880_v19 = vld [vmem:[%s2972_s8 + $0x18] sm:$0xff] }
0x209d   :  { %2034 = vmatpush3.msra.mxu1 %v1880_v19 }
0x209e   :  { %2035 = vmatprep.subr.mxu1 %v2357_v1 }
0x20a9   :  { %v1687_v6 = vpop.xlane.xlu1 %1686 }
0x20aa   :  { %v1710_v46 = vmul.f32 %v1709_v5, %v1687_v6 }
0x20ac   :  { %v1711_v27 = vadd.f32 1e-12, %v1710_v46 }
0x20ae   :  { %2313 = vrsqrt.f32 %v1711_v27  ;;  %vm1714_vm8 = vcmp.eq.f32.partialorder %v1711_v27, inf  ;;  %v1717_v9 = vand.u32 2147483648, %v1711_v27  ;;  %vm1716_vm9 = vcmp.eq.f32.partialorder %v1711_v27, 0.0 }
0x20bb   :  { %v2314_v7 = vpop.eup %2313 }
0x20bc   :  { %v1713_v8 = vmul.f32 %v2314_v7, %v1711_v27 }
0x20be   :  { %v1715_v10 = vsel %vm1714_vm8, %v1711_v27, %v1713_v8 }
0x20bf   :  { %v1718_v11 = vsel %vm1716_vm9, %v1717_v9, %v1715_v10 }
0x20c0   :  { %v1719_v12 = vmul.f32 0.03162278, %v1718_v11 }
0x20c2   :  { %v1720_v13 = vmax.f32 %v1719_v12, 1e-06 }
0x20c4   :  { %2315 = vtanh.f32 %v1720_v13 }
0x20c5   :  { %2317 = vrcp.f32 %v1720_v13 }
0x20d1   :  { %v2316_v15 = vpop.eup %2315 }
0x20d2   :  { %v2318_v16 = vpop.eup %2317 }
0x20d3   :  { %v1723_v20 = vmul.f32 %v2318_v16, %v2316_v15 }
0x20d5   :  { %v1724_v23 = vmul.f32 %v1723_v20, %v1708_v4  ;;  %v1749_v24 = vmul.f32 %v1723_v20, %v1723_v20  ;;  %v1879_v20 = vld [vmem:[%s2972_s8 + $0x10] sm:$0xff] }
0x20d6   :  { %2036 = vmatpush3.msra.mxu1 %v1879_v20 }
0x20d7   :  { %v2899_v25 = vmul.f32 %v1735_v21, %v1724_v23  ;;  %v2901_v26 = vmul.f32 %v1747_v22, %v1724_v23  ;;  %v1750_v28 = vmul.f32 %v1749_v24, %v1710_v46  ;;  %2037 = vmatprep.subr.mxu1 %v2357_v1  ;;  %v1877_v21 = vld [vmem:[%s2972_s8] sm:$0xff] }
0x20d9   :  { %v1752_v29 = vmul.f32 %v2899_v25, %v2899_v25  ;;  %v1753_v33 = vmul.f32 %v2901_v26, %v2901_v26  ;;  %v1771_v41 = vadd.f32 1e-12, %v1750_v28  ;;  %v1820_v14 = vmul.f32 %v2911_v32, %v2901_v26 }
0x20da   :  { %v1808_v23 = vmul.f32 %v2911_v32, %v2899_v25 }
0x20db   :  { %v1754_v31 = vadd.f32 %v1753_v33, %v1752_v29  ;;  %2319 = vrsqrt.f32 %v1771_v41  ;;  %vm1774_vm10 = vcmp.eq.f32.partialorder %v1771_v41, inf  ;;  %v1777_v47 = vand.u32 2147483648, %v1771_v41 }
0x20dc   :  { %vm1776_vm11 = vcmp.eq.f32.partialorder %v1771_v41, 0.0 }
0x20dd   :  { %1760 = vrot.lane.b32.xlu0 %v1754_v31, %s2360_s14 }
0x20e8   :  { %v2320_v44 = vpop.eup %2319 }
0x20e9   :  { %v1773_v43 = vmul.f32 %v2320_v44, %v1771_v41 }
0x20eb   :  { %v1775_v45 = vsel %vm1774_vm10, %v1771_v41, %v1773_v43 }
0x20ec   :  { %v1778_v49 = vsel %vm1776_vm11, %v1777_v47, %v1775_v45 }
0x20ed   :  { %v1779_v48 = vmul.f32 0.03162278, %v1778_v49 }
0x20ef   :  { %v1780_v50 = vmax.f32 %v1779_v48, 1e-06  ;;  %v1839_v48 = vld [vmem:[%s2970_s6] sm:$0x1]  ;;  %s2363_s6 = smov [#allocation2]  }
0x20f0   :  { %s1968_s22 = sshll.u32 %s2363_s6, 4  ;;  %s1969_s22 = int_to_ptr.vmem [resolvable:$true] %s1968_s22 }
0x20f1   :  { %v1781_v51 = vmin.f32 %v1780_v50, 0.99999  ;;  %p2340_p1 = scmp.lt.s32.totalorder %s1969_s22, %s1969_s22 }
0x20f3   :  { %v1782_v52 = vadd.f32 1.0, %v1781_v51  ;;  %v1785_v53 = vsub.f32 1.0, %v1781_v51 }
0x20f5   :  { %2321 = vlog2.f32 %v1782_v52  ;;  %v1840_v52 = vld [vmem:[%s2971_s7] sm:$0x1]  ;;  %s2335_s7 = scalar_lea.vmem %s1969_s22, 128 }
0x20f6   :  { %2323 = vlog2.f32 %v1785_v53  ;;  %p2336_p0 = scmp.ne.s32.totalorder %s1969_s22, %s2335_s7  ;;  %p2341_p2 = scmp.lt.s32.totalorder %s2335_s7, %s2335_s7 }
0x20f7   :  { %2325 = vrcp.f32 %v1781_v51 }
0x20f8   :  { %p2342_p3 = por %p2341_p2, %p2340_p1 }
0x20fa   :  { %p2343_p4 = pnand %p2342_p3, %p2336_p0 }
0x2102   :  { %v2322_v54 = vpop.eup %2321 }
0x2103   :  { %v2324_v55 = vpop.eup %2323  ;;  %v1784_v56 = vmul.f32 0.6931472, %v2322_v54 }
0x2104   :  { %v1787_v57 = vmul.f32 0.6931472, %v2324_v55  ;;  %v2326_v62 = vpop.eup %2325 }
0x2106   :  { %v1788_v58 = vsub.f32 %v1784_v56, %v1787_v57 }
0x2108   :  { %v1789_v59 = vmul.f32 0.5, %v1788_v58 }
0x210a   :  { %v1791_v63 = vmul.f32 %v2326_v62, %v1789_v59  ;;  %v1998_v62 = vld [vmem:[%s2973_s9] ss:$0 sm:$0xff] }
0x210c   :  { %v1792_v60 = vmul.f32 %v1791_v63, %v1791_v63 }
0x214f   :  { %v1761_v30 = vpop.permute.xlu0 %1760 }
0x2150   :  { %v1763_v38 = vmul.f32 %v2911_v32, %v1761_v30 }
0x2152   :  { %1765 = vrot.lane.b32.xlu0 %v1763_v38, %s2362_s17 }
0x2156   :  { %1822 = vrot.lane.b32.xlu0 %v2899_v25, %s2361_s4 }
0x215a   :  { %1810 = vrot.lane.b32.xlu0 %v2901_v26, %s2361_s4 }
0x21c4   :  { %v1766_v37 = vpop.permute.xlu0 %1765 }
0x21c5   :  { %v1768_v34 = vsel %vm173_vm3, %v1766_v37, 0.0 }
0x21c6   :  { %1769 = vadd.xlane.f32.xlu1 %v1768_v34 }
0x21c8   :  { %v1823_v35 = vpop.permute.xlu0 %1822 }
0x21c9   :  { %v1825_v40 = vmul.f32 %v2911_v32, %v1823_v35 }
0x21cc   :  { %v1811_v42 = vpop.permute.xlu0 %1810 }
0x21cd   :  { %v1813_v39 = vmul.f32 %v2911_v32, %v1811_v42 }
0x21cf   :  { %1815 = vrot.lane.b32.xlu0 %v1813_v39, %s2359_s3 }
0x21d7   :  { %1827 = vrot.lane.b32.xlu1 %v1825_v40, %s2359_s3 }
0x2241   :  { %v1816_v22 = vpop.permute.xlu0 %1815 }
0x2242   :  { %v1818_v24 = vadd.f32 %v1816_v22, %v1808_v23 }
0x224f   :  { %v1770_v61 = vpop.xlane.xlu1 %1769 }
0x2250   :  { %v1793_v0 = vmul.f32 %v1792_v60, %v1770_v61 }
0x2252   :  { %v1794_v4 = vadd.f32 1e-12, %v1793_v0 }
0x2253   :  { %v1828_v12 = vpop.permute.xlu1 %1827 }
0x2254   :  { %2327 = vrsqrt.f32 %v1794_v4  ;;  %vm1797_vm12 = vcmp.eq.f32.partialorder %v1794_v4, inf  ;;  %v1800_v46 = vand.u32 2147483648, %v1794_v4  ;;  %vm1799_vm13 = vcmp.eq.f32.partialorder %v1794_v4, 0.0 }
0x2255   :  { %v1830_v16 = vsub.f32 %v1820_v14, %v1828_v12 }
0x2261   :  { %v2328_v5 = vpop.eup %2327 }
0x2262   :  { %v1796_v6 = vmul.f32 %v2328_v5, %v1794_v4 }
0x2264   :  { %v1798_v27 = vsel %vm1797_vm12, %v1794_v4, %v1796_v6 }
0x2265   :  { %v1801_v7 = vsel %vm1799_vm13, %v1800_v46, %v1798_v27 }
0x2266   :  { %v1802_v8 = vmul.f32 0.03162278, %v1801_v7 }
0x2268   :  { %v1803_v9 = vmax.f32 %v1802_v8, 1e-06 }
0x226a   :  { %2329 = vtanh.f32 %v1803_v9 }
0x226b   :  { %2331 = vrcp.f32 %v1803_v9 }
0x2277   :  { %v2330_v10 = vpop.eup %2329 }
0x2278   :  { %v2332_v11 = vpop.eup %2331 }
0x2279   :  { %v1806_v13 = vmul.f32 %v2332_v11, %v2330_v10 }
0x227b   :  { %v1807_v15 = vmul.f32 %v1806_v13, %v1791_v63 }
0x227d   :  { %v1831_v17 = vmul.f32 %v1830_v16, %v1807_v15  ;;  %v1819_v26 = vmul.f32 %v1818_v24, %v1807_v15 }
0x227f   :  { %v1833_v18 = vadd.f32 %v1831_v17, %v2699_v2  ;;  %v1878_v2 = vld [vmem:[%s2972_s8 + $0x8] sm:$0xff]  ;;  %v1832_v28 = vadd.f32 %v1819_v26, %v2702_v3 }
0x2280   :  { %2038 = vmatpush3.msra.mxu1 %v1878_v2 }
0x2281   :  { %1835 = vrot.lane.b32.xlu0 %v1833_v18, %s2361_s4  ;;  %2039 = vmatprep.subr.mxu1 %v2357_v1 }
0x2282   :  { %2040 = vmatpush3.msra.mxu1 %v1877_v21 }
0x22f3   :  { %v1836_v29 = vpop.permute.xlu0 %1835 }
0x22f4   :  { %v1838_v33 = vsel %vm173_vm3, %v1832_v28, %v1836_v29 }
0x22f5   :  { %v1841_v31 = vsel %vm128_vm2, %v1838_v33, 0.0 }
0x22f6   :  { %v1842_v30 = vrot.slane %v1841_v31, 4 }
0x22f8   :  { %v1843_v1 = vadd.f32 %v1842_v30, %v1841_v31 }
0x22fa   :  { %v1844_v38 = vrot.slane %v1843_v1, 2 }
0x22fc   :  { %v1845_v37 = vadd.f32 %v1844_v38, %v1843_v1 }
0x22fe   :  { %v1846_v34 = vrot.slane %v1845_v37, 1 }
0x2300   :  { %v1847_v35 = vadd.f32 %v1846_v34, %v1845_v37 }
0x2302   :  { %v1848_v42 = vmul.f32 0.125, %v1847_v35 }
0x2304   :  { %v1849_v39 = vsub.f32 %v1838_v33, %v1848_v42 }
0x2306   :  { %v1850_v40 = vmul.f32 %v1849_v39, %v1849_v39 }
0x2308   :  { %v1851_v25 = vsel %vm128_vm2, %v1850_v40, 0.0 }
0x2309   :  { %v1852_v32 = vrot.slane %v1851_v25, 4 }
0x230b   :  { %v1853_v41 = vadd.f32 %v1852_v32, %v1851_v25 }
0x230d   :  { %v1854_v44 = vrot.slane %v1853_v41, 2 }
0x230f   :  { %v1855_v3 = vadd.f32 %v1854_v44, %v1853_v41 }
0x2311   :  { %v1856_v43 = vrot.slane %v1855_v3, 1 }
0x2313   :  { %v1857_v45 = vadd.f32 %v1856_v43, %v1855_v3 }
0x2315   :  { %v1858_v47 = vmul.f32 0.125, %v1857_v45 }
0x2317   :  { %v1859_v49 = vadd.f32 1e-05, %v1858_v47 }
0x2319   :  { %2333 = vrsqrt.f32 %v1859_v49 }
0x2326   :  { %v2334_v50 = vpop.eup %2333 }
0x2327   :  { %v1861_v51 = vmul.f32 %v2334_v50, %v1839_v48 }
0x2329   :  { %v1862_v53 = vmul.f32 %v1861_v51, %v1848_v42  ;;  %v1867_v54 = vrot.slane %v1861_v51, %v2465_v36 }
0x232b   :  { %v1863_v55 = vsub.f32 %v1840_v52, %v1862_v53  ;;  %v1868_v56 = vmul.f32 %v1867_v54, %v1838_v33 }
0x232d   :  { %v1873_v57 = vrot.slane %v1863_v55, %v2465_v36 }
0x232f   :  { %v1875_v58 = vadd.f32 %v1873_v57, %v1868_v56 }
0x2331   :  { %v1876_v59 = vmax.f32 %v1875_v58, 0.0 }
0x2333   :  { %2042 = vmatmul.mubr.msk.f32.vlgmr.msra.gmra.mxu1 %vm128_vm2, %v1876_v59 }
0x23f3   :  { %v1957_v63 = vpop.f32.mrf.mxu1 }
0x23f4   :  { %v1958_v60 = vadd.f32 %v1998_v62, %v1957_v63 }
0x23f5   :  { %v2043_v61 = vpop.f32.mrf.mxu1 }
0x23f6   :  { %1961 = vst [vmem:[#allocation2] sm:$0xff] %v1958_v60 }
0x23f7   :  { %2346 = shalt.err (!%p2343_p4)
}
0x23f8   :  { %1971 = dma.vmem_to_hbm [thread:$0]  %s1969_s22, 128, %s2974_s10, [#allocation3]  }
0x23f9   :  { %2355 = dma.done.wait [#allocation3], 128  }
0x23fa   :  { %2356 = vsyncadd [#allocation3], 4294967168 }
0x23fb   :  { %1975 = vsyncpa [#allocation3], 1 }

</bundles_post_ra>
